<compile_context>
chip_gen: v7x
topology: tpu7x:2x2x1
jax: 0.10.0
libtpu: 0.0.40
codegen_flags: <defaults>
</compile_context>

<pallas_src>
import functools
import math

import jax
import jax.numpy as jnp
from jax.experimental import pallas as pl
from jax.experimental.pallas import tpu as pltpu


# ----------------------------------------------------------------------------
# Pallas kernel: whole GRU (all T steps) in one invocation
# ----------------------------------------------------------------------------
def _att_encode_kernel(y_ref,       # (T*B, E)   bf16 embedded tokens, time-major
                       wih_ref,     # (E, 3*Hp)  bf16 fused input weights [r|z|n]
                       bih_ref,     # (1, 3*Hp)  f32  fused bias [bir+bhr|biz+bhz|bin]
                       whh_ref,     # (Hp, 3*Hp) bf16 fused hidden weights [r|z|n]
                       bhhn_ref,    # (1, Hp)    f32  hidden bias of the n gate only
                       out_ref,     # (B, T*Hp)  f32  hidden state per step (lane-major)
                       gx_ref,      # (T*B, 3*Hp) f32 scratch: precomputed input gates
                       *, seq_len, batch, hidden_p):
    Hp = hidden_p

    # ---- Hoisted input-side projection: one MXU pass for every (t, b) row.
    # bf16 operands, f32 accumulation; bias already contains b_hh[r], b_hh[z].
    gx_ref[...] = (
        jnp.dot(y_ref[...], wih_ref[...], preferred_element_type=jnp.float32)
        + bih_ref[...]
    )

    # Tiny (B, Hp) broadcast of b_hh[n], hoisted out of the loop.
    bhh_n = jnp.broadcast_to(bhhn_ref[...], (batch, Hp))

    # PyTorch GRU default initial hidden state is zeros.
    h = jnp.zeros((batch, Hp), jnp.float32)

    # ---- Sequential recurrence, fully unrolled (T is small & static). ----
    for t in range(seq_len):
        gx = gx_ref[pl.ds(t * batch, batch), :]                 # (B, 3*Hp) f32

        # NOTE: whh_ref[...] is re-read each step on purpose (bf16, 384 KiB):
        # the load hides under the MXU weight push; hoisting it into a value
        # spanning the unrolled loop would spill the vreg file.
        gh = jnp.dot(h.astype(jnp.bfloat16), whh_ref[...],
                     preferred_element_type=jnp.float32)        # (B, 3*Hp) f32

        r = jax.nn.sigmoid(gx[:, 0:Hp] + gh[:, 0:Hp])
        z = jax.nn.sigmoid(gx[:, Hp:2 * Hp] + gh[:, Hp:2 * Hp])
        n = jnp.tanh(gx[:, 2 * Hp:3 * Hp] + r * (gh[:, 2 * Hp:3 * Hp] + bhh_n))
        h = (1.0 - z) * n + z * h

        # Lane-aligned 256-wide slice store; each t hits distinct output tiles
        # (no read-modify-write of previously written tiles).
        out_ref[:, t * Hp:(t + 1) * Hp] = h


# ----------------------------------------------------------------------------
# One-time parameter prep: gate fusion, Hp padding, bf16 cast, bias folding.
# Call this ONCE; do not put it on the per-call path.
# ----------------------------------------------------------------------------
def prepare_att_encode_params(params):
    embed = params["embed"]          # (V, E)
    w_ih = params["w_ih"]            # (3, E, H)   gates [r, z, n]
    b_ih = params["b_ih"]            # (3, H)
    w_hh = params["w_hh"]            # (3, H, H)
    b_hh = params["b_hh"]            # (3, H)

    H = w_hh.shape[-1]
    Hp = ((H + 127) // 128) * 128    # 200 -> 256: lane-aligned hidden dim
    ph = Hp - H

    def padh(v):                     # pad last dim H -> Hp with zeros
        return jnp.pad(v, [(0, 0)] * (v.ndim - 1) + [(0, ph)])

    wih_p = padh(w_ih)                                        # (3, E, Hp)
    whh_p = jnp.pad(w_hh, ((0, 0), (0, ph), (0, ph)))         # (3, Hp, Hp)

    # Fold the r/z hidden biases into the input-side bias; keep b_hh[n]
    # separate (it must stay inside the r*(...) term of the candidate).
    bih_r = padh(b_ih[0] + b_hh[0])
    bih_z = padh(b_ih[1] + b_hh[1])
    bih_n = padh(b_ih[2])
    bhh_n = padh(b_hh[2])

    wih_cat = jnp.concatenate([wih_p[0], wih_p[1], wih_p[2]], axis=1)  # (E, 3Hp)
    whh_cat = jnp.concatenate([whh_p[0], whh_p[1], whh_p[2]], axis=1)  # (Hp, 3Hp)
    bih_cat = jnp.concatenate([bih_r, bih_z, bih_n], axis=0)[None, :]  # (1, 3Hp)

    return {
        "embed": embed.astype(jnp.bfloat16),          # (V, E)    bf16
        "wih": wih_cat.astype(jnp.bfloat16),          # (E, 3Hp)  bf16
        "bih": bih_cat.astype(jnp.float32),           # (1, 3Hp)  f32
        "whh": whh_cat.astype(jnp.bfloat16),          # (Hp, 3Hp) bf16
        "bhh_n": bhh_n[None, :].astype(jnp.float32),  # (1, Hp)   f32
    }


# ----------------------------------------------------------------------------
# Per-call wrapper: embedding gather + pallas_call (everything else is prepped)
# ----------------------------------------------------------------------------
@functools.partial(jax.jit, static_argnames=("hidden",))
def att_encode(x_tokens, fused, hidden):
    """x_tokens: (B, T) int32 token ids. Returns h1: (B, T, hidden)."""
    embed = fused["embed"]
    wih = fused["wih"]
    bih = fused["bih"]
    whh = fused["whh"]
    bhh_n = fused["bhh_n"]

    B, T = x_tokens.shape
    E = embed.shape[1]
    Hp = whh.shape[0]
    H = hidden

    # Embedding gather directly in time-major order (transpose the small int32
    # token matrix, not the gathered embeddings).
    y2d = jnp.take(embed, x_tokens.T.reshape(-1), axis=0)       # (T*B, E) bf16

    kernel = functools.partial(_att_encode_kernel,
                               seq_len=T, batch=B, hidden_p=Hp)

    h_flat = pl.pallas_call(
        kernel,
        out_shape=jax.ShapeDtypeStruct((B, T * Hp), jnp.float32),
        grid_spec=pltpu.PrefetchScalarGridSpec(
            num_scalar_prefetch=0,
            grid=(1,),
            in_specs=[
                pl.BlockSpec((T * B, E), lambda i: (0, 0)),      # y2d
                pl.BlockSpec((E, 3 * Hp), lambda i: (0, 0)),     # w_ih fused
                pl.BlockSpec((1, 3 * Hp), lambda i: (0, 0)),     # b fused
                pl.BlockSpec((Hp, 3 * Hp), lambda i: (0, 0)),    # w_hh fused
                pl.BlockSpec((1, Hp), lambda i: (0, 0)),         # b_hh[n]
            ],
            out_specs=pl.BlockSpec((B, T * Hp), lambda i: (0, 0)),
            scratch_shapes=[pltpu.VMEM((T * B, 3 * Hp), jnp.float32)],
        ),
        compiler_params=pltpu.CompilerParams(
            dimension_semantics=("arbitrary",)),
    )(y2d, wih, bih, whh, bhh_n)

    # (B, T*Hp) -> (B, T, Hp) -> drop the zero padding lanes.
    return h_flat.reshape(B, T, Hp)[:, :, :H]


# ----------------------------------------------------------------------------
# Pure-JAX reference (PyTorch GRU gate convention, f32 throughout)
# ----------------------------------------------------------------------------
def att_encode_ref(x_tokens, params):
    embed = params["embed"]
    w_ih, b_ih = params["w_ih"], params["b_ih"]
    w_hh, b_hh = params["w_hh"], params["b_hh"]

    x_emb = jnp.take(embed, x_tokens, axis=0)                  # (B, T, E)
    B = x_tokens.shape[0]
    H = w_hh.shape[-1]
    h0 = jnp.zeros((B, H), jnp.float32)

    def step(h, x):
        r = jax.nn.sigmoid(x @ w_ih[0] + b_ih[0] + h @ w_hh[0] + b_hh[0])
        z = jax.nn.sigmoid(x @ w_ih[1] + b_ih[1] + h @ w_hh[1] + b_hh[1])
        n = jnp.tanh(x @ w_ih[2] + b_ih[2] + r * (h @ w_hh[2] + b_hh[2]))
        h_new = (1.0 - z) * n + z * h
        return h_new, h_new

    _, hs = jax.lax.scan(step, h0, jnp.transpose(x_emb, (1, 0, 2)))
    return jnp.transpose(hs, (1, 0, 2))                        # (B, T, H)


# ----------------------------------------------------------------------------
# Deterministic parameter construction + demo
# ----------------------------------------------------------------------------
def make_params(key, vocab, embed_len, hidden):
    ks = jax.random.split(key, 5)
    s = 1.0 / math.sqrt(hidden)
    return {
        "embed": jax.random.normal(ks[0], (vocab, embed_len), jnp.float32) * 0.1,
        "w_ih": jax.random.uniform(ks[1], (3, embed_len, hidden), jnp.float32,
                                   -s, s),
        "b_ih": jax.random.uniform(ks[2], (3, hidden), jnp.float32, -s, s),
        "w_hh": jax.random.uniform(ks[3], (3, hidden, hidden), jnp.float32,
                                   -s, s),
        "b_hh": jax.random.uniform(ks[4], (3, hidden), jnp.float32, -s, s),
    }


if __name__ == "__main__":
    VOCAB, EMBED, HIDDEN = 50, 32, 200   # hidden=200 fixed by the module
    B, T = 2, 8

    key = jax.random.PRNGKey(0)
    kp, kx = jax.random.split(key)
    params = make_params(kp, VOCAB, EMBED, HIDDEN)
    x = jax.random.randint(kx, (B, T), 0, VOCAB, dtype=jnp.int32)

    # One-time weight fusion / padding / bf16 cast (off the per-call path).
    fused = prepare_att_encode_params(params)

    h1 = att_encode(x, fused, HIDDEN)
    jax.block_until_ready(h1)

    h1_ref = att_encode_ref(x, params)
    assert h1.shape == (B, T, HIDDEN)
    # bf16 matmul operands (f32 accumulation) vs. the f32 reference.
    assert jnp.allclose(h1, h1_ref, atol=2e-2, rtol=2e-2)

    print("KERNEL_OK")
</pallas_src>

<mosaic_0001>
module attributes {stable_mosaic.version = 11 : i64} {
  func.func @_att_encode_kernel(%arg0: i32, %arg1: memref<16x32xbf16, #tpu.memory_space<vmem>>, %arg2: memref<32x768xbf16, #tpu.memory_space<vmem>>, %arg3: memref<1x768xf32, #tpu.memory_space<vmem>>, %arg4: memref<256x768xbf16, #tpu.memory_space<vmem>>, %arg5: memref<1x256xf32, #tpu.memory_space<vmem>>, %arg6: memref<2x2048xf32, #tpu.memory_space<vmem>>, %arg7: memref<16x768xf32, #tpu.memory_space<vmem>>) attributes {dimension_semantics = [#tpu.dimension_semantics<arbitrary>], iteration_bounds = array<i64: 1>, scalar_prefetch = 0 : i64, scratch_operands = 1 : i64, tpu.core_type = #tpu.core_type<tc>, window_params = [{pipeline_mode = #tpu.pipeline_mode<synchronous>, transform_indices = @transform_0, window_bounds = array<i64: 16, 32>}, {pipeline_mode = #tpu.pipeline_mode<synchronous>, transform_indices = @transform_1, window_bounds = array<i64: 32, 768>}, {pipeline_mode = #tpu.pipeline_mode<synchronous>, transform_indices = @transform_2, window_bounds = array<i64: 1, 768>}, {pipeline_mode = #tpu.pipeline_mode<synchronous>, transform_indices = @transform_3, window_bounds = array<i64: 256, 768>}, {pipeline_mode = #tpu.pipeline_mode<synchronous>, transform_indices = @transform_4, window_bounds = array<i64: 1, 256>}, {pipeline_mode = #tpu.pipeline_mode<synchronous>, transform_indices = @transform_5, window_bounds = array<i64: 2, 2048>}]} {
    %c0 = arith.constant 0 : index
    %c0_0 = arith.constant 0 : index
    %0 = vector.load %arg1[%c0, %c0_0] : memref<16x32xbf16, #tpu.memory_space<vmem>>, vector<16x32xbf16>
    %c0_1 = arith.constant 0 : index
    %c0_2 = arith.constant 0 : index
    %1 = vector.load %arg2[%c0_1, %c0_2] : memref<32x768xbf16, #tpu.memory_space<vmem>>, vector<32x768xbf16>
    %cst = arith.constant dense<0.000000e+00> : vector<16x768xf32>
    %2 = tpu.matmul %0, %1, %cst {dimension_numbers = #tpu.dot_dimension_numbers<[1], [0], [0], [1], [0, 0, 1, 1], [], []>} : vector<16x32xbf16>, vector<32x768xbf16>, vector<16x768xf32> -> vector<16x768xf32>
    %c0_3 = arith.constant 0 : index
    %c0_4 = arith.constant 0 : index
    %3 = vector.load %arg3[%c0_3, %c0_4] : memref<1x768xf32, #tpu.memory_space<vmem>>, vector<1x768xf32>
    %4 = vector.broadcast %3 : vector<1x768xf32> to vector<16x768xf32>
    %5 = arith.addf %2, %4 : vector<16x768xf32>
    %c0_5 = arith.constant 0 : index
    %c0_6 = arith.constant 0 : index
    %6 = vector.load %arg7[%c0_5, %c0_6] : memref<16x768xf32, #tpu.memory_space<vmem>>, vector<16x768xf32>
    tpu.vector_store %arg7[%c0_5, %c0_6], %5 {strides = array<i32>} : memref<16x768xf32, #tpu.memory_space<vmem>>, vector<16x768xf32>,
    %c0_7 = arith.constant 0 : index
    %c0_8 = arith.constant 0 : index
    %7 = vector.load %arg5[%c0_7, %c0_8] : memref<1x256xf32, #tpu.memory_space<vmem>>, vector<1x256xf32>
    %8 = vector.shape_cast %7 : vector<1x256xf32> to vector<1x256xf32>
    %9 = vector.broadcast %8 : vector<1x256xf32> to vector<2x256xf32>
    %cst_9 = arith.constant 0.000000e+00 : f32
    %10 = vector.broadcast %cst_9 : f32 to vector<2x256xf32>
    %c0_10 = arith.constant 0 : index
    %c0_11 = arith.constant 0 : index
    %11 = vector.load %arg7[%c0_10, %c0_11] : memref<16x768xf32, #tpu.memory_space<vmem>>, vector<2x768xf32>
    %12 = arith.truncf %10 : vector<2x256xf32> to vector<2x256xbf16>
    %c0_12 = arith.constant 0 : index
    %c0_13 = arith.constant 0 : index
    %13 = vector.load %arg4[%c0_12, %c0_13] : memref<256x768xbf16, #tpu.memory_space<vmem>>, vector<256x768xbf16>
    %cst_14 = arith.constant dense<0.000000e+00> : vector<2x768xf32>
    %14 = tpu.matmul %12, %13, %cst_14 {dimension_numbers = #tpu.dot_dimension_numbers<[1], [0], [0], [1], [0, 0, 1, 1], [], []>} : vector<2x256xbf16>, vector<256x768xbf16>, vector<2x768xf32> -> vector<2x768xf32>
    %15 = vector.extract_strided_slice %11 {offsets = [0, 0], sizes = [2, 256], strides = [1, 1]} : vector<2x768xf32> to vector<2x256xf32>
    %16 = vector.extract_strided_slice %14 {offsets = [0, 0], sizes = [2, 256], strides = [1, 1]} : vector<2x768xf32> to vector<2x256xf32>
    %17 = arith.addf %15, %16 : vector<2x256xf32>
    %18 = arith.negf %17 : vector<2x256xf32>
    %19 = math.exp %18 : vector<2x256xf32>
    %cst_15 = arith.constant 1.000000e+00 : f32
    %20 = vector.broadcast %cst_15 : f32 to vector<2x256xf32>
    %21 = arith.addf %20, %19 : vector<2x256xf32>
    %22 = arith.divf %20, %21 : vector<2x256xf32>
    %23 = vector.extract_strided_slice %11 {offsets = [0, 256], sizes = [2, 256], strides = [1, 1]} : vector<2x768xf32> to vector<2x256xf32>
    %24 = vector.extract_strided_slice %14 {offsets = [0, 256], sizes = [2, 256], strides = [1, 1]} : vector<2x768xf32> to vector<2x256xf32>
    %25 = arith.addf %23, %24 : vector<2x256xf32>
    %26 = arith.negf %25 : vector<2x256xf32>
    %27 = math.exp %26 : vector<2x256xf32>
    %cst_16 = arith.constant 1.000000e+00 : f32
    %28 = vector.broadcast %cst_16 : f32 to vector<2x256xf32>
    %29 = arith.addf %28, %27 : vector<2x256xf32>
    %30 = arith.divf %28, %29 : vector<2x256xf32>
    %31 = vector.extract_strided_slice %11 {offsets = [0, 512], sizes = [2, 256], strides = [1, 1]} : vector<2x768xf32> to vector<2x256xf32>
    %32 = vector.extract_strided_slice %14 {offsets = [0, 512], sizes = [2, 256], strides = [1, 1]} : vector<2x768xf32> to vector<2x256xf32>
    %33 = arith.addf %32, %9 : vector<2x256xf32>
    %34 = arith.mulf %22, %33 : vector<2x256xf32>
    %35 = arith.addf %31, %34 : vector<2x256xf32>
    %36 = math.tanh %35 : vector<2x256xf32>
    %cst_17 = arith.constant 1.000000e+00 : f32
    %37 = vector.broadcast %cst_17 : f32 to vector<2x256xf32>
    %38 = arith.subf %37, %30 : vector<2x256xf32>
    %39 = arith.mulf %38, %36 : vector<2x256xf32>
    %40 = arith.mulf %30, %10 : vector<2x256xf32>
    %41 = arith.addf %39, %40 : vector<2x256xf32>
    %c0_18 = arith.constant 0 : index
    %c0_19 = arith.constant 0 : index
    %42 = vector.load %arg6[%c0_18, %c0_19] : memref<2x2048xf32, #tpu.memory_space<vmem>>, vector<2x256xf32>
    tpu.vector_store %arg6[%c0_18, %c0_19], %41 {strides = array<i32>} : memref<2x2048xf32, #tpu.memory_space<vmem>>, vector<2x256xf32>,
    %c2 = arith.constant 2 : index
    %c0_20 = arith.constant 0 : index
    %43 = vector.load %arg7[%c2, %c0_20] : memref<16x768xf32, #tpu.memory_space<vmem>>, vector<2x768xf32>
    %44 = arith.truncf %41 : vector<2x256xf32> to vector<2x256xbf16>
    %c0_21 = arith.constant 0 : index
    %c0_22 = arith.constant 0 : index
    %45 = vector.load %arg4[%c0_21, %c0_22] : memref<256x768xbf16, #tpu.memory_space<vmem>>, vector<256x768xbf16>
    %cst_23 = arith.constant dense<0.000000e+00> : vector<2x768xf32>
    %46 = tpu.matmul %44, %45, %cst_23 {dimension_numbers = #tpu.dot_dimension_numbers<[1], [0], [0], [1], [0, 0, 1, 1], [], []>} : vector<2x256xbf16>, vector<256x768xbf16>, vector<2x768xf32> -> vector<2x768xf32>
    %47 = vector.extract_strided_slice %43 {offsets = [0, 0], sizes = [2, 256], strides = [1, 1]} : vector<2x768xf32> to vector<2x256xf32>
    %48 = vector.extract_strided_slice %46 {offsets = [0, 0], sizes = [2, 256], strides = [1, 1]} : vector<2x768xf32> to vector<2x256xf32>
    %49 = arith.addf %47, %48 : vector<2x256xf32>
    %50 = arith.negf %49 : vector<2x256xf32>
    %51 = math.exp %50 : vector<2x256xf32>
    %cst_24 = arith.constant 1.000000e+00 : f32
    %52 = vector.broadcast %cst_24 : f32 to vector<2x256xf32>
    %53 = arith.addf %52, %51 : vector<2x256xf32>
    %54 = arith.divf %52, %53 : vector<2x256xf32>
    %55 = vector.extract_strided_slice %43 {offsets = [0, 256], sizes = [2, 256], strides = [1, 1]} : vector<2x768xf32> to vector<2x256xf32>
    %56 = vector.extract_strided_slice %46 {offsets = [0, 256], sizes = [2, 256], strides = [1, 1]} : vector<2x768xf32> to vector<2x256xf32>
    %57 = arith.addf %55, %56 : vector<2x256xf32>
    %58 = arith.negf %57 : vector<2x256xf32>
    %59 = math.exp %58 : vector<2x256xf32>
    %cst_25 = arith.constant 1.000000e+00 : f32
    %60 = vector.broadcast %cst_25 : f32 to vector<2x256xf32>
    %61 = arith.addf %60, %59 : vector<2x256xf32>
    %62 = arith.divf %60, %61 : vector<2x256xf32>
    %63 = vector.extract_strided_slice %43 {offsets = [0, 512], sizes = [2, 256], strides = [1, 1]} : vector<2x768xf32> to vector<2x256xf32>
    %64 = vector.extract_strided_slice %46 {offsets = [0, 512], sizes = [2, 256], strides = [1, 1]} : vector<2x768xf32> to vector<2x256xf32>
    %65 = arith.addf %64, %9 : vector<2x256xf32>
    %66 = arith.mulf %54, %65 : vector<2x256xf32>
    %67 = arith.addf %63, %66 : vector<2x256xf32>
    %68 = math.tanh %67 : vector<2x256xf32>
    %cst_26 = arith.constant 1.000000e+00 : f32
    %69 = vector.broadcast %cst_26 : f32 to vector<2x256xf32>
    %70 = arith.subf %69, %62 : vector<2x256xf32>
    %71 = arith.mulf %70, %68 : vector<2x256xf32>
    %72 = arith.mulf %62, %41 : vector<2x256xf32>
    %73 = arith.addf %71, %72 : vector<2x256xf32>
    %c0_27 = arith.constant 0 : index
    %c256 = arith.constant 256 : index
    %74 = vector.load %arg6[%c0_27, %c256] : memref<2x2048xf32, #tpu.memory_space<vmem>>, vector<2x256xf32>
    tpu.vector_store %arg6[%c0_27, %c256], %73 {strides = array<i32>} : memref<2x2048xf32, #tpu.memory_space<vmem>>, vector<2x256xf32>,
    %c4 = arith.constant 4 : index
    %c0_28 = arith.constant 0 : index
    %75 = vector.load %arg7[%c4, %c0_28] : memref<16x768xf32, #tpu.memory_space<vmem>>, vector<2x768xf32>
    %76 = arith.truncf %73 : vector<2x256xf32> to vector<2x256xbf16>
    %c0_29 = arith.constant 0 : index
    %c0_30 = arith.constant 0 : index
    %77 = vector.load %arg4[%c0_29, %c0_30] : memref<256x768xbf16, #tpu.memory_space<vmem>>, vector<256x768xbf16>
    %cst_31 = arith.constant dense<0.000000e+00> : vector<2x768xf32>
    %78 = tpu.matmul %76, %77, %cst_31 {dimension_numbers = #tpu.dot_dimension_numbers<[1], [0], [0], [1], [0, 0, 1, 1], [], []>} : vector<2x256xbf16>, vector<256x768xbf16>, vector<2x768xf32> -> vector<2x768xf32>
    %79 = vector.extract_strided_slice %75 {offsets = [0, 0], sizes = [2, 256], strides = [1, 1]} : vector<2x768xf32> to vector<2x256xf32>
    %80 = vector.extract_strided_slice %78 {offsets = [0, 0], sizes = [2, 256], strides = [1, 1]} : vector<2x768xf32> to vector<2x256xf32>
    %81 = arith.addf %79, %80 : vector<2x256xf32>
    %82 = arith.negf %81 : vector<2x256xf32>
    %83 = math.exp %82 : vector<2x256xf32>
    %cst_32 = arith.constant 1.000000e+00 : f32
    %84 = vector.broadcast %cst_32 : f32 to vector<2x256xf32>
    %85 = arith.addf %84, %83 : vector<2x256xf32>
    %86 = arith.divf %84, %85 : vector<2x256xf32>
    %87 = vector.extract_strided_slice %75 {offsets = [0, 256], sizes = [2, 256], strides = [1, 1]} : vector<2x768xf32> to vector<2x256xf32>
    %88 = vector.extract_strided_slice %78 {offsets = [0, 256], sizes = [2, 256], strides = [1, 1]} : vector<2x768xf32> to vector<2x256xf32>
    %89 = arith.addf %87, %88 : vector<2x256xf32>
    %90 = arith.negf %89 : vector<2x256xf32>
    %91 = math.exp %90 : vector<2x256xf32>
    %cst_33 = arith.constant 1.000000e+00 : f32
    %92 = vector.broadcast %cst_33 : f32 to vector<2x256xf32>
    %93 = arith.addf %92, %91 : vector<2x256xf32>
    %94 = arith.divf %92, %93 : vector<2x256xf32>
    %95 = vector.extract_strided_slice %75 {offsets = [0, 512], sizes = [2, 256], strides = [1, 1]} : vector<2x768xf32> to vector<2x256xf32>
    %96 = vector.extract_strided_slice %78 {offsets = [0, 512], sizes = [2, 256], strides = [1, 1]} : vector<2x768xf32> to vector<2x256xf32>
    %97 = arith.addf %96, %9 : vector<2x256xf32>
    %98 = arith.mulf %86, %97 : vector<2x256xf32>
    %99 = arith.addf %95, %98 : vector<2x256xf32>
    %100 = math.tanh %99 : vector<2x256xf32>
    %cst_34 = arith.constant 1.000000e+00 : f32
    %101 = vector.broadcast %cst_34 : f32 to vector<2x256xf32>
    %102 = arith.subf %101, %94 : vector<2x256xf32>
    %103 = arith.mulf %102, %100 : vector<2x256xf32>
    %104 = arith.mulf %94, %73 : vector<2x256xf32>
    %105 = arith.addf %103, %104 : vector<2x256xf32>
    %c0_35 = arith.constant 0 : index
    %c512 = arith.constant 512 : index
    %106 = vector.load %arg6[%c0_35, %c512] : memref<2x2048xf32, #tpu.memory_space<vmem>>, vector<2x256xf32>
    tpu.vector_store %arg6[%c0_35, %c512], %105 {strides = array<i32>} : memref<2x2048xf32, #tpu.memory_space<vmem>>, vector<2x256xf32>,
    %c6 = arith.constant 6 : index
    %c0_36 = arith.constant 0 : index
    %107 = vector.load %arg7[%c6, %c0_36] : memref<16x768xf32, #tpu.memory_space<vmem>>, vector<2x768xf32>
    %108 = arith.truncf %105 : vector<2x256xf32> to vector<2x256xbf16>
    %c0_37 = arith.constant 0 : index
    %c0_38 = arith.constant 0 : index
    %109 = vector.load %arg4[%c0_37, %c0_38] : memref<256x768xbf16, #tpu.memory_space<vmem>>, vector<256x768xbf16>
    %cst_39 = arith.constant dense<0.000000e+00> : vector<2x768xf32>
    %110 = tpu.matmul %108, %109, %cst_39 {dimension_numbers = #tpu.dot_dimension_numbers<[1], [0], [0], [1], [0, 0, 1, 1], [], []>} : vector<2x256xbf16>, vector<256x768xbf16>, vector<2x768xf32> -> vector<2x768xf32>
    %111 = vector.extract_strided_slice %107 {offsets = [0, 0], sizes = [2, 256], strides = [1, 1]} : vector<2x768xf32> to vector<2x256xf32>
    %112 = vector.extract_strided_slice %110 {offsets = [0, 0], sizes = [2, 256], strides = [1, 1]} : vector<2x768xf32> to vector<2x256xf32>
    %113 = arith.addf %111, %112 : vector<2x256xf32>
    %114 = arith.negf %113 : vector<2x256xf32>
    %115 = math.exp %114 : vector<2x256xf32>
    %cst_40 = arith.constant 1.000000e+00 : f32
    %116 = vector.broadcast %cst_40 : f32 to vector<2x256xf32>
    %117 = arith.addf %116, %115 : vector<2x256xf32>
    %118 = arith.divf %116, %117 : vector<2x256xf32>
    %119 = vector.extract_strided_slice %107 {offsets = [0, 256], sizes = [2, 256], strides = [1, 1]} : vector<2x768xf32> to vector<2x256xf32>
    %120 = vector.extract_strided_slice %110 {offsets = [0, 256], sizes = [2, 256], strides = [1, 1]} : vector<2x768xf32> to vector<2x256xf32>
    %121 = arith.addf %119, %120 : vector<2x256xf32>
    %122 = arith.negf %121 : vector<2x256xf32>
    %123 = math.exp %122 : vector<2x256xf32>
    %cst_41 = arith.constant 1.000000e+00 : f32
    %124 = vector.broadcast %cst_41 : f32 to vector<2x256xf32>
    %125 = arith.addf %124, %123 : vector<2x256xf32>
    %126 = arith.divf %124, %125 : vector<2x256xf32>
    %127 = vector.extract_strided_slice %107 {offsets = [0, 512], sizes = [2, 256], strides = [1, 1]} : vector<2x768xf32> to vector<2x256xf32>
    %128 = vector.extract_strided_slice %110 {offsets = [0, 512], sizes = [2, 256], strides = [1, 1]} : vector<2x768xf32> to vector<2x256xf32>
    %129 = arith.addf %128, %9 : vector<2x256xf32>
    %130 = arith.mulf %118, %129 : vector<2x256xf32>
    %131 = arith.addf %127, %130 : vector<2x256xf32>
    %132 = math.tanh %131 : vector<2x256xf32>
    %cst_42 = arith.constant 1.000000e+00 : f32
    %133 = vector.broadcast %cst_42 : f32 to vector<2x256xf32>
    %134 = arith.subf %133, %126 : vector<2x256xf32>
    %135 = arith.mulf %134, %132 : vector<2x256xf32>
    %136 = arith.mulf %126, %105 : vector<2x256xf32>
    %137 = arith.addf %135, %136 : vector<2x256xf32>
    %c0_43 = arith.constant 0 : index
    %c768 = arith.constant 768 : index
    %138 = vector.load %arg6[%c0_43, %c768] : memref<2x2048xf32, #tpu.memory_space<vmem>>, vector<2x256xf32>
    tpu.vector_store %arg6[%c0_43, %c768], %137 {strides = array<i32>} : memref<2x2048xf32, #tpu.memory_space<vmem>>, vector<2x256xf32>,
    %c8 = arith.constant 8 : index
    %c0_44 = arith.constant 0 : index
    %139 = vector.load %arg7[%c8, %c0_44] : memref<16x768xf32, #tpu.memory_space<vmem>>, vector<2x768xf32>
    %140 = arith.truncf %137 : vector<2x256xf32> to vector<2x256xbf16>
    %c0_45 = arith.constant 0 : index
    %c0_46 = arith.constant 0 : index
    %141 = vector.load %arg4[%c0_45, %c0_46] : memref<256x768xbf16, #tpu.memory_space<vmem>>, vector<256x768xbf16>
    %cst_47 = arith.constant dense<0.000000e+00> : vector<2x768xf32>
    %142 = tpu.matmul %140, %141, %cst_47 {dimension_numbers = #tpu.dot_dimension_numbers<[1], [0], [0], [1], [0, 0, 1, 1], [], []>} : vector<2x256xbf16>, vector<256x768xbf16>, vector<2x768xf32> -> vector<2x768xf32>
    %143 = vector.extract_strided_slice %139 {offsets = [0, 0], sizes = [2, 256], strides = [1, 1]} : vector<2x768xf32> to vector<2x256xf32>
    %144 = vector.extract_strided_slice %142 {offsets = [0, 0], sizes = [2, 256], strides = [1, 1]} : vector<2x768xf32> to vector<2x256xf32>
    %145 = arith.addf %143, %144 : vector<2x256xf32>
    %146 = arith.negf %145 : vector<2x256xf32>
    %147 = math.exp %146 : vector<2x256xf32>
    %cst_48 = arith.constant 1.000000e+00 : f32
    %148 = vector.broadcast %cst_48 : f32 to vector<2x256xf32>
    %149 = arith.addf %148, %147 : vector<2x256xf32>
    %150 = arith.divf %148, %149 : vector<2x256xf32>
    %151 = vector.extract_strided_slice %139 {offsets = [0, 256], sizes = [2, 256], strides = [1, 1]} : vector<2x768xf32> to vector<2x256xf32>
    %152 = vector.extract_strided_slice %142 {offsets = [0, 256], sizes = [2, 256], strides = [1, 1]} : vector<2x768xf32> to vector<2x256xf32>
    %153 = arith.addf %151, %152 : vector<2x256xf32>
    %154 = arith.negf %153 : vector<2x256xf32>
    %155 = math.exp %154 : vector<2x256xf32>
    %cst_49 = arith.constant 1.000000e+00 : f32
    %156 = vector.broadcast %cst_49 : f32 to vector<2x256xf32>
    %157 = arith.addf %156, %155 : vector<2x256xf32>
    %158 = arith.divf %156, %157 : vector<2x256xf32>
    %159 = vector.extract_strided_slice %139 {offsets = [0, 512], sizes = [2, 256], strides = [1, 1]} : vector<2x768xf32> to vector<2x256xf32>
    %160 = vector.extract_strided_slice %142 {offsets = [0, 512], sizes = [2, 256], strides = [1, 1]} : vector<2x768xf32> to vector<2x256xf32>
    %161 = arith.addf %160, %9 : vector<2x256xf32>
    %162 = arith.mulf %150, %161 : vector<2x256xf32>
    %163 = arith.addf %159, %162 : vector<2x256xf32>
    %164 = math.tanh %163 : vector<2x256xf32>
    %cst_50 = arith.constant 1.000000e+00 : f32
    %165 = vector.broadcast %cst_50 : f32 to vector<2x256xf32>
    %166 = arith.subf %165, %158 : vector<2x256xf32>
    %167 = arith.mulf %166, %164 : vector<2x256xf32>
    %168 = arith.mulf %158, %137 : vector<2x256xf32>
    %169 = arith.addf %167, %168 : vector<2x256xf32>
    %c0_51 = arith.constant 0 : index
    %c1024 = arith.constant 1024 : index
    %170 = vector.load %arg6[%c0_51, %c1024] : memref<2x2048xf32, #tpu.memory_space<vmem>>, vector<2x256xf32>
    tpu.vector_store %arg6[%c0_51, %c1024], %169 {strides = array<i32>} : memref<2x2048xf32, #tpu.memory_space<vmem>>, vector<2x256xf32>,
    %c10 = arith.constant 10 : index
    %c0_52 = arith.constant 0 : index
    %171 = vector.load %arg7[%c10, %c0_52] : memref<16x768xf32, #tpu.memory_space<vmem>>, vector<2x768xf32>
    %172 = arith.truncf %169 : vector<2x256xf32> to vector<2x256xbf16>
    %c0_53 = arith.constant 0 : index
    %c0_54 = arith.constant 0 : index
    %173 = vector.load %arg4[%c0_53, %c0_54] : memref<256x768xbf16, #tpu.memory_space<vmem>>, vector<256x768xbf16>
    %cst_55 = arith.constant dense<0.000000e+00> : vector<2x768xf32>
    %174 = tpu.matmul %172, %173, %cst_55 {dimension_numbers = #tpu.dot_dimension_numbers<[1], [0], [0], [1], [0, 0, 1, 1], [], []>} : vector<2x256xbf16>, vector<256x768xbf16>, vector<2x768xf32> -> vector<2x768xf32>
    %175 = vector.extract_strided_slice %171 {offsets = [0, 0], sizes = [2, 256], strides = [1, 1]} : vector<2x768xf32> to vector<2x256xf32>
    %176 = vector.extract_strided_slice %174 {offsets = [0, 0], sizes = [2, 256], strides = [1, 1]} : vector<2x768xf32> to vector<2x256xf32>
    %177 = arith.addf %175, %176 : vector<2x256xf32>
    %178 = arith.negf %177 : vector<2x256xf32>
    %179 = math.exp %178 : vector<2x256xf32>
    %cst_56 = arith.constant 1.000000e+00 : f32
    %180 = vector.broadcast %cst_56 : f32 to vector<2x256xf32>
    %181 = arith.addf %180, %179 : vector<2x256xf32>
    %182 = arith.divf %180, %181 : vector<2x256xf32>
    %183 = vector.extract_strided_slice %171 {offsets = [0, 256], sizes = [2, 256], strides = [1, 1]} : vector<2x768xf32> to vector<2x256xf32>
    %184 = vector.extract_strided_slice %174 {offsets = [0, 256], sizes = [2, 256], strides = [1, 1]} : vector<2x768xf32> to vector<2x256xf32>
    %185 = arith.addf %183, %184 : vector<2x256xf32>
    %186 = arith.negf %185 : vector<2x256xf32>
    %187 = math.exp %186 : vector<2x256xf32>
    %cst_57 = arith.constant 1.000000e+00 : f32
    %188 = vector.broadcast %cst_57 : f32 to vector<2x256xf32>
    %189 = arith.addf %188, %187 : vector<2x256xf32>
    %190 = arith.divf %188, %189 : vector<2x256xf32>
    %191 = vector.extract_strided_slice %171 {offsets = [0, 512], sizes = [2, 256], strides = [1, 1]} : vector<2x768xf32> to vector<2x256xf32>
    %192 = vector.extract_strided_slice %174 {offsets = [0, 512], sizes = [2, 256], strides = [1, 1]} : vector<2x768xf32> to vector<2x256xf32>
    %193 = arith.addf %192, %9 : vector<2x256xf32>
    %194 = arith.mulf %182, %193 : vector<2x256xf32>
    %195 = arith.addf %191, %194 : vector<2x256xf32>
    %196 = math.tanh %195 : vector<2x256xf32>
    %cst_58 = arith.constant 1.000000e+00 : f32
    %197 = vector.broadcast %cst_58 : f32 to vector<2x256xf32>
    %198 = arith.subf %197, %190 : vector<2x256xf32>
    %199 = arith.mulf %198, %196 : vector<2x256xf32>
    %200 = arith.mulf %190, %169 : vector<2x256xf32>
    %201 = arith.addf %199, %200 : vector<2x256xf32>
    %c0_59 = arith.constant 0 : index
    %c1280 = arith.constant 1280 : index
    %202 = vector.load %arg6[%c0_59, %c1280] : memref<2x2048xf32, #tpu.memory_space<vmem>>, vector<2x256xf32>
    tpu.vector_store %arg6[%c0_59, %c1280], %201 {strides = array<i32>} : memref<2x2048xf32, #tpu.memory_space<vmem>>, vector<2x256xf32>,
    %c12 = arith.constant 12 : index
    %c0_60 = arith.constant 0 : index
    %203 = vector.load %arg7[%c12, %c0_60] : memref<16x768xf32, #tpu.memory_space<vmem>>, vector<2x768xf32>
    %204 = arith.truncf %201 : vector<2x256xf32> to vector<2x256xbf16>
    %c0_61 = arith.constant 0 : index
    %c0_62 = arith.constant 0 : index
    %205 = vector.load %arg4[%c0_61, %c0_62] : memref<256x768xbf16, #tpu.memory_space<vmem>>, vector<256x768xbf16>
    %cst_63 = arith.constant dense<0.000000e+00> : vector<2x768xf32>
    %206 = tpu.matmul %204, %205, %cst_63 {dimension_numbers = #tpu.dot_dimension_numbers<[1], [0], [0], [1], [0, 0, 1, 1], [], []>} : vector<2x256xbf16>, vector<256x768xbf16>, vector<2x768xf32> -> vector<2x768xf32>
    %207 = vector.extract_strided_slice %203 {offsets = [0, 0], sizes = [2, 256], strides = [1, 1]} : vector<2x768xf32> to vector<2x256xf32>
    %208 = vector.extract_strided_slice %206 {offsets = [0, 0], sizes = [2, 256], strides = [1, 1]} : vector<2x768xf32> to vector<2x256xf32>
    %209 = arith.addf %207, %208 : vector<2x256xf32>
    %210 = arith.negf %209 : vector<2x256xf32>
    %211 = math.exp %210 : vector<2x256xf32>
    %cst_64 = arith.constant 1.000000e+00 : f32
    %212 = vector.broadcast %cst_64 : f32 to vector<2x256xf32>
    %213 = arith.addf %212, %211 : vector<2x256xf32>
    %214 = arith.divf %212, %213 : vector<2x256xf32>
    %215 = vector.extract_strided_slice %203 {offsets = [0, 256], sizes = [2, 256], strides = [1, 1]} : vector<2x768xf32> to vector<2x256xf32>
    %216 = vector.extract_strided_slice %206 {offsets = [0, 256], sizes = [2, 256], strides = [1, 1]} : vector<2x768xf32> to vector<2x256xf32>
    %217 = arith.addf %215, %216 : vector<2x256xf32>
    %218 = arith.negf %217 : vector<2x256xf32>
    %219 = math.exp %218 : vector<2x256xf32>
    %cst_65 = arith.constant 1.000000e+00 : f32
    %220 = vector.broadcast %cst_65 : f32 to vector<2x256xf32>
    %221 = arith.addf %220, %219 : vector<2x256xf32>
    %222 = arith.divf %220, %221 : vector<2x256xf32>
    %223 = vector.extract_strided_slice %203 {offsets = [0, 512], sizes = [2, 256], strides = [1, 1]} : vector<2x768xf32> to vector<2x256xf32>
    %224 = vector.extract_strided_slice %206 {offsets = [0, 512], sizes = [2, 256], strides = [1, 1]} : vector<2x768xf32> to vector<2x256xf32>
    %225 = arith.addf %224, %9 : vector<2x256xf32>
    %226 = arith.mulf %214, %225 : vector<2x256xf32>
    %227 = arith.addf %223, %226 : vector<2x256xf32>
    %228 = math.tanh %227 : vector<2x256xf32>
    %cst_66 = arith.constant 1.000000e+00 : f32
    %229 = vector.broadcast %cst_66 : f32 to vector<2x256xf32>
    %230 = arith.subf %229, %222 : vector<2x256xf32>
    %231 = arith.mulf %230, %228 : vector<2x256xf32>
    %232 = arith.mulf %222, %201 : vector<2x256xf32>
    %233 = arith.addf %231, %232 : vector<2x256xf32>
    %c0_67 = arith.constant 0 : index
    %c1536 = arith.constant 1536 : index
    %234 = vector.load %arg6[%c0_67, %c1536] : memref<2x2048xf32, #tpu.memory_space<vmem>>, vector<2x256xf32>
    tpu.vector_store %arg6[%c0_67, %c1536], %233 {strides = array<i32>} : memref<2x2048xf32, #tpu.memory_space<vmem>>, vector<2x256xf32>,
    %c14 = arith.constant 14 : index
    %c0_68 = arith.constant 0 : index
    %235 = vector.load %arg7[%c14, %c0_68] : memref<16x768xf32, #tpu.memory_space<vmem>>, vector<2x768xf32>
    %236 = arith.truncf %233 : vector<2x256xf32> to vector<2x256xbf16>
    %c0_69 = arith.constant 0 : index
    %c0_70 = arith.constant 0 : index
    %237 = vector.load %arg4[%c0_69, %c0_70] : memref<256x768xbf16, #tpu.memory_space<vmem>>, vector<256x768xbf16>
    %cst_71 = arith.constant dense<0.000000e+00> : vector<2x768xf32>
    %238 = tpu.matmul %236, %237, %cst_71 {dimension_numbers = #tpu.dot_dimension_numbers<[1], [0], [0], [1], [0, 0, 1, 1], [], []>} : vector<2x256xbf16>, vector<256x768xbf16>, vector<2x768xf32> -> vector<2x768xf32>
    %239 = vector.extract_strided_slice %235 {offsets = [0, 0], sizes = [2, 256], strides = [1, 1]} : vector<2x768xf32> to vector<2x256xf32>
    %240 = vector.extract_strided_slice %238 {offsets = [0, 0], sizes = [2, 256], strides = [1, 1]} : vector<2x768xf32> to vector<2x256xf32>
    %241 = arith.addf %239, %240 : vector<2x256xf32>
    %242 = arith.negf %241 : vector<2x256xf32>
    %243 = math.exp %242 : vector<2x256xf32>
    %cst_72 = arith.constant 1.000000e+00 : f32
    %244 = vector.broadcast %cst_72 : f32 to vector<2x256xf32>
    %245 = arith.addf %244, %243 : vector<2x256xf32>
    %246 = arith.divf %244, %245 : vector<2x256xf32>
    %247 = vector.extract_strided_slice %235 {offsets = [0, 256], sizes = [2, 256], strides = [1, 1]} : vector<2x768xf32> to vector<2x256xf32>
    %248 = vector.extract_strided_slice %238 {offsets = [0, 256], sizes = [2, 256], strides = [1, 1]} : vector<2x768xf32> to vector<2x256xf32>
    %249 = arith.addf %247, %248 : vector<2x256xf32>
    %250 = arith.negf %249 : vector<2x256xf32>
    %251 = math.exp %250 : vector<2x256xf32>
    %cst_73 = arith.constant 1.000000e+00 : f32
    %252 = vector.broadcast %cst_73 : f32 to vector<2x256xf32>
    %253 = arith.addf %252, %251 : vector<2x256xf32>
    %254 = arith.divf %252, %253 : vector<2x256xf32>
    %255 = vector.extract_strided_slice %235 {offsets = [0, 512], sizes = [2, 256], strides = [1, 1]} : vector<2x768xf32> to vector<2x256xf32>
    %256 = vector.extract_strided_slice %238 {offsets = [0, 512], sizes = [2, 256], strides = [1, 1]} : vector<2x768xf32> to vector<2x256xf32>
    %257 = arith.addf %256, %9 : vector<2x256xf32>
    %258 = arith.mulf %246, %257 : vector<2x256xf32>
    %259 = arith.addf %255, %258 : vector<2x256xf32>
    %260 = math.tanh %259 : vector<2x256xf32>
    %cst_74 = arith.constant 1.000000e+00 : f32
    %261 = vector.broadcast %cst_74 : f32 to vector<2x256xf32>
    %262 = arith.subf %261, %254 : vector<2x256xf32>
    %263 = arith.mulf %262, %260 : vector<2x256xf32>
    %264 = arith.mulf %254, %233 : vector<2x256xf32>
    %265 = arith.addf %263, %264 : vector<2x256xf32>
    %c0_75 = arith.constant 0 : index
    %c1792 = arith.constant 1792 : index
    %266 = vector.load %arg6[%c0_75, %c1792] : memref<2x2048xf32, #tpu.memory_space<vmem>>, vector<2x256xf32>
    tpu.vector_store %arg6[%c0_75, %c1792], %265 {strides = array<i32>} : memref<2x2048xf32, #tpu.memory_space<vmem>>, vector<2x256xf32>,
    return
  }
  func.func @transform_0(%arg0: i32) -> (i32, i32) {
    %c0_i32 = arith.constant 0 : i32
    %c0_i32_0 = arith.constant 0 : i32
    %c0_i32_1 = arith.constant 0 : i32
    return %c0_i32, %c0_i32_0 : i32, i32
  }
  func.func @transform_1(%arg0: i32) -> (i32, i32) {
    %c0_i32 = arith.constant 0 : i32
    %c0_i32_0 = arith.constant 0 : i32
    %c0_i32_1 = arith.constant 0 : i32
    return %c0_i32, %c0_i32_0 : i32, i32
  }
  func.func @transform_2(%arg0: i32) -> (i32, i32) {
    %c0_i32 = arith.constant 0 : i32
    %c0_i32_0 = arith.constant 0 : i32
    %c0_i32_1 = arith.constant 0 : i32
    return %c0_i32, %c0_i32_0 : i32, i32
  }
  func.func @transform_3(%arg0: i32) -> (i32, i32) {
    %c0_i32 = arith.constant 0 : i32
    %c0_i32_0 = arith.constant 0 : i32
    %c0_i32_1 = arith.constant 0 : i32
    return %c0_i32, %c0_i32_0 : i32, i32
  }
  func.func @transform_4(%arg0: i32) -> (i32, i32) {
    %c0_i32 = arith.constant 0 : i32
    %c0_i32_0 = arith.constant 0 : i32
    %c0_i32_1 = arith.constant 0 : i32
    return %c0_i32, %c0_i32_0 : i32, i32
  }
  func.func @transform_5(%arg0: i32) -> (i32, i32) {
    %c0_i32 = arith.constant 0 : i32
    %c0_i32_0 = arith.constant 0 : i32
    %c0_i32_1 = arith.constant 0 : i32
    return %c0_i32, %c0_i32_0 : i32, i32
  }
}

</mosaic_0001>

<bundles_post_ra>
// kernel: att_encode.1
= control target key start
LH: loop header
LB: loop body
LE: loop exit
PB: predicated region body
PF: predicated region fallthrough
CT: control target
= control target key end

     0   :  { %10 = vsyncpa [#allocation4], 0  ;;  %s8191_s18 = smov [#allocation3]   ;;  %s9969_s0 = inlined_call_operand.vmem [shape: bf16[16,32], index: 0, kind: input, shape index: {}]   ;;  %s9970_s1 = inlined_call_operand.vmem [shape: bf16[32,768], index: 1, kind: input, shape index: {}]   ;;  %s9971_s2 = inlined_call_operand.vmem [shape: f32[1,768], index: 2, kind: input, shape index: {}]   ;;  %s9972_s3 = inlined_call_operand.hbm [shape: bf16[256,768], index: 3, kind: input, shape index: {}]   ;;  %s9973_s4 = inlined_call_operand.vmem [shape: f32[1,256], index: 4, kind: input, shape index: {}]   ;;  %s9974_s5 = inlined_call_operand.vmem [shape: f32[2,2048], index: 5, kind: output, shape index: {}]  }
   0x1   :  { %s22_s19 = sshll.u32 %s8191_s18, 4  ;;  %s8167_s22 = scalar_lea.hbm %s9972_s3, 12288  ;;  %s23_s19 = int_to_ptr.vmem [resolvable:$true] %s22_s19 }
   0x2   :  { %p8168_p0 = scmp.ne.s32.totalorder %s9972_s3, %s8167_s22  ;;  %p8171_p1 = scmp.lt.u32.totalorder %s8167_s22, %s9972_s3 }
   0x4   :  { %p8173_p2 = pnand %p8171_p1, %p8168_p0 }
   0x6   :  { %8176 = shalt.err (!%p8173_p2)
}
   0x7   :  { %s8177_s27 = scalar_lea.vmem %s23_s19, 12288  ;;  %p8182_p4 = scmp.lt.s32.totalorder %s23_s19, %s23_s19 }
   0x8   :  { %p8178_p3 = scmp.ne.s32.totalorder %s23_s19, %s8177_s27  ;;  %p8183_p5 = scmp.lt.s32.totalorder %s8177_s27, %s8177_s27 }
   0xa   :  { %p8184_p6 = por %p8183_p5, %p8182_p4 }
   0xc   :  { %p8185_p7 = pnand %p8184_p6, %p8178_p3 }
   0xe   :  { %8188 = shalt.err (!%p8185_p7)
}
   0xf   :  { %s8192_s28 = smov 384   ;;  %s8193_s29 = smov 24  }
  0x10   :  { %28 = dma.hbm_to_vmem [thread:$0]  %s9972_s3, 12288, %s23_s19, [#allocation4], %s8192_s28, %s8192_s28, %s8193_s29  }
  0x11   :  { %8189 = dma.done.wait [#allocation4], 12288  }
  0x12   :  { %8190 = vsyncadd [#allocation4], 4294955008  ;;  %v9975_v0 = vmov 0   ;;  %v7405_v1 = vld [vmem:[%s9970_s1 + $0x4] ss:$24 sps:$4 sm:$0xff]   ;;  %vm146_vm0 = vcmask 261120  }
  0x13   :  { %225 = vmatprep.mubr.bf16.mxu1 %v9975_v0  ;;  %182 = vmatprep.mubr.bf16.mxu0 %v9975_v0  ;;  %v7407_v2 = vld [vmem:[%s9970_s1 + $0xc] ss:$24 sps:$4 sm:$0xff]   ;;  %v7409_v3 = vld [vmem:[%s9970_s1] ss:$24 sps:$4 sm:$0xff]   ;;  %v7413_v6 = vld [vmem:[%s9970_s1 + $0x3c] ss:$24 sps:$4 sm:$0xff]  }
  0x14   :  { %150 = vmatprep.subr.bf16.mxu0 %v7405_v1  ;;  %v7410_v4 = vld [vmem:[%s9970_s1 + $0x8] ss:$24 sps:$4 sm:$0xff]   ;;  %193 = vmatprep.subr.bf16.mxu1 %v7407_v2  ;;  %v7411_v5 = vld [vmem:[%s9970_s1 + $0x34] ss:$24 sps:$4 sm:$0xff]   ;;  %v7416_v8 = vld [vmem:[%s9970_s1 + $0x38] ss:$24 sps:$4 sm:$0xff]  }
  0x15   :  { %151 = vmatpush1.bf16.msra.mxu0 %v7409_v3  ;;  %194 = vmatpush1.bf16.msra.mxu1 %v7410_v4  ;;  %v7415_v7 = vld [vmem:[%s9970_s1 + $0x30] ss:$24 sps:$4 sm:$0xff]   ;;  %v7417_v9 = vld [vmem:[%s9969_s0] sm:$0xff]   ;;  %v7420_v11 = vld [vmem:[%s9970_s1 + $0x14] ss:$24 sps:$4 sm:$0xff]  }
  0x16   :  { %152 = vmatprep.subr.bf16.mxu0 %v7411_v5  ;;  %195 = vmatprep.subr.bf16.mxu1 %v7413_v6  ;;  %v7418_v10 = vld [vmem:[%s9970_s1 + $0x10] ss:$24 sps:$4 sm:$0xff]   ;;  %v8273_v12 = vld [vmem:[#allocation3] ss:$24 sps:$4 sm:$0xff]   ;;  %v8275_v13 = vld [vmem:[#allocation3 + $0x4] ss:$24 sps:$4 sm:$0xff]  }
  0x17   :  { %v7426_v14 = vld [vmem:[%s9970_s1 + $0x44] ss:$24 sps:$4 sm:$0xff]   ;;  %v8283_v15 = vld [vmem:[#allocation3 + $0x34] ss:$24 sps:$4 sm:$0xff]   ;;  %v7424_v16 = vld [vmem:[%s9970_s1 + $0x40] ss:$24 sps:$4 sm:$0xff]  }
  0x18   :  { %v8289_v17 = vld [vmem:[#allocation3 + $0x30] ss:$24 sps:$4 sm:$0xff]   ;;  %v8292_v18 = vld [vmem:[#allocation3 + $0x64] ss:$24 sps:$4 sm:$0xff]   ;;  %v8298_v20 = vld [vmem:[#allocation3 + $0x60] ss:$24 sps:$4 sm:$0xff]  }
  0x19   :  { %153 = vmatpush1.bf16.msra.mxu0 %v7415_v7  ;;  %196 = vmatpush1.bf16.msra.mxu1 %v7416_v8  ;;  %v8295_v19 = vld [vmem:[#allocation3 + $0xc] ss:$24 sps:$4 sm:$0xff]   ;;  %v8301_v21 = vld [vmem:[#allocation3 + $0x8] ss:$24 sps:$4 sm:$0xff]   ;;  %v8307_v23 = vld [vmem:[#allocation3 + $0x3c] ss:$24 sps:$4 sm:$0xff]  }
  0x1a   :  { %236 = vmatprep.subr.bf16.mxu0 %v7420_v11  ;;  %885 = vmatprep.subr.bf16.mxu1 %v8275_v13  ;;  %v8303_v22 = vld [vmem:[#allocation3 + $0x94] ss:$24 sps:$4 sm:$0xff]   ;;  %v8310_v24 = vld [vmem:[#allocation3 + $0x90] ss:$24 sps:$4 sm:$0xff]   ;;  %v8316_v26 = vld [vmem:[#allocation3 + $0xc4] ss:$24 sps:$4 sm:$0xff]  }
  0x1b   :  { %v8314_v25 = vld [vmem:[#allocation3 + $0x38] ss:$24 sps:$4 sm:$0xff]   ;;  %v8320_v27 = vld [vmem:[#allocation3 + $0x6c] ss:$24 sps:$4 sm:$0xff]   ;;  %v8327_v29 = vld [vmem:[#allocation3 + $0x68] ss:$24 sps:$4 sm:$0xff]  }
  0x1c   :  { %6594 = vmatmul.mubr.msk.bf16.vlgmr.msra.gmra.mrb[0].mxu1 %vm146_vm0, %v7417_v9  ;;  %6593 = vmatmul.mubr.msk.bf16.vlgmr.msra.gmra.mrb[0].mxu0 %vm146_vm0, %v7417_v9  ;;  %v8323_v28 = vld [vmem:[#allocation3 + $0xc0] ss:$24 sps:$4 sm:$0xff]   ;;  %v8329_v30 = vld [vmem:[#allocation3 + $0xf4] ss:$24 sps:$4 sm:$0xff]   ;;  %v8335_v32 = vld [vmem:[#allocation3 + $0xf0] ss:$24 sps:$4 sm:$0xff]  }
  0x1d   :  { %237 = vmatpush1.bf16.msra.mxu0 %v7418_v10  ;;  %886 = vmatpush1.bf16.msra.mxu1 %v8273_v12  ;;  %v8333_v31 = vld [vmem:[#allocation3 + $0x9c] ss:$24 sps:$4 sm:$0xff]   ;;  %v8339_v33 = vld [vmem:[#allocation3 + $0x98] ss:$24 sps:$4 sm:$0xff]   ;;  %v8345_v35 = vld [vmem:[#allocation3 + $0xcc] ss:$24 sps:$4 sm:$0xff]  }
  0x1e   :  { %238 = vmatprep.subr.bf16.mxu0 %v7426_v14  ;;  %887 = vmatprep.subr.bf16.mxu1 %v8283_v15  ;;  %v8341_v34 = vld [vmem:[#allocation3 + $0x124] ss:$24 sps:$4 sm:$0xff]   ;;  %v8347_v36 = vld [vmem:[#allocation3 + $0x120] ss:$24 sps:$4 sm:$0xff]   ;;  %v8353_v38 = vld [vmem:[#allocation3 + $0x154] ss:$24 sps:$4 sm:$0xff]  }
  0x1f   :  { %268 = vmatprep.mubr.bf16.mxu0 %v9975_v0  ;;  %917 = vmatprep.mubr.bf16.mxu1 %v9975_v0  ;;  %v8351_v37 = vld [vmem:[#allocation3 + $0xc8] ss:$24 sps:$4 sm:$0xff]   ;;  %v8357_v39 = vld [vmem:[#allocation3 + $0xfc] ss:$24 sps:$4 sm:$0xff]   ;;  %v8363_v41 = vld [vmem:[#allocation3 + $0xf8] ss:$24 sps:$4 sm:$0xff]  }
  0x20   :  { %v8359_v40 = vld [vmem:[#allocation3 + $0x150] ss:$24 sps:$4 sm:$0xff]   ;;  %v8365_v42 = vld [vmem:[#allocation3 + $0x184] ss:$24 sps:$4 sm:$0xff]   ;;  %v8371_v44 = vld [vmem:[#allocation3 + $0x180] ss:$24 sps:$4 sm:$0xff]  }
  0x21   :  { %239 = vmatpush1.bf16.msra.mxu0 %v7424_v16  ;;  %888 = vmatpush1.bf16.msra.mxu1 %v8289_v17  ;;  %v8369_v43 = vld [vmem:[#allocation3 + $0x12c] ss:$24 sps:$4 sm:$0xff]   ;;  %v8375_v45 = vld [vmem:[#allocation3 + $0x128] ss:$24 sps:$4 sm:$0xff]   ;;  %v8381_v47 = vld [vmem:[#allocation3 + $0x15c] ss:$24 sps:$4 sm:$0xff]  }
  0x22   :  { %889 = vmatprep.subr.bf16.mxu1 %v8292_v18  ;;  %926 = vmatprep.subr.bf16.mxu0 %v8295_v19  ;;  %v8377_v46 = vld [vmem:[#allocation3 + $0x1b4] ss:$24 sps:$4 sm:$0xff]   ;;  %v8383_v48 = vld [vmem:[#allocation3 + $0x1b0] ss:$24 sps:$4 sm:$0xff]   ;;  %v8389_v50 = vld [vmem:[#allocation3 + $0x1e4] ss:$24 sps:$4 sm:$0xff]  }
  0x23   :  { %v8387_v49 = vld [vmem:[#allocation3 + $0x158] ss:$24 sps:$4 sm:$0xff]   ;;  %v8393_v51 = vld [vmem:[#allocation3 + $0x18c] ss:$24 sps:$4 sm:$0xff]   ;;  %v8399_v53 = vld [vmem:[#allocation3 + $0x188] ss:$24 sps:$4 sm:$0xff]  }
  0x24   :  { %6595 = vmatmul.mubr.msk.bf16.vlgmr.msra.gmra.mrb[4].mxu0 %vm146_vm0, %v7417_v9  ;;  %v8395_v52 = vld [vmem:[#allocation3 + $0x1e0] ss:$24 sps:$4 sm:$0xff]   ;;  %v8401_v54 = vld [vmem:[#allocation3 + $0x214] ss:$24 sps:$4 sm:$0xff]   ;;  %v8407_v56 = vld [vmem:[#allocation3 + $0x210] ss:$24 sps:$4 sm:$0xff]  }
  0x25   :  { %890 = vmatpush1.bf16.msra.mxu1 %v8298_v20  ;;  %927 = vmatpush1.bf16.msra.mxu0 %v8301_v21  ;;  %v8405_v55 = vld [vmem:[#allocation3 + $0x1bc] ss:$24 sps:$4 sm:$0xff]   ;;  %v8411_v57 = vld [vmem:[#allocation3 + $0x1b8] ss:$24 sps:$4 sm:$0xff]   ;;  %v8417_v59 = vld [vmem:[#allocation3 + $0x1ec] ss:$24 sps:$4 sm:$0xff]  }
  0x26   :  { %891 = vmatprep.subr.bf16.mxu1 %v8303_v22  ;;  %928 = vmatprep.subr.bf16.mxu0 %v8307_v23  ;;  %10071 = vst [vmem:[#allocation6_spill] sm:$0xff] %v8411_v57  ;;  %v8413_v58 = vld [vmem:[#allocation3 + $0x244] ss:$24 sps:$4 sm:$0xff]   ;;  %10072 = vst [vmem:[#allocation7_spill] sm:$0xff] %v8417_v59  ;;  %v8419_v60 = vld [vmem:[#allocation3 + $0x240] ss:$24 sps:$4 sm:$0xff]  }
  0x27   :  { %958 = vmatprep.mubr.bf16.mxu0 %v9975_v0  ;;  %v8423_v61 = vld [vmem:[#allocation3 + $0x1e8] ss:$24 sps:$4 sm:$0xff]   ;;  %v8425_v62 = vld [vmem:[#allocation3 + $0x274] ss:$24 sps:$4 sm:$0xff]   ;;  %v8435_v2 = vld [vmem:[#allocation3 + $0x218] ss:$24 sps:$4 sm:$0xff]  }
  0x28   :  { %10073 = vst [vmem:[#allocation8_spill] sm:$0xff] %v8423_v61  ;;  %v8429_v63 = vld [vmem:[#allocation3 + $0x21c] ss:$24 sps:$4 sm:$0xff]   ;;  %v8431_v1 = vld [vmem:[#allocation3 + $0x270] ss:$24 sps:$4 sm:$0xff]   ;;  %10075 = vst [vmem:[#allocation10_spill] sm:$0xff] %v8435_v2 }
  0x29   :  { %892 = vmatpush1.bf16.msra.mxu1 %v8310_v24  ;;  %929 = vmatpush1.bf16.msra.mxu0 %v8314_v25  ;;  %10074 = vst [vmem:[#allocation9_spill] sm:$0xff] %v8429_v63  ;;  %v8437_v3 = vld [vmem:[#allocation3 + $0x2a4] ss:$24 sps:$4 sm:$0xff]   ;;  %v8443_v5 = vld [vmem:[#allocation3 + $0x2a0] ss:$24 sps:$4 sm:$0xff]  }
  0x2a   :  { %893 = vmatprep.subr.bf16.mxu1 %v8316_v26  ;;  %930 = vmatprep.subr.bf16.mxu0 %v8320_v27  ;;  %v8441_v4 = vld [vmem:[#allocation3 + $0x24c] ss:$24 sps:$4 sm:$0xff]   ;;  %v8447_v6 = vld [vmem:[#allocation3 + $0x248] ss:$24 sps:$4 sm:$0xff]   ;;  %v8453_v8 = vld [vmem:[#allocation3 + $0x27c] ss:$24 sps:$4 sm:$0xff]  }
  0x2b   :  { %10076 = vst [vmem:[#allocation11_spill] sm:$0xff] %v8441_v4  ;;  %10077 = vst [vmem:[#allocation12_spill] sm:$0xff] %v8447_v6  ;;  %v8449_v7 = vld [vmem:[#allocation3 + $0x2d4] ss:$24 sps:$4 sm:$0xff]   ;;  %v8455_v9 = vld [vmem:[#allocation3 + $0x2d0] ss:$24 sps:$4 sm:$0xff]  }
  0x2c   :  { %10078 = vst [vmem:[#allocation13_spill] sm:$0xff] %v8453_v8  ;;  %v8459_v10 = vld [vmem:[#allocation3 + $0x278] ss:$24 sps:$4 sm:$0xff]   ;;  %v8461_v11 = vld [vmem:[#allocation3 + $0x2ac] ss:$24 sps:$4 sm:$0xff]  }
  0x2d   :  { %894 = vmatpush1.bf16.msra.mxu1 %v8323_v28  ;;  %931 = vmatpush1.bf16.msra.mxu0 %v8327_v29  ;;  %10079 = vst [vmem:[#allocation14_spill] sm:$0xff] %v8459_v10  ;;  %10080 = vst [vmem:[#allocation15_spill] sm:$0xff] %v8461_v11  ;;  %v8465_v14 = vld [vmem:[#allocation3 + $0x14] ss:$24 sps:$4 sm:$0xff]   ;;  %v8467_v16 = vld [vmem:[#allocation3 + $0x2a8] ss:$24 sps:$4 sm:$0xff]  }
  0x2e   :  { %895 = vmatprep.subr.bf16.mxu1 %v8329_v30  ;;  %932 = vmatprep.subr.bf16.mxu0 %v8333_v31  ;;  %v7517_v0 = vld [vmem:[#allocation3 + $0x10] ss:$24 sps:$4 sm:$0xff]  }
  0x31   :  { %896 = vmatpush1.bf16.msra.mxu1 %v8335_v32  ;;  %933 = vmatpush1.bf16.msra.mxu0 %v8339_v33 }
  0x32   :  { %897 = vmatprep.subr.bf16.mxu1 %v8341_v34  ;;  %934 = vmatprep.subr.bf16.mxu0 %v8345_v35 }
  0x35   :  { %898 = vmatpush1.bf16.msra.mxu1 %v8347_v36  ;;  %935 = vmatpush1.bf16.msra.mxu0 %v8351_v37 }
  0x36   :  { %899 = vmatprep.subr.bf16.mxu1 %v8353_v38  ;;  %936 = vmatprep.subr.bf16.mxu0 %v8357_v39 }
  0x39   :  { %900 = vmatpush1.bf16.msra.mxu1 %v8359_v40  ;;  %937 = vmatpush1.bf16.msra.mxu0 %v8363_v41 }
  0x3a   :  { %901 = vmatprep.subr.bf16.mxu1 %v8365_v42  ;;  %938 = vmatprep.subr.bf16.mxu0 %v8369_v43 }
  0x3d   :  { %902 = vmatpush1.bf16.msra.mxu1 %v8371_v44  ;;  %939 = vmatpush1.bf16.msra.mxu0 %v8375_v45 }
  0x3e   :  { %903 = vmatprep.subr.bf16.mxu1 %v8377_v46  ;;  %940 = vmatprep.subr.bf16.mxu0 %v8381_v47 }
  0x41   :  { %904 = vmatpush1.bf16.msra.mxu1 %v8383_v48  ;;  %941 = vmatpush1.bf16.msra.mxu0 %v8387_v49 }
  0x42   :  { %905 = vmatprep.subr.bf16.mxu1 %v8389_v50  ;;  %942 = vmatprep.subr.bf16.mxu0 %v8393_v51 }
  0x45   :  { %906 = vmatpush1.bf16.msra.mxu1 %v8395_v52  ;;  %943 = vmatpush1.bf16.msra.mxu0 %v8399_v53 }
  0x46   :  { %907 = vmatprep.subr.bf16.mxu1 %v8401_v54  ;;  %944 = vmatprep.subr.bf16.mxu0 %v8405_v55 }
  0x49   :  { %908 = vmatpush1.bf16.msra.mxu1 %v8407_v56  ;;  %945 = vmatpush1.bf16.msra.mxu0 %v8411_v57  ;;  %v8484_v57 = vld [vmem:[#allocation3 + $0xd4] ss:$24 sps:$4 sm:$0xff]  }
  0x4a   :  { %909 = vmatprep.subr.bf16.mxu1 %v8413_v58  ;;  %946 = vmatprep.subr.bf16.mxu0 %v8417_v59  ;;  %v7531_v59 = vld [vmem:[#allocation3 + $0xa4] ss:$24 sps:$4 sm:$0xff]  }
  0x4d   :  { %910 = vmatpush1.bf16.msra.mxu1 %v8419_v60  ;;  %947 = vmatpush1.bf16.msra.mxu0 %v8423_v61  ;;  %v7528_v61 = vld [vmem:[#allocation3 + $0x74] ss:$24 sps:$4 sm:$0xff]  }
  0x4e   :  { %911 = vmatprep.subr.bf16.mxu1 %v8425_v62  ;;  %948 = vmatprep.subr.bf16.mxu0 %v8429_v63  ;;  %v7523_v63 = vld [vmem:[#allocation3 + $0x40] ss:$24 sps:$4 sm:$0xff]  }
  0x51   :  { %912 = vmatpush1.bf16.msra.mxu1 %v8431_v1  ;;  %949 = vmatpush1.bf16.msra.mxu0 %v8435_v2  ;;  %v8475_v2 = vld [vmem:[#allocation3 + $0x2d8] ss:$24 sps:$4 sm:$0xff]  }
  0x52   :  { %913 = vmatprep.subr.bf16.mxu1 %v8437_v3  ;;  %950 = vmatprep.subr.bf16.mxu0 %v8441_v4  ;;  %v8471_v4 = vld [vmem:[#allocation3 + $0x2dc] ss:$24 sps:$4 sm:$0xff]  }
  0x55   :  { %914 = vmatpush1.bf16.msra.mxu1 %v8443_v5  ;;  %951 = vmatpush1.bf16.msra.mxu0 %v8447_v6  ;;  %v7525_v6 = vld [vmem:[#allocation3 + $0x44] ss:$24 sps:$4 sm:$0xff]  }
  0x56   :  { %915 = vmatprep.subr.bf16.mxu1 %v8449_v7  ;;  %952 = vmatprep.subr.bf16.mxu0 %v8453_v8  ;;  %v10081_v8 = vmov 0  }
  0x59   :  { %916 = vmatpush1.bf16.msra.mxu1 %v8455_v9  ;;  %953 = vmatpush1.bf16.msra.mxu0 %v8459_v10  ;;  %v7526_v10 = vld [vmem:[#allocation3 + $0x70] ss:$24 sps:$4 sm:$0xff]  }
  0x5a   :  { %954 = vmatprep.subr.bf16.mxu0 %v8461_v11  ;;  %967 = vmatprep.subr.bf16.mxu1 %v8465_v14  ;;  %v7529_v11 = vld [vmem:[#allocation3 + $0xa0] ss:$24 sps:$4 sm:$0xff]  }
  0x5c   :  { %918 = vmatmul.mubr.bf16.vlgmr.msra.gmra.mrb[4].mxu1 %v10081_v8 }
  0x5d   :  { %955 = vmatpush1.bf16.msra.mxu0 %v8467_v16  ;;  %968 = vmatpush1.bf16.msra.mxu1 %v7517_v0  ;;  %v8488_v0 = vld [vmem:[#allocation3 + $0xd0] ss:$24 sps:$4 sm:$0xff]  }
  0x5e   :  { %956 = vmatprep.subr.bf16.mxu0 %v8471_v4  ;;  %969 = vmatprep.subr.bf16.mxu1 %v7525_v6  ;;  %v8490_v6 = vld [vmem:[#allocation3 + $0x104] ss:$24 sps:$4 sm:$0xff]  }
  0x5f   :  { %999 = vmatprep.mubr.bf16.mxu1 %v10081_v8 }
  0x61   :  { %957 = vmatpush1.bf16.msra.mxu0 %v8475_v2  ;;  %970 = vmatpush1.bf16.msra.mxu1 %v7523_v63 }
  0x62   :  { %971 = vmatprep.subr.bf16.mxu1 %v7528_v61  ;;  %1648 = vmatprep.subr.bf16.mxu0 %v8275_v13  ;;  %v8495_v13 = vld [vmem:[#allocation3 + $0x100] ss:$24 sps:$4 sm:$0xff]   ;;  %v8497_v61 = vld [vmem:[#allocation3 + $0x134] ss:$24 sps:$4 sm:$0xff]  }
  0x64   :  { %959 = vmatmul.mubr.bf16.vlgmr.msra.gmra.mrb[8].mxu0 %v10081_v8 }
  0x65   :  { %972 = vmatpush1.bf16.msra.mxu1 %v7526_v10  ;;  %1649 = vmatpush1.bf16.msra.mxu0 %v8273_v12  ;;  %v8503_v12 = vld [vmem:[#allocation3 + $0x130] ss:$24 sps:$4 sm:$0xff]  }
  0x66   :  { %973 = vmatprep.subr.bf16.mxu1 %v7531_v59  ;;  %1650 = vmatprep.subr.bf16.mxu0 %v8283_v15  ;;  %v8505_v15 = vld [vmem:[#allocation3 + $0x164] ss:$24 sps:$4 sm:$0xff]  }
  0x69   :  { %974 = vmatpush1.bf16.msra.mxu1 %v7529_v11  ;;  %1651 = vmatpush1.bf16.msra.mxu0 %v8289_v17  ;;  %v8512_v17 = vld [vmem:[#allocation3 + $0x160] ss:$24 sps:$4 sm:$0xff]  }
  0x6a   :  { %975 = vmatprep.subr.bf16.mxu1 %v8484_v57  ;;  %1652 = vmatprep.subr.bf16.mxu0 %v8292_v18  ;;  %v8514_v18 = vld [vmem:[#allocation3 + $0x194] ss:$24 sps:$4 sm:$0xff]  }
  0x6d   :  { %976 = vmatpush1.bf16.msra.mxu1 %v8488_v0  ;;  %1653 = vmatpush1.bf16.msra.mxu0 %v8298_v20  ;;  %v8519_v20 = vld [vmem:[#allocation3 + $0x190] ss:$24 sps:$4 sm:$0xff]  }
  0x6e   :  { %977 = vmatprep.subr.bf16.mxu1 %v8490_v6  ;;  %1654 = vmatprep.subr.bf16.mxu0 %v8303_v22  ;;  %v8521_v22 = vld [vmem:[#allocation3 + $0x1c4] ss:$24 sps:$4 sm:$0xff]  }
  0x71   :  { %978 = vmatpush1.bf16.msra.mxu1 %v8495_v13  ;;  %1655 = vmatpush1.bf16.msra.mxu0 %v8310_v24  ;;  %v8527_v24 = vld [vmem:[#allocation3 + $0x1c0] ss:$24 sps:$4 sm:$0xff]  }
  0x72   :  { %979 = vmatprep.subr.bf16.mxu1 %v8497_v61  ;;  %1656 = vmatprep.subr.bf16.mxu0 %v8316_v26  ;;  %v8529_v26 = vld [vmem:[#allocation3 + $0x1f4] ss:$24 sps:$4 sm:$0xff]  }
  0x75   :  { %980 = vmatpush1.bf16.msra.mxu1 %v8503_v12  ;;  %1657 = vmatpush1.bf16.msra.mxu0 %v8323_v28  ;;  %v8535_v28 = vld [vmem:[#allocation3 + $0x1f0] ss:$24 sps:$4 sm:$0xff]  }
  0x76   :  { %981 = vmatprep.subr.bf16.mxu1 %v8505_v15  ;;  %1658 = vmatprep.subr.bf16.mxu0 %v8329_v30  ;;  %v8537_v30 = vld [vmem:[#allocation3 + $0x224] ss:$24 sps:$4 sm:$0xff]  }
  0x79   :  { %982 = vmatpush1.bf16.msra.mxu1 %v8512_v17  ;;  %1659 = vmatpush1.bf16.msra.mxu0 %v8335_v32  ;;  %v8543_v32 = vld [vmem:[#allocation3 + $0x220] ss:$24 sps:$4 sm:$0xff]  }
  0x7a   :  { %983 = vmatprep.subr.bf16.mxu1 %v8514_v18  ;;  %1660 = vmatprep.subr.bf16.mxu0 %v8341_v34  ;;  %v8545_v34 = vld [vmem:[#allocation3 + $0x254] ss:$24 sps:$4 sm:$0xff]  }
  0x7d   :  { %984 = vmatpush1.bf16.msra.mxu1 %v8519_v20  ;;  %1661 = vmatpush1.bf16.msra.mxu0 %v8347_v36  ;;  %v8551_v36 = vld [vmem:[#allocation3 + $0x250] ss:$24 sps:$4 sm:$0xff]  }
  0x7e   :  { %985 = vmatprep.subr.bf16.mxu1 %v8521_v22  ;;  %1662 = vmatprep.subr.bf16.mxu0 %v8353_v38  ;;  %v8553_v38 = vld [vmem:[#allocation3 + $0x284] ss:$24 sps:$4 sm:$0xff]  }
  0x81   :  { %986 = vmatpush1.bf16.msra.mxu1 %v8527_v24  ;;  %1663 = vmatpush1.bf16.msra.mxu0 %v8359_v40  ;;  %v8559_v40 = vld [vmem:[#allocation3 + $0x280] ss:$24 sps:$4 sm:$0xff]  }
  0x82   :  { %987 = vmatprep.subr.bf16.mxu1 %v8529_v26  ;;  %1664 = vmatprep.subr.bf16.mxu0 %v8365_v42  ;;  %v8561_v42 = vld [vmem:[#allocation3 + $0x2b4] ss:$24 sps:$4 sm:$0xff]  }
  0x85   :  { %988 = vmatpush1.bf16.msra.mxu1 %v8535_v28  ;;  %1665 = vmatpush1.bf16.msra.mxu0 %v8371_v44  ;;  %v8567_v44 = vld [vmem:[#allocation3 + $0x2b0] ss:$24 sps:$4 sm:$0xff]  }
  0x86   :  { %989 = vmatprep.subr.bf16.mxu1 %v8537_v30  ;;  %1666 = vmatprep.subr.bf16.mxu0 %v8377_v46  ;;  %v8569_v46 = vld [vmem:[#allocation3 + $0x2e4] ss:$24 sps:$4 sm:$0xff]  }
  0x89   :  { %990 = vmatpush1.bf16.msra.mxu1 %v8543_v32  ;;  %1667 = vmatpush1.bf16.msra.mxu0 %v8383_v48  ;;  %v8575_v48 = vld [vmem:[#allocation3 + $0x2e0] ss:$24 sps:$4 sm:$0xff]  }
  0x8a   :  { %991 = vmatprep.subr.bf16.mxu1 %v8545_v34  ;;  %1668 = vmatprep.subr.bf16.mxu0 %v8389_v50 }
  0x8d   :  { %992 = vmatpush1.bf16.msra.mxu1 %v8551_v36  ;;  %1669 = vmatpush1.bf16.msra.mxu0 %v8395_v52 }
  0x8e   :  { %993 = vmatprep.subr.bf16.mxu1 %v8553_v38  ;;  %1670 = vmatprep.subr.bf16.mxu0 %v8401_v54 }
  0x91   :  { %994 = vmatpush1.bf16.msra.mxu1 %v8559_v40  ;;  %1671 = vmatpush1.bf16.msra.mxu0 %v8407_v56 }
  0x92   :  { %995 = vmatprep.subr.bf16.mxu1 %v8561_v42  ;;  %1672 = vmatprep.subr.bf16.mxu0 %v8413_v58 }
  0x95   :  { %996 = vmatpush1.bf16.msra.mxu1 %v8567_v44  ;;  %1673 = vmatpush1.bf16.msra.mxu0 %v8419_v60 }
  0x96   :  { %997 = vmatprep.subr.bf16.mxu1 %v8569_v46  ;;  %1674 = vmatprep.subr.bf16.mxu0 %v8425_v62 }
  0x99   :  { %998 = vmatpush1.bf16.msra.mxu1 %v8575_v48  ;;  %1675 = vmatpush1.bf16.msra.mxu0 %v8431_v1 }
  0x9a   :  { %1689 = vmatprep.subr.bf16.mxu1 %v8295_v19  ;;  %1676 = vmatprep.subr.bf16.mxu0 %v8437_v3  ;;  %v10082_v19 = vld [vmem:[#allocation6_spill] sm:$0xff] }
  0x9c   :  { %1000 = vmatmul.mubr.bf16.vlgmr.msra.gmra.mrb[8].mxu1 %v10081_v8 }
  0x9d   :  { %1690 = vmatpush1.bf16.msra.mxu1 %v8301_v21  ;;  %1677 = vmatpush1.bf16.msra.mxu0 %v8443_v5  ;;  %v10083_v21 = vld [vmem:[#allocation7_spill] sm:$0xff] }
  0x9e   :  { %1691 = vmatprep.subr.bf16.mxu1 %v8307_v23  ;;  %1678 = vmatprep.subr.bf16.mxu0 %v8449_v7  ;;  %v10084_v23 = vld [vmem:[#allocation8_spill] sm:$0xff] }
  0xa1   :  { %1692 = vmatpush1.bf16.msra.mxu1 %v8314_v25  ;;  %1679 = vmatpush1.bf16.msra.mxu0 %v8455_v9  ;;  %v10085_v25 = vld [vmem:[#allocation9_spill] sm:$0xff] }
  0xa2   :  { %1693 = vmatprep.subr.bf16.mxu1 %v8320_v27  ;;  %1730 = vmatprep.subr.bf16.mxu0 %v8465_v14  ;;  %v10086_v27 = vld [vmem:[#allocation10_spill] sm:$0xff] }
  0xa5   :  { %1694 = vmatpush1.bf16.msra.mxu1 %v8327_v29  ;;  %v10087_v29 = vld [vmem:[#allocation11_spill] sm:$0xff] }
  0xa6   :  { %1695 = vmatprep.subr.bf16.mxu1 %v8333_v31  ;;  %v10088_v31 = vld [vmem:[#allocation12_spill] sm:$0xff] }
  0xa9   :  { %1696 = vmatpush1.bf16.msra.mxu1 %v8339_v33  ;;  %v10089_v33 = vld [vmem:[#allocation13_spill] sm:$0xff] }
  0xaa   :  { %1697 = vmatprep.subr.bf16.mxu1 %v8345_v35  ;;  %v10090_v35 = vld [vmem:[#allocation14_spill] sm:$0xff] }
  0xad   :  { %1698 = vmatpush1.bf16.msra.mxu1 %v8351_v37  ;;  %v10091_v37 = vld [vmem:[#allocation15_spill] sm:$0xff] }
  0xae   :  { %1699 = vmatprep.subr.bf16.mxu1 %v8357_v39  ;;  %v51_v39 = vlaneseq }
  0xb1   :  { %1700 = vmatpush1.bf16.msra.mxu1 %v8363_v41  ;;  %v8621_v41 = vshrl.u32 %v51_v39, 7 }
  0xb2   :  { %1701 = vmatprep.subr.bf16.mxu1 %v8369_v43 }
  0xb3   :  { %v61_v43 = vsub.s32 2, %v8621_v41  ;;  %v57_v50 = vsub.s32 1, %v8621_v41  ;;  %v69_v63 = vsub.s32 4, %v8621_v41  ;;  %v73_v5 = vsub.s32 5, %v8621_v41 }
  0xb5   :  { %1702 = vmatpush1.bf16.msra.mxu1 %v8375_v45  ;;  %v53_v45 = vsub.s32 0, %v8621_v41 }
  0xb6   :  { %1703 = vmatprep.subr.bf16.mxu1 %v8381_v47  ;;  %v49_v47 = vld [vmem:[%s9971_s2] sm:$0x3f] }
  0xb7   :  { %v54_v52 = vrot.slane %v49_v47, %v53_v45  ;;  %v58_v54 = vrot.slane %v49_v47, %v57_v50 }
  0xb9   :  { %1704 = vmatpush1.bf16.msra.mxu1 %v8387_v49  ;;  %v65_v49 = vsub.s32 3, %v8621_v41 }
  0xba   :  { %1705 = vmatprep.subr.bf16.mxu1 %v8393_v51  ;;  %v62_v51 = vrot.slane %v49_v47, %v61_v43 }
  0xbd   :  { %1706 = vmatpush1.bf16.msra.mxu1 %v8399_v53  ;;  %v66_v53 = vrot.slane %v49_v47, %v65_v49 }
  0xbe   :  { %1707 = vmatprep.subr.bf16.mxu1 %v8405_v55 }
  0xc1   :  { %1708 = vmatpush1.bf16.msra.mxu1 %v10082_v19  ;;  %v74_v19 = vrot.slane %v49_v47, %v73_v5 }
  0xc2   :  { %1709 = vmatprep.subr.bf16.mxu1 %v10083_v21 }
  0xc5   :  { %1710 = vmatpush1.bf16.msra.mxu1 %v10084_v23 }
  0xc6   :  { %1711 = vmatprep.subr.bf16.mxu1 %v10085_v25 }
  0xc9   :  { %1712 = vmatpush1.bf16.msra.mxu1 %v10086_v27 }
  0xca   :  { %1713 = vmatprep.subr.bf16.mxu1 %v10087_v29 }
  0xcd   :  { %1714 = vmatpush1.bf16.msra.mxu1 %v10088_v31 }
  0xce   :  { %1715 = vmatprep.subr.bf16.mxu1 %v10089_v33 }
  0xd1   :  { %1716 = vmatpush1.bf16.msra.mxu1 %v10090_v35 }
  0xd2   :  { %1717 = vmatprep.subr.bf16.mxu1 %v10091_v37 }
  0xd5   :  { %1718 = vmatpush1.bf16.msra.mxu1 %v8467_v16  ;;  %v70_v16 = vrot.slane %v49_v47, %v69_v63 }
  0xd6   :  { %1719 = vmatprep.subr.bf16.mxu1 %v8471_v4 }
  0xd9   :  { %1720 = vmatpush1.bf16.msra.mxu1 %v8475_v2 }
  0xef   :  { %v227_v55 = vpop.f32.mrb[0].mxu1  ;;  %v184_v56 = vpop.f32.mrb[0].mxu0 }
  0xf0   :  { %v228_v58 = vadd.f32 %v227_v55, %v62_v51  ;;  %v229_v59 = vpop.f32.mrb[1].mxu1  ;;  %v185_v60 = vadd.f32 %v184_v56, %v54_v52  ;;  %v186_v62 = vpop.f32.mrb[1].mxu0 }
  0xf1   :  { %v230_v1 = vadd.f32 %v229_v59, %v66_v53  ;;  %v231_v2 = vpop.f32.mrb[2].mxu1  ;;  %v187_v3 = vadd.f32 %v186_v62, %v58_v54  ;;  %v188_v4 = vpop.f32.mrb[2].mxu0 }
  0xf2   :  { %281 = vst [vmem:[#allocation2 + $0x10] sm:$0xff] %v228_v58  ;;  %v232_v7 = vadd.f32 %v231_v2, %v62_v51  ;;  %v233_v8 = vpop.f32.mrb[3].mxu1  ;;  %279 = vst [vmem:[#allocation2] sm:$0xff] %v185_v60  ;;  %v189_v9 = vadd.f32 %v188_v4, %v54_v52  ;;  %v190_v10 = vpop.f32.mrb[3].mxu0 }
  0xf3   :  { %282 = vst [vmem:[#allocation2 + $0x18] sm:$0xff] %v230_v1  ;;  %v234_v11 = vadd.f32 %v233_v8, %v66_v53  ;;  %280 = vst [vmem:[#allocation2 + $0x8] sm:$0xff] %v187_v3  ;;  %v191_v14 = vadd.f32 %v190_v10, %v58_v54  ;;  %v291_v10 = vld [vmem:[%s9973_s4] sm:$0x3] }
  0xf4   :  { %287 = vst [vmem:[#allocation2 + $0x40] sm:$0xff] %v232_v7  ;;  %285 = vst [vmem:[#allocation2 + $0x30] sm:$0xff] %v189_v9 }
  0xf5   :  { %288 = vst [vmem:[#allocation2 + $0x48] sm:$0xff] %v234_v11  ;;  %286 = vst [vmem:[#allocation2 + $0x38] sm:$0xff] %v191_v14 }
  0xf7   :  { %v270_v21 = vpop.f32.mrb[4].mxu0 }
  0xf8   :  { %v271_v23 = vadd.f32 %v270_v21, %v70_v16  ;;  %v272_v25 = vpop.f32.mrb[5].mxu0 }
  0xf9   :  { %v273_v27 = vadd.f32 %v272_v25, %v74_v19  ;;  %v274_v29 = vpop.f32.mrb[6].mxu0  ;;  %v303_v54 = vld [vmem:[#allocation2] sm:$0x3]  ;;  %v305_v62 = vld [vmem:[#allocation2 + $0x10] sm:$0x3] }
  0xfa   :  { %283 = vst [vmem:[#allocation2 + $0x20] sm:$0xff] %v271_v23  ;;  %v275_v31 = vadd.f32 %v274_v29, %v70_v16  ;;  %v276_v33 = vpop.f32.mrb[7].mxu0  ;;  %v304_v56 = vld [vmem:[#allocation2 + $0x8] sm:$0x3]  ;;  %v306_v1 = vld [vmem:[#allocation2 + $0x18] sm:$0x3]  ;;  %v8641_v16 = vrot.slane %v291_v10, %v53_v45 }
  0xfb   :  { %284 = vst [vmem:[#allocation2 + $0x28] sm:$0xff] %v273_v27  ;;  %v277_v35 = vadd.f32 %v276_v33, %v74_v19  ;;  %v8645_v19 = vrot.slane %v291_v10, %v57_v50  ;;  %v8163_v10 = vld [vmem:[#allocation3 + $0x74] ss:$24 sps:$4 sm:$0xff]  }
  0xfc   :  { %289 = vst [vmem:[#allocation2 + $0x50] sm:$0xff] %v275_v31  ;;  %10092 = vst [vmem:[#allocation6_spill] sm:$0xff] %v8641_v16 }
  0xfd   :  { %290 = vst [vmem:[#allocation2 + $0x58] sm:$0xff] %v277_v35  ;;  %10093 = vst [vmem:[#allocation7_spill] sm:$0xff] %v8645_v19 }
 0x101   :  { %v307_v45 = vld [vmem:[#allocation2 + $0x20] sm:$0x3] }
 0x102   :  { %v308_v50 = vld [vmem:[#allocation2 + $0x28] sm:$0x3] }
 0x12f   :  { %v919_v37 = vpop.f32.mrb[4].mxu1 }
 0x130   :  { %v921_v39 = vpop.f32.mrb[5].mxu1  ;;  %v1008_v55 = vadd.f32 %v919_v37, %v303_v54 }
 0x131   :  { %v923_v43 = vpop.f32.mrb[6].mxu1  ;;  %v1009_v58 = vadd.f32 %v921_v39, %v304_v56 }
 0x132   :  { %v924_v49 = vpop.f32.mrb[7].mxu1  ;;  %v6692_v59 = vmul.f32 -1.442695, %v1008_v55 }
 0x133   :  { %v6693_v60 = vmul.f32 -1.442695, %v1009_v58 }
 0x134   :  { %8000 = vpow2.f32 %v6692_v59 }
 0x135   :  { %8002 = vpow2.f32 %v6693_v60 }
 0x137   :  { %v960_v51 = vpop.f32.mrb[8].mxu0 }
 0x138   :  { %v962_v52 = vpop.f32.mrb[9].mxu0  ;;  %v1022_v63 = vadd.f32 %v960_v51, %v305_v62 }
 0x139   :  { %v964_v53 = vpop.f32.mrb[10].mxu0  ;;  %v1023_v2 = vadd.f32 %v962_v52, %v306_v1 }
 0x13a   :  { %v965_v47 = vpop.f32.mrb[11].mxu0  ;;  %v6694_v3 = vmul.f32 -1.442695, %v1022_v63 }
 0x13b   :  { %v6695_v4 = vmul.f32 -1.442695, %v1023_v2 }
 0x13c   :  { %8004 = vpow2.f32 %v6694_v3 }
 0x13d   :  { %8006 = vpow2.f32 %v6695_v4 }
 0x13e   :  { %v8001_v5 = vpop.eup %8000 }
 0x13f   :  { %v8003_v7 = vpop.eup %8002  ;;  %v1016_v8 = vadd.f32 1.0, %v8001_v5 }
 0x140   :  { %v1017_v9 = vadd.f32 1.0, %v8003_v7  ;;  %v8160_v7 = vld [vmem:[#allocation3 + $0x10] ss:$24 sps:$4 sm:$0xff]  }
 0x141   :  { %8008 = vrcp.f32 %v1016_v8  ;;  %v8161_v8 = vld [vmem:[#allocation3 + $0x44] ss:$24 sps:$4 sm:$0xff]  }
 0x142   :  { %8010 = vrcp.f32 %v1017_v9  ;;  %v8162_v9 = vld [vmem:[#allocation3 + $0x40] ss:$24 sps:$4 sm:$0xff]  }
 0x146   :  { %v8005_v11 = vpop.eup %8004 }
 0x147   :  { %v8007_v14 = vpop.eup %8006  ;;  %v1030_v21 = vadd.f32 1.0, %v8005_v11  ;;  %v8164_v11 = vld [vmem:[#allocation3 + $0x70] ss:$24 sps:$4 sm:$0xff]  }
 0x148   :  { %v1031_v23 = vadd.f32 1.0, %v8007_v14  ;;  %v8165_v14 = vld [vmem:[#allocation3 + $0xa4] ss:$24 sps:$4 sm:$0xff]  }
 0x149   :  { %8012 = vrcp.f32 %v1030_v21  ;;  %v8166_v21 = vld [vmem:[#allocation3 + $0xa0] ss:$24 sps:$4 sm:$0xff]  }
 0x14a   :  { %8014 = vrcp.f32 %v1031_v23  ;;  %v8755_v23 = vld [vmem:[#allocation3 + $0x124] ss:$24 sps:$4 sm:$0xff]  }
 0x14b   :  { %v8009_v31 = vpop.eup %8008 }
 0x14c   :  { %v8011_v37 = vpop.eup %8010 }
 0x153   :  { %v8013_v53 = vpop.eup %8012 }
 0x154   :  { %v8015_v47 = vpop.eup %8014  ;;  %v1044_v54 = vsub.f32 1.0, %v8013_v53  ;;  %v1048_v60 = vmul.f32 0.0, %v8013_v53  ;;  %v8801_v53 = vld [vmem:[#allocation3 + $0x1b8] ss:$24 sps:$4 sm:$0xff]  }
 0x155   :  { %v1045_v56 = vsub.f32 1.0, %v8015_v47  ;;  %v1049_v63 = vmul.f32 0.0, %v8015_v47  ;;  %10107 = vst [vmem:[#allocation21_spill] sm:$0xff] %v8801_v53  ;;  %v8806_v47 = vld [vmem:[#allocation3 + $0x1e4] ss:$24 sps:$4 sm:$0xff]  }
 0x16f   :  { %v1001_v25 = vpop.f32.mrb[8].mxu1 }
 0x170   :  { %v1036_v27 = vadd.f32 %v1001_v25, %v8641_v16  ;;  %v1003_v29 = vpop.f32.mrb[9].mxu1  ;;  %v8758_v25 = vld [vmem:[#allocation3 + $0x12c] ss:$24 sps:$4 sm:$0xff]  }
 0x171   :  { %v1037_v33 = vadd.f32 %v1003_v29, %v8645_v19  ;;  %v1005_v35 = vpop.f32.mrb[10].mxu1  ;;  %10100 = vst [vmem:[#allocation14_spill] sm:$0xff] %v8758_v25  ;;  %v8765_v29 = vld [vmem:[#allocation3 + $0x128] ss:$24 sps:$4 sm:$0xff]  }
 0x172   :  { %v1038_v39 = vmul.f32 %v8009_v31, %v1036_v27  ;;  %v1006_v43 = vpop.f32.mrb[11].mxu1  ;;  %v8761_v27 = vld [vmem:[#allocation3 + $0x120] ss:$24 sps:$4 sm:$0xff]   ;;  %10101 = vst [vmem:[#allocation15_spill] sm:$0xff] %v8765_v29  ;;  %v8767_v31 = vld [vmem:[#allocation3 + $0x154] ss:$24 sps:$4 sm:$0xff]  }
 0x173   :  { %v1039_v49 = vmul.f32 %v8011_v37, %v1037_v33  ;;  %v8770_v33 = vld [vmem:[#allocation3 + $0x15c] ss:$24 sps:$4 sm:$0xff]   ;;  %v8773_v35 = vld [vmem:[#allocation3 + $0x150] ss:$24 sps:$4 sm:$0xff]   ;;  %v8782_v43 = vld [vmem:[#allocation3 + $0x18c] ss:$24 sps:$4 sm:$0xff]  }
 0x174   :  { %v1040_v51 = vadd.f32 %v1038_v39, %v307_v45  ;;  %10102 = vst [vmem:[#allocation16_spill] sm:$0xff] %v8770_v33  ;;  %v8777_v37 = vld [vmem:[#allocation3 + $0x158] ss:$24 sps:$4 sm:$0xff]   ;;  %v8779_v39 = vld [vmem:[#allocation3 + $0x184] ss:$24 sps:$4 sm:$0xff]   ;;  %10104 = vst [vmem:[#allocation18_spill] sm:$0xff] %v8782_v43 }
 0x175   :  { %v1041_v52 = vadd.f32 %v1039_v49, %v308_v50  ;;  %10103 = vst [vmem:[#allocation17_spill] sm:$0xff] %v8777_v37  ;;  %v8785_v45 = vld [vmem:[#allocation3 + $0x180] ss:$24 sps:$4 sm:$0xff]   ;;  %v8796_v50 = vld [vmem:[#allocation3 + $0x1b0] ss:$24 sps:$4 sm:$0xff]  }
 0x176   :  { %8016 = vtanh.f32 %v1040_v51  ;;  %v8789_v49 = vld [vmem:[#allocation3 + $0x188] ss:$24 sps:$4 sm:$0xff]   ;;  %v8794_v51 = vld [vmem:[#allocation3 + $0x1b4] ss:$24 sps:$4 sm:$0xff]  }
 0x177   :  { %8018 = vtanh.f32 %v1041_v52  ;;  %10105 = vst [vmem:[#allocation19_spill] sm:$0xff] %v8789_v49  ;;  %v8798_v52 = vld [vmem:[#allocation3 + $0x1bc] ss:$24 sps:$4 sm:$0xff]  }
 0x178   :  { %10106 = vst [vmem:[#allocation20_spill] sm:$0xff] %v8798_v52 }
 0x180   :  { %v8017_v55 = vpop.eup %8016 }
 0x181   :  { %v8019_v58 = vpop.eup %8018  ;;  %v1046_v59 = vmul.f32 %v8017_v55, %v1044_v54  ;;  %v8808_v54 = vld [vmem:[#allocation3 + $0x1e0] ss:$24 sps:$4 sm:$0xff]   ;;  %v8810_v55 = vld [vmem:[#allocation3 + $0x1ec] ss:$24 sps:$4 sm:$0xff]  }
 0x182   :  { %v1047_v62 = vmul.f32 %v8019_v58, %v1045_v56  ;;  %10108 = vst [vmem:[#allocation22_spill] sm:$0xff] %v8810_v55  ;;  %v8813_v56 = vld [vmem:[#allocation3 + $0x1e8] ss:$24 sps:$4 sm:$0xff]   ;;  %v8818_v58 = vld [vmem:[#allocation3 + $0x214] ss:$24 sps:$4 sm:$0xff]  }
 0x183   :  { %v8649_v1 = vadd.f32 %v1048_v60, %v1046_v59  ;;  %10109 = vst [vmem:[#allocation23_spill] sm:$0xff] %v8813_v56  ;;  %v8820_v59 = vld [vmem:[#allocation3 + $0x210] ss:$24 sps:$4 sm:$0xff]   ;;  %v8822_v60 = vld [vmem:[#allocation3 + $0x21c] ss:$24 sps:$4 sm:$0xff]  }
 0x184   :  { %v8651_v2 = vadd.f32 %v1049_v63, %v1047_v62  ;;  %10110 = vst [vmem:[#allocation24_spill] sm:$0xff] %v8822_v60  ;;  %v8825_v62 = vld [vmem:[#allocation3 + $0x218] ss:$24 sps:$4 sm:$0xff]   ;;  %v8827_v63 = vld [vmem:[#allocation3 + $0x244] ss:$24 sps:$4 sm:$0xff]  }
 0x185   :  { %v1070_v5 = vpack.c.bf16 %v8649_v1, %v8649_v1  ;;  %10111 = vst [vmem:[#allocation25_spill] sm:$0xff] %v8825_v62 }
 0x186   :  { %v1071_v3 = vpack.c.bf16 %v8651_v2, %v8651_v2  ;;  %v1054_v4 = vcombine.low %v8649_v1, %v8651_v2 }
 0x188   :  { %1680 = vmatprep.mubr.bf16.mxu0 %v1071_v3  ;;  %1721 = vmatprep.mubr.bf16.mxu1 %v1071_v3  ;;  %6696 = vst.sshfl [vmem:[%s9974_s5] sm:$0x33 pattern:$0x76325410] %v1054_v4  ;;  %v8833_v4 = vld [vmem:[#allocation3 + $0x24c] ss:$24 sps:$4 sm:$0xff]  }
 0x189   :  { %1681 = vmatmul.mubr.bf16.vlgmr.msra.gmra.mrb[12].mxu0 %v1070_v5  ;;  %1722 = vmatmul.mubr.bf16.vlgmr.msra.gmra.mrb[12].mxu1 %v1070_v5  ;;  %10112 = vst [vmem:[#allocation26_spill] sm:$0xff] %v8833_v4 }
 0x18a   :  { %1731 = vmatpush1.bf16.msra.mxu0 %v8160_v7  ;;  %1762 = vmatprep.mubr.bf16.mxu0 %v1071_v3  ;;  %v8831_v3 = vld [vmem:[#allocation3 + $0x240] ss:$24 sps:$4 sm:$0xff]   ;;  %v8839_v7 = vld [vmem:[#allocation3 + $0x274] ss:$24 sps:$4 sm:$0xff]  }
 0x18b   :  { %1732 = vmatprep.subr.bf16.mxu0 %v8161_v8  ;;  %v8842_v8 = vld [vmem:[#allocation3 + $0x27c] ss:$24 sps:$4 sm:$0xff]  }
 0x18c   :  { %10114 = vst [vmem:[#allocation28_spill] sm:$0xff] %v8842_v8 }
 0x18e   :  { %1733 = vmatpush1.bf16.msra.mxu0 %v8162_v9  ;;  %v8845_v9 = vld [vmem:[#allocation3 + $0x270] ss:$24 sps:$4 sm:$0xff]  }
 0x18f   :  { %1734 = vmatprep.subr.bf16.mxu0 %v8163_v10  ;;  %v8849_v10 = vld [vmem:[#allocation3 + $0x278] ss:$24 sps:$4 sm:$0xff]  }
 0x190   :  { %10115 = vst [vmem:[#allocation29_spill] sm:$0xff] %v8849_v10 }
 0x192   :  { %1735 = vmatpush1.bf16.msra.mxu0 %v8164_v11  ;;  %v8851_v11 = vld [vmem:[#allocation3 + $0x2a4] ss:$24 sps:$4 sm:$0xff]  }
 0x193   :  { %1736 = vmatprep.subr.bf16.mxu0 %v8165_v14  ;;  %v8854_v14 = vld [vmem:[#allocation3 + $0x2ac] ss:$24 sps:$4 sm:$0xff]  }
 0x194   :  { %10116 = vst [vmem:[#allocation30_spill] sm:$0xff] %v8854_v14 }
 0x196   :  { %1737 = vmatpush1.bf16.msra.mxu0 %v8166_v21  ;;  %v8857_v21 = vld [vmem:[#allocation3 + $0x2a0] ss:$24 sps:$4 sm:$0xff]  }
 0x197   :  { %1738 = vmatprep.subr.bf16.mxu0 %v8484_v57  ;;  %v8686_v57 = vld [vmem:[#allocation3] ss:$24 sps:$4 sm:$0xff]  }
 0x19a   :  { %1739 = vmatpush1.bf16.msra.mxu0 %v8488_v0  ;;  %v8688_v0 = vld [vmem:[#allocation3 + $0x4] ss:$24 sps:$4 sm:$0xff]  }
 0x19b   :  { %1740 = vmatprep.subr.bf16.mxu0 %v8490_v6  ;;  %v8690_v6 = vld [vmem:[#allocation3 + $0x8] ss:$24 sps:$4 sm:$0xff]   ;;  %2440 = vmatprep.subr.bf16.mxu1 %v8688_v0 }
 0x19c   :  { %2441 = vmatpush1.bf16.msra.mxu1 %v8686_v57 }
 0x19e   :  { %1741 = vmatpush1.bf16.msra.mxu0 %v8495_v13  ;;  %v8692_v13 = vld [vmem:[#allocation3 + $0xc] ss:$24 sps:$4 sm:$0xff]  }
 0x19f   :  { %1742 = vmatprep.subr.bf16.mxu0 %v8497_v61  ;;  %v8694_v61 = vld [vmem:[#allocation3 + $0x34] ss:$24 sps:$4 sm:$0xff]  }
 0x1a0   :  { %2442 = vmatprep.subr.bf16.mxu1 %v8694_v61 }
 0x1a2   :  { %1743 = vmatpush1.bf16.msra.mxu0 %v8503_v12  ;;  %v8697_v12 = vld [vmem:[#allocation3 + $0x3c] ss:$24 sps:$4 sm:$0xff]  }
 0x1a3   :  { %1744 = vmatprep.subr.bf16.mxu0 %v8505_v15  ;;  %v8701_v15 = vld [vmem:[#allocation3 + $0x30] ss:$24 sps:$4 sm:$0xff]  }
 0x1a4   :  { %2443 = vmatpush1.bf16.msra.mxu1 %v8701_v15 }
 0x1a6   :  { %1745 = vmatpush1.bf16.msra.mxu0 %v8512_v17  ;;  %v8705_v17 = vld [vmem:[#allocation3 + $0x38] ss:$24 sps:$4 sm:$0xff]  }
 0x1a7   :  { %1746 = vmatprep.subr.bf16.mxu0 %v8514_v18  ;;  %v8707_v18 = vld [vmem:[#allocation3 + $0x64] ss:$24 sps:$4 sm:$0xff]  }
 0x1a8   :  { %2444 = vmatprep.subr.bf16.mxu1 %v8707_v18 }
 0x1aa   :  { %1747 = vmatpush1.bf16.msra.mxu0 %v8519_v20  ;;  %v8710_v20 = vld [vmem:[#allocation3 + $0x6c] ss:$24 sps:$4 sm:$0xff]  }
 0x1ab   :  { %1748 = vmatprep.subr.bf16.mxu0 %v8521_v22  ;;  %v8713_v22 = vld [vmem:[#allocation3 + $0x60] ss:$24 sps:$4 sm:$0xff]  }
 0x1ac   :  { %2445 = vmatpush1.bf16.msra.mxu1 %v8713_v22 }
 0x1ae   :  { %1749 = vmatpush1.bf16.msra.mxu0 %v8527_v24  ;;  %v8717_v24 = vld [vmem:[#allocation3 + $0x68] ss:$24 sps:$4 sm:$0xff]  }
 0x1af   :  { %1750 = vmatprep.subr.bf16.mxu0 %v8529_v26  ;;  %v8719_v26 = vld [vmem:[#allocation3 + $0x94] ss:$24 sps:$4 sm:$0xff]  }
 0x1b0   :  { %2446 = vmatprep.subr.bf16.mxu1 %v8719_v26 }
 0x1b2   :  { %1751 = vmatpush1.bf16.msra.mxu0 %v8535_v28  ;;  %v8722_v28 = vld [vmem:[#allocation3 + $0x9c] ss:$24 sps:$4 sm:$0xff]  }
 0x1b3   :  { %1752 = vmatprep.subr.bf16.mxu0 %v8537_v30  ;;  %10094 = vst [vmem:[#allocation8_spill] sm:$0xff] %v8722_v28  ;;  %v8725_v30 = vld [vmem:[#allocation3 + $0x90] ss:$24 sps:$4 sm:$0xff]  }
 0x1b4   :  { %2447 = vmatpush1.bf16.msra.mxu1 %v8725_v30 }
 0x1b6   :  { %1753 = vmatpush1.bf16.msra.mxu0 %v8543_v32  ;;  %v8729_v32 = vld [vmem:[#allocation3 + $0x98] ss:$24 sps:$4 sm:$0xff]  }
 0x1b7   :  { %1754 = vmatprep.subr.bf16.mxu0 %v8545_v34  ;;  %10095 = vst [vmem:[#allocation9_spill] sm:$0xff] %v8729_v32  ;;  %v8731_v34 = vld [vmem:[#allocation3 + $0xc4] ss:$24 sps:$4 sm:$0xff]  }
 0x1b8   :  { %2448 = vmatprep.subr.bf16.mxu1 %v8731_v34 }
 0x1ba   :  { %1755 = vmatpush1.bf16.msra.mxu0 %v8551_v36  ;;  %v8734_v36 = vld [vmem:[#allocation3 + $0xcc] ss:$24 sps:$4 sm:$0xff]  }
 0x1bb   :  { %1756 = vmatprep.subr.bf16.mxu0 %v8553_v38  ;;  %10096 = vst [vmem:[#allocation10_spill] sm:$0xff] %v8734_v36  ;;  %v8737_v38 = vld [vmem:[#allocation3 + $0xc0] ss:$24 sps:$4 sm:$0xff]  }
 0x1bc   :  { %2449 = vmatpush1.bf16.msra.mxu1 %v8737_v38 }
 0x1be   :  { %1757 = vmatpush1.bf16.msra.mxu0 %v8559_v40  ;;  %v8741_v40 = vld [vmem:[#allocation3 + $0xc8] ss:$24 sps:$4 sm:$0xff]  }
 0x1bf   :  { %1758 = vmatprep.subr.bf16.mxu0 %v8561_v42  ;;  %10097 = vst [vmem:[#allocation11_spill] sm:$0xff] %v8741_v40  ;;  %v8743_v42 = vld [vmem:[#allocation3 + $0xf4] ss:$24 sps:$4 sm:$0xff]  }
 0x1c0   :  { %2450 = vmatprep.subr.bf16.mxu1 %v8743_v42 }
 0x1c2   :  { %1759 = vmatpush1.bf16.msra.mxu0 %v8567_v44  ;;  %v8746_v44 = vld [vmem:[#allocation3 + $0xfc] ss:$24 sps:$4 sm:$0xff]  }
 0x1c3   :  { %1760 = vmatprep.subr.bf16.mxu0 %v8569_v46  ;;  %10098 = vst [vmem:[#allocation12_spill] sm:$0xff] %v8746_v44  ;;  %v8749_v46 = vld [vmem:[#allocation3 + $0xf0] ss:$24 sps:$4 sm:$0xff]  }
 0x1c4   :  { %2451 = vmatpush1.bf16.msra.mxu1 %v8749_v46 }
 0x1c5   :  { %2452 = vmatprep.subr.bf16.mxu1 %v8755_v23 }
 0x1c6   :  { %1761 = vmatpush1.bf16.msra.mxu0 %v8575_v48  ;;  %v8753_v48 = vld [vmem:[#allocation3 + $0xf8] ss:$24 sps:$4 sm:$0xff]  }
 0x1c7   :  { %2481 = vmatprep.subr.bf16.mxu0 %v8692_v13  ;;  %10099 = vst [vmem:[#allocation13_spill] sm:$0xff] %v8753_v48 }
 0x1c8   :  { %2453 = vmatpush1.bf16.msra.mxu1 %v8761_v27 }
 0x1c9   :  { %1763 = vmatmul.mubr.bf16.vlgmr.msra.gmra.mrb[16].mxu0 %v1070_v5  ;;  %2454 = vmatprep.subr.bf16.mxu1 %v8767_v31  ;;  %v8837_v5 = vld [vmem:[#allocation3 + $0x248] ss:$24 sps:$4 sm:$0xff]  }
 0x1ca   :  { %2482 = vmatpush1.bf16.msra.mxu0 %v8690_v6  ;;  %10113 = vst [vmem:[#allocation27_spill] sm:$0xff] %v8837_v5 }
 0x1cb   :  { %2483 = vmatprep.subr.bf16.mxu0 %v8697_v12 }
 0x1cc   :  { %2455 = vmatpush1.bf16.msra.mxu1 %v8773_v35 }
 0x1cd   :  { %2456 = vmatprep.subr.bf16.mxu1 %v8779_v39 }
 0x1ce   :  { %2484 = vmatpush1.bf16.msra.mxu0 %v8705_v17 }
 0x1cf   :  { %2485 = vmatprep.subr.bf16.mxu0 %v8710_v20 }
 0x1d0   :  { %2457 = vmatpush1.bf16.msra.mxu1 %v8785_v45 }
 0x1d1   :  { %2458 = vmatprep.subr.bf16.mxu1 %v8794_v51 }
 0x1d2   :  { %2486 = vmatpush1.bf16.msra.mxu0 %v8717_v24 }
 0x1d3   :  { %2487 = vmatprep.subr.bf16.mxu0 %v8722_v28 }
 0x1d4   :  { %2459 = vmatpush1.bf16.msra.mxu1 %v8796_v50 }
 0x1d5   :  { %2460 = vmatprep.subr.bf16.mxu1 %v8806_v47 }
 0x1d6   :  { %2488 = vmatpush1.bf16.msra.mxu0 %v8729_v32 }
 0x1d7   :  { %2489 = vmatprep.subr.bf16.mxu0 %v8734_v36 }
 0x1d8   :  { %2461 = vmatpush1.bf16.msra.mxu1 %v8808_v54 }
 0x1d9   :  { %2462 = vmatprep.subr.bf16.mxu1 %v8818_v58 }
 0x1da   :  { %2490 = vmatpush1.bf16.msra.mxu0 %v8741_v40 }
 0x1db   :  { %2491 = vmatprep.subr.bf16.mxu0 %v8746_v44 }
 0x1dc   :  { %2463 = vmatpush1.bf16.msra.mxu1 %v8820_v59 }
 0x1dd   :  { %2464 = vmatprep.subr.bf16.mxu1 %v8827_v63 }
 0x1de   :  { %2492 = vmatpush1.bf16.msra.mxu0 %v8753_v48 }
 0x1df   :  { %2493 = vmatprep.subr.bf16.mxu0 %v8758_v25 }
 0x1e0   :  { %2465 = vmatpush1.bf16.msra.mxu1 %v8831_v3 }
 0x1e1   :  { %2466 = vmatprep.subr.bf16.mxu1 %v8839_v7 }
 0x1e2   :  { %2494 = vmatpush1.bf16.msra.mxu0 %v8765_v29 }
 0x1e3   :  { %2495 = vmatprep.subr.bf16.mxu0 %v8770_v33  ;;  %v1067_v33 = vld [vmem:[#allocation2 + $0x18] sm:$0xc] }
 0x1e4   :  { %2467 = vmatpush1.bf16.msra.mxu1 %v8845_v9 }
 0x1e5   :  { %2468 = vmatprep.subr.bf16.mxu1 %v8851_v11 }
 0x1e6   :  { %2496 = vmatpush1.bf16.msra.mxu0 %v8777_v37 }
 0x1e7   :  { %2497 = vmatprep.subr.bf16.mxu0 %v8782_v43 }
 0x1e8   :  { %2469 = vmatpush1.bf16.msra.mxu1 %v8857_v21 }
 0x1ea   :  { %2498 = vmatpush1.bf16.msra.mxu0 %v8789_v49 }
 0x1eb   :  { %2499 = vmatprep.subr.bf16.mxu0 %v8798_v52  ;;  %v1066_v52 = vld [vmem:[#allocation2 + $0x10] sm:$0xc] }
 0x1ee   :  { %2500 = vmatpush1.bf16.msra.mxu0 %v8801_v53 }
 0x1ef   :  { %2501 = vmatprep.subr.bf16.mxu0 %v8810_v55 }
 0x1f2   :  { %2502 = vmatpush1.bf16.msra.mxu0 %v8813_v56 }
 0x1f3   :  { %2503 = vmatprep.subr.bf16.mxu0 %v8822_v60  ;;  %v8873_v60 = vld [vmem:[#allocation3 + $0x2d8] ss:$24 sps:$4 sm:$0xff]  }
 0x1f4   :  { %10119 = vst [vmem:[#allocation33_spill] sm:$0xff] %v8873_v60 }
 0x1f6   :  { %2504 = vmatpush1.bf16.msra.mxu0 %v8825_v62  ;;  %v8866_v62 = vld [vmem:[#allocation3 + $0x2dc] ss:$24 sps:$4 sm:$0xff]  }
 0x1f7   :  { %2505 = vmatprep.subr.bf16.mxu0 %v8833_v4  ;;  %v8861_v4 = vld [vmem:[#allocation3 + $0x2a8] ss:$24 sps:$4 sm:$0xff]   ;;  %10118 = vst [vmem:[#allocation32_spill] sm:$0xff] %v8866_v62 }
 0x1f8   :  { %10117 = vst [vmem:[#allocation31_spill] sm:$0xff] %v8861_v4 }
 0x1fa   :  { %2506 = vmatpush1.bf16.msra.mxu0 %v8837_v5  ;;  %v8863_v5 = vld [vmem:[#allocation3 + $0x2d4] ss:$24 sps:$4 sm:$0xff]  }
 0x1fb   :  { %2507 = vmatprep.subr.bf16.mxu0 %v8842_v8  ;;  %v8869_v8 = vld [vmem:[#allocation3 + $0x2d0] ss:$24 sps:$4 sm:$0xff]   ;;  %2470 = vmatprep.subr.bf16.mxu1 %v8863_v5 }
 0x1fc   :  { %2471 = vmatpush1.bf16.msra.mxu1 %v8869_v8 }
 0x1fe   :  { %2508 = vmatpush1.bf16.msra.mxu0 %v8849_v10  ;;  %v8878_v10 = vld [vmem:[#allocation3 + $0x14] ss:$24 sps:$4 sm:$0xff]  }
 0x1ff   :  { %2509 = vmatprep.subr.bf16.mxu0 %v8854_v14  ;;  %2522 = vmatprep.subr.bf16.mxu1 %v8878_v10 }
 0x202   :  { %2510 = vmatpush1.bf16.msra.mxu0 %v8861_v4 }
 0x203   :  { %2511 = vmatprep.subr.bf16.mxu0 %v8866_v62 }
 0x206   :  { %2512 = vmatpush1.bf16.msra.mxu0 %v8873_v60 }
 0x207   :  { %3231 = vmatprep.subr.bf16.mxu0 %v8688_v0 }
 0x25c   :  { %v1682_v14 = vpop.f32.mrb[12].mxu0  ;;  %v1723_v56 = vpop.f32.mrb[12].mxu1 }
 0x25d   :  { %v1793_v55 = vrot.slane %v1723_v56, 6  ;;  %v1684_v4 = vpop.f32.mrb[13].mxu0  ;;  %v1725_v53 = vpop.f32.mrb[13].mxu1  ;;  %v1773_v32 = vrot.slane %v1682_v14, 6 }
 0x25e   :  { %v1794_v49 = vrot.slane %v1725_v53, 6  ;;  %v1686_v43 = vpop.f32.mrb[14].mxu0  ;;  %v1727_v37 = vpop.f32.mrb[14].mxu1  ;;  %v1774_v28 = vrot.slane %v1684_v4, 6  ;;  %v1065_v53 = vld [vmem:[#allocation2 + $0x8] sm:$0xc] }
 0x25f   :  { %v1797_v62 = vadd.f32 %v1793_v55, %v1066_v52  ;;  %v1687_v29 = vpop.f32.mrb[15].mxu0  ;;  %v1728_v25 = vpop.f32.mrb[15].mxu1  ;;  %v1829_v43 = vrot.slane %v8649_v1, 6  ;;  %v1064_v52 = vld [vmem:[#allocation2] sm:$0xc] }
 0x260   :  { %v1798_v60 = vadd.f32 %v1794_v49, %v1067_v33  ;;  %v1830_v29 = vrot.slane %v8651_v2, 6  ;;  %v1777_v49 = vadd.f32 %v1773_v32, %v1064_v52 }
 0x261   :  { %v6795_v48 = vmul.f32 -1.442695, %v1797_v62 }
 0x262   :  { %v6796_v44 = vmul.f32 -1.442695, %v1798_v60  ;;  %v6793_v55 = vmul.f32 -1.442695, %v1777_v49 }
 0x263   :  { %8020 = vpow2.f32 %v6795_v48  ;;  %v1778_v48 = vadd.f32 %v1774_v28, %v1065_v53  ;;  %v1068_v53 = vld [vmem:[#allocation2 + $0x20] sm:$0xc] }
 0x264   :  { %8022 = vpow2.f32 %v6796_v44 }
 0x265   :  { %v6794_v60 = vmul.f32 -1.442695, %v1778_v48 }
 0x26d   :  { %v8021_v0 = vpop.eup %8020 }
 0x26e   :  { %v1805_v40 = vadd.f32 1.0, %v8021_v0  ;;  %v8023_v36 = vpop.eup %8022 }
 0x26f   :  { %v1806_v56 = vadd.f32 1.0, %v8023_v36 }
 0x270   :  { %8024 = vrcp.f32 %v1805_v40 }
 0x271   :  { %8026 = vrcp.f32 %v1806_v56 }
 0x272   :  { %8028 = vpow2.f32 %v6793_v55 }
 0x273   :  { %8030 = vpow2.f32 %v6794_v60  ;;  %v1069_v60 = vld [vmem:[#allocation2 + $0x28] sm:$0xc] }
 0x27a   :  { %v8025_v37 = vpop.eup %8024 }
 0x27b   :  { %v1833_v25 = vmul.f32 %v8025_v37, %v1829_v43  ;;  %v8027_v33 = vpop.eup %8026 }
 0x27c   :  { %v1834_v44 = vmul.f32 %v8027_v33, %v1830_v29  ;;  %v8029_v36 = vpop.eup %8028 }
 0x27d   :  { %v8031_v40 = vpop.eup %8030  ;;  %v1785_v62 = vadd.f32 1.0, %v8029_v36 }
 0x27e   :  { %v1786_v4 = vadd.f32 1.0, %v8031_v40  ;;  %v8195_v40 = vmov 1983009808  }
 0x27f   :  { %8032 = vrcp.f32 %v1785_v62  ;;  %v1841_v62 = vunpack.c.l.s4 %v8195_v40  ;;  %v10135_v40 = vld [vmem:[#allocation23_spill] sm:$0xff] }
 0x280   :  { %8034 = vrcp.f32 %v1786_v4  ;;  %v1825_v4 = vsub.f32 1.0, %v8025_v37 }
 0x289   :  { %v8033_v43 = vpop.eup %8032 }
 0x28a   :  { %v8035_v29 = vpop.eup %8034 }
 0x29c   :  { %v1764_v1 = vpop.f32.mrb[16].mxu0 }
 0x29d   :  { %v1811_v14 = vadd.f32 %v1764_v1, %v8641_v16  ;;  %v1766_v2 = vpop.f32.mrb[17].mxu0  ;;  %v1826_v16 = vsub.f32 1.0, %v8027_v33 }
 0x29e   :  { %v1812_v0 = vadd.f32 %v1766_v2, %v8645_v19  ;;  %v1768_v32 = vpop.f32.mrb[18].mxu0  ;;  %v1842_v2 = vunpack.c.0.s8 %v1841_v62  ;;  %v10136_v62 = vld [vmem:[#allocation24_spill] sm:$0xff] }
 0x29f   :  { %v1815_v56 = vrot.slane %v1811_v14, 6  ;;  %v1769_v28 = vpop.f32.mrb[19].mxu0 }
 0x2a0   :  { %v1816_v52 = vrot.slane %v1812_v0, 6 }
 0x2a1   :  { %v1819_v49 = vmul.f32 %v8033_v43, %v1815_v56  ;;  %v8891_v56 = vsub.s32 %v1842_v2, %v8621_v41  ;;  %v10139_v2 = vld [vmem:[#allocation27_spill] sm:$0xff] }
 0x2a2   :  { %v1820_v48 = vmul.f32 %v8035_v29, %v1816_v52  ;;  %v8899_v29 = vld [vmem:[#allocation3 + $0x10] ss:$24 sps:$4 sm:$0xff]  }
 0x2a3   :  { %v1821_v55 = vadd.f32 %v1819_v49, %v1068_v53  ;;  %v8912_v49 = vld [vmem:[#allocation3 + $0x40] ss:$24 sps:$4 sm:$0xff]   ;;  %v8915_v53 = vld [vmem:[#allocation3 + $0x74] ss:$24 sps:$4 sm:$0xff]  }
 0x2a4   :  { %v1822_v36 = vadd.f32 %v1820_v48, %v1069_v60  ;;  %v8920_v48 = vld [vmem:[#allocation3 + $0x70] ss:$24 sps:$4 sm:$0xff]   ;;  %v8928_v60 = vld [vmem:[#allocation3 + $0xa0] ss:$24 sps:$4 sm:$0xff]  }
 0x2a5   :  { %8036 = vtanh.f32 %v1821_v55  ;;  %v8923_v55 = vld [vmem:[#allocation3 + $0xa4] ss:$24 sps:$4 sm:$0xff]  }
 0x2a6   :  { %8038 = vtanh.f32 %v1822_v36  ;;  %v10134_v36 = vld [vmem:[#allocation22_spill] sm:$0xff] }
 0x2af   :  { %v8037_v1 = vpop.eup %8036 }
 0x2b0   :  { %v8039_v32 = vpop.eup %8038  ;;  %v1827_v14 = vmul.f32 %v8037_v1, %v1825_v4  ;;  %v10137_v4 = vld [vmem:[#allocation25_spill] sm:$0xff]  ;;  %v10138_v1 = vld [vmem:[#allocation26_spill] sm:$0xff] }
 0x2b1   :  { %v1828_v28 = vmul.f32 %v8039_v32, %v1826_v16  ;;  %v10140_v32 = vld [vmem:[#allocation28_spill] sm:$0xff] }
 0x2b2   :  { %v8886_v19 = vadd.f32 %v1833_v25, %v1827_v14  ;;  %v10141_v14 = vld [vmem:[#allocation29_spill] sm:$0xff] }
 0x2b3   :  { %v8888_v0 = vadd.f32 %v1834_v44, %v1828_v28  ;;  %v8904_v44 = vld [vmem:[#allocation3 + $0x44] ss:$24 sps:$4 sm:$0xff]  }
 0x2b4   :  { %v1856_v43 = vpack.c.bf16 %v8886_v19, %v8886_v19  ;;  %v10142_v28 = vld [vmem:[#allocation30_spill] sm:$0xff] }
 0x2b5   :  { %v1857_v52 = vpack.c.bf16 %v8888_v0, %v8888_v0  ;;  %v1839_v37 = vcombine.low %v8886_v19, %v8888_v0 }
 0x2b6   :  { %v8902_v25 = vrot.slane %v1856_v43, 1  ;;  %v10143_v43 = vld [vmem:[#allocation31_spill] sm:$0xff] }
 0x2b7   :  { %v1957_v33 = vrot.slane %v1857_v52, 1  ;;  %v1846_v16 = vrot.slane %v1839_v37, %v8891_v56  ;;  %v10144_v52 = vld [vmem:[#allocation32_spill] sm:$0xff]  ;;  %v10145_v37 = vld [vmem:[#allocation33_spill] sm:$0xff] }
 0x2b9   :  { %2472 = vmatprep.mubr.bf16.mxu1 %v1957_v33  ;;  %2513 = vmatprep.mubr.bf16.mxu0 %v1957_v33  ;;  %v1847_v41 = vcombine.high %v1846_v16, %v1846_v16 }
 0x2ba   :  { %2473 = vmatmul.mubr.bf16.vlgmr.msra.gmra.mrb[16].mxu1 %v8902_v25  ;;  %2514 = vmatmul.mubr.bf16.vlgmr.msra.gmra.mrb[20].mxu0 %v8902_v25 }
 0x2bb   :  { %1849 = vst [vmem:[%s9974_s5 + $0x4] sm:$0xf] %v1847_v41  ;;  %2523 = vmatpush1.bf16.msra.mxu1 %v8899_v29  ;;  %2554 = vmatprep.mubr.bf16.mxu1 %v1957_v33 }
 0x2bc   :  { %2524 = vmatprep.subr.bf16.mxu1 %v8904_v44  ;;  %3232 = vmatpush1.bf16.msra.mxu0 %v8686_v57  ;;  %v8931_v57 = vld [vmem:[#allocation3 + $0xd4] ss:$24 sps:$4 sm:$0xff]  }
 0x2bd   :  { %3233 = vmatprep.subr.bf16.mxu0 %v8694_v61  ;;  %v8936_v61 = vld [vmem:[#allocation3 + $0xd0] ss:$24 sps:$4 sm:$0xff]  }
 0x2bf   :  { %2525 = vmatpush1.bf16.msra.mxu1 %v8912_v49 }
 0x2c0   :  { %2526 = vmatprep.subr.bf16.mxu1 %v8915_v53  ;;  %3234 = vmatpush1.bf16.msra.mxu0 %v8701_v15  ;;  %v8939_v15 = vld [vmem:[#allocation3 + $0x104] ss:$24 sps:$4 sm:$0xff]  }
 0x2c1   :  { %3235 = vmatprep.subr.bf16.mxu0 %v8707_v18  ;;  %v8944_v18 = vld [vmem:[#allocation3 + $0x100] ss:$24 sps:$4 sm:$0xff]  }
 0x2c3   :  { %2527 = vmatpush1.bf16.msra.mxu1 %v8920_v48 }
 0x2c4   :  { %2528 = vmatprep.subr.bf16.mxu1 %v8923_v55  ;;  %3236 = vmatpush1.bf16.msra.mxu0 %v8713_v22  ;;  %v8947_v22 = vld [vmem:[#allocation3 + $0x134] ss:$24 sps:$4 sm:$0xff]  }
 0x2c5   :  { %3237 = vmatprep.subr.bf16.mxu0 %v8719_v26  ;;  %v8952_v26 = vld [vmem:[#allocation3 + $0x130] ss:$24 sps:$4 sm:$0xff]  }
 0x2c7   :  { %2529 = vmatpush1.bf16.msra.mxu1 %v8928_v60 }
 0x2c8   :  { %2530 = vmatprep.subr.bf16.mxu1 %v8931_v57  ;;  %3238 = vmatpush1.bf16.msra.mxu0 %v8725_v30  ;;  %v8955_v30 = vld [vmem:[#allocation3 + $0x164] ss:$24 sps:$4 sm:$0xff]  }
 0x2c9   :  { %3239 = vmatprep.subr.bf16.mxu0 %v8731_v34  ;;  %v8960_v34 = vld [vmem:[#allocation3 + $0x160] ss:$24 sps:$4 sm:$0xff]  }
 0x2cb   :  { %2531 = vmatpush1.bf16.msra.mxu1 %v8936_v61 }
 0x2cc   :  { %2532 = vmatprep.subr.bf16.mxu1 %v8939_v15  ;;  %3240 = vmatpush1.bf16.msra.mxu0 %v8737_v38  ;;  %v8963_v38 = vld [vmem:[#allocation3 + $0x194] ss:$24 sps:$4 sm:$0xff]  }
 0x2cd   :  { %3241 = vmatprep.subr.bf16.mxu0 %v8743_v42  ;;  %v8968_v42 = vld [vmem:[#allocation3 + $0x190] ss:$24 sps:$4 sm:$0xff]  }
 0x2cf   :  { %2533 = vmatpush1.bf16.msra.mxu1 %v8944_v18 }
 0x2d0   :  { %2534 = vmatprep.subr.bf16.mxu1 %v8947_v22  ;;  %3242 = vmatpush1.bf16.msra.mxu0 %v8749_v46  ;;  %v8971_v46 = vld [vmem:[#allocation3 + $0x1c4] ss:$24 sps:$4 sm:$0xff]  }
 0x2d1   :  { %3243 = vmatprep.subr.bf16.mxu0 %v8755_v23  ;;  %v8976_v23 = vld [vmem:[#allocation3 + $0x1c0] ss:$24 sps:$4 sm:$0xff]  }
 0x2d3   :  { %2535 = vmatpush1.bf16.msra.mxu1 %v8952_v26 }
 0x2d4   :  { %2536 = vmatprep.subr.bf16.mxu1 %v8955_v30  ;;  %3244 = vmatpush1.bf16.msra.mxu0 %v8761_v27  ;;  %v8979_v27 = vld [vmem:[#allocation3 + $0x1f4] ss:$24 sps:$4 sm:$0xff]  }
 0x2d5   :  { %3245 = vmatprep.subr.bf16.mxu0 %v8767_v31  ;;  %v8984_v31 = vld [vmem:[#allocation3 + $0x1f0] ss:$24 sps:$4 sm:$0xff]  }
 0x2d7   :  { %2537 = vmatpush1.bf16.msra.mxu1 %v8960_v34 }
 0x2d8   :  { %2538 = vmatprep.subr.bf16.mxu1 %v8963_v38  ;;  %3246 = vmatpush1.bf16.msra.mxu0 %v8773_v35  ;;  %v8987_v35 = vld [vmem:[#allocation3 + $0x224] ss:$24 sps:$4 sm:$0xff]  }
 0x2d9   :  { %3247 = vmatprep.subr.bf16.mxu0 %v8779_v39  ;;  %v8992_v39 = vld [vmem:[#allocation3 + $0x220] ss:$24 sps:$4 sm:$0xff]  }
 0x2db   :  { %2539 = vmatpush1.bf16.msra.mxu1 %v8968_v42 }
 0x2dc   :  { %2540 = vmatprep.subr.bf16.mxu1 %v8971_v46  ;;  %3248 = vmatpush1.bf16.msra.mxu0 %v8785_v45  ;;  %v8995_v45 = vld [vmem:[#allocation3 + $0x254] ss:$24 sps:$4 sm:$0xff]  }
 0x2dd   :  { %3249 = vmatprep.subr.bf16.mxu0 %v8794_v51  ;;  %v9000_v51 = vld [vmem:[#allocation3 + $0x250] ss:$24 sps:$4 sm:$0xff]  }
 0x2df   :  { %2541 = vmatpush1.bf16.msra.mxu1 %v8976_v23 }
 0x2e0   :  { %2542 = vmatprep.subr.bf16.mxu1 %v8979_v27  ;;  %3250 = vmatpush1.bf16.msra.mxu0 %v8796_v50  ;;  %v9003_v50 = vld [vmem:[#allocation3 + $0x284] ss:$24 sps:$4 sm:$0xff]  }
 0x2e1   :  { %3251 = vmatprep.subr.bf16.mxu0 %v8806_v47  ;;  %v9008_v47 = vld [vmem:[#allocation3 + $0x280] ss:$24 sps:$4 sm:$0xff]  }
 0x2e3   :  { %2543 = vmatpush1.bf16.msra.mxu1 %v8984_v31 }
 0x2e4   :  { %2544 = vmatprep.subr.bf16.mxu1 %v8987_v35  ;;  %3252 = vmatpush1.bf16.msra.mxu0 %v8808_v54  ;;  %v9011_v54 = vld [vmem:[#allocation3 + $0x2b4] ss:$24 sps:$4 sm:$0xff]  }
 0x2e5   :  { %3253 = vmatprep.subr.bf16.mxu0 %v8818_v58  ;;  %v9016_v58 = vld [vmem:[#allocation3 + $0x2b0] ss:$24 sps:$4 sm:$0xff]  }
 0x2e7   :  { %2545 = vmatpush1.bf16.msra.mxu1 %v8992_v39 }
 0x2e8   :  { %2546 = vmatprep.subr.bf16.mxu1 %v8995_v45  ;;  %3254 = vmatpush1.bf16.msra.mxu0 %v8820_v59  ;;  %v9019_v59 = vld [vmem:[#allocation3 + $0x2e4] ss:$24 sps:$4 sm:$0xff]  }
 0x2e9   :  { %3255 = vmatprep.subr.bf16.mxu0 %v8827_v63  ;;  %v9024_v63 = vld [vmem:[#allocation3 + $0x2e0] ss:$24 sps:$4 sm:$0xff]  }
 0x2eb   :  { %2547 = vmatpush1.bf16.msra.mxu1 %v9000_v51 }
 0x2ec   :  { %2548 = vmatprep.subr.bf16.mxu1 %v9003_v50  ;;  %3256 = vmatpush1.bf16.msra.mxu0 %v8831_v3  ;;  %v10120_v3 = vld [vmem:[#allocation8_spill] sm:$0xff] }
 0x2ed   :  { %3257 = vmatprep.subr.bf16.mxu0 %v8839_v7  ;;  %v10123_v7 = vld [vmem:[#allocation11_spill] sm:$0xff] }
 0x2ef   :  { %2549 = vmatpush1.bf16.msra.mxu1 %v9008_v47 }
 0x2f0   :  { %2550 = vmatprep.subr.bf16.mxu1 %v9011_v54  ;;  %3258 = vmatpush1.bf16.msra.mxu0 %v8845_v9  ;;  %v10125_v9 = vld [vmem:[#allocation13_spill] sm:$0xff] }
 0x2f1   :  { %3259 = vmatprep.subr.bf16.mxu0 %v8851_v11  ;;  %v10132_v11 = vld [vmem:[#allocation20_spill] sm:$0xff] }
 0x2f3   :  { %2551 = vmatpush1.bf16.msra.mxu1 %v9016_v58 }
 0x2f4   :  { %2552 = vmatprep.subr.bf16.mxu1 %v9019_v59  ;;  %3260 = vmatpush1.bf16.msra.mxu0 %v8857_v21  ;;  %v10133_v21 = vld [vmem:[#allocation21_spill] sm:$0xff] }
 0x2f5   :  { %3261 = vmatprep.subr.bf16.mxu0 %v8863_v5  ;;  %v10121_v5 = vld [vmem:[#allocation9_spill] sm:$0xff] }
 0x2f7   :  { %2553 = vmatpush1.bf16.msra.mxu1 %v9024_v63 }
 0x2f8   :  { %3272 = vmatprep.subr.bf16.mxu1 %v8692_v13  ;;  %3262 = vmatpush1.bf16.msra.mxu0 %v8869_v8  ;;  %v10122_v13 = vld [vmem:[#allocation10_spill] sm:$0xff]  ;;  %v10124_v8 = vld [vmem:[#allocation12_spill] sm:$0xff] }
 0x2f9   :  { %3313 = vmatprep.subr.bf16.mxu0 %v8878_v10  ;;  %v10131_v10 = vld [vmem:[#allocation19_spill] sm:$0xff] }
 0x2fa   :  { %2555 = vmatmul.mubr.bf16.vlgmr.msra.gmra.mrb[20].mxu1 %v8902_v25 }
 0x2fb   :  { %3273 = vmatpush1.bf16.msra.mxu1 %v8690_v6  ;;  %v10126_v6 = vld [vmem:[#allocation14_spill] sm:$0xff] }
 0x2fc   :  { %3274 = vmatprep.subr.bf16.mxu1 %v8697_v12  ;;  %v10127_v12 = vld [vmem:[#allocation15_spill] sm:$0xff] }
 0x2ff   :  { %3275 = vmatpush1.bf16.msra.mxu1 %v8705_v17  ;;  %v10128_v17 = vld [vmem:[#allocation16_spill] sm:$0xff] }
 0x300   :  { %3276 = vmatprep.subr.bf16.mxu1 %v8710_v20  ;;  %v10129_v20 = vld [vmem:[#allocation17_spill] sm:$0xff] }
 0x303   :  { %3277 = vmatpush1.bf16.msra.mxu1 %v8717_v24  ;;  %v10130_v24 = vld [vmem:[#allocation18_spill] sm:$0xff] }
 0x304   :  { %3278 = vmatprep.subr.bf16.mxu1 %v10120_v3 }
 0x307   :  { %3279 = vmatpush1.bf16.msra.mxu1 %v10121_v5  ;;  %v1852_v5 = vld [vmem:[#allocation2 + $0x10] sm:$0x30] }
 0x308   :  { %3280 = vmatprep.subr.bf16.mxu1 %v10122_v13 }
 0x30b   :  { %3281 = vmatpush1.bf16.msra.mxu1 %v10123_v7 }
 0x30c   :  { %3282 = vmatprep.subr.bf16.mxu1 %v10124_v8 }
 0x30f   :  { %3283 = vmatpush1.bf16.msra.mxu1 %v10125_v9 }
 0x310   :  { %3284 = vmatprep.subr.bf16.mxu1 %v10126_v6  ;;  %v1853_v6 = vld [vmem:[#allocation2 + $0x18] sm:$0x30] }
 0x313   :  { %3285 = vmatpush1.bf16.msra.mxu1 %v10127_v12 }
 0x314   :  { %3286 = vmatprep.subr.bf16.mxu1 %v10128_v17 }
 0x317   :  { %3287 = vmatpush1.bf16.msra.mxu1 %v10129_v20 }
 0x318   :  { %3288 = vmatprep.subr.bf16.mxu1 %v10130_v24 }
 0x31b   :  { %3289 = vmatpush1.bf16.msra.mxu1 %v10131_v10 }
 0x31c   :  { %3290 = vmatprep.subr.bf16.mxu1 %v10132_v11 }
 0x31f   :  { %3291 = vmatpush1.bf16.msra.mxu1 %v10133_v21 }
 0x320   :  { %3292 = vmatprep.subr.bf16.mxu1 %v10134_v36 }
 0x323   :  { %3293 = vmatpush1.bf16.msra.mxu1 %v10135_v40 }
 0x324   :  { %3294 = vmatprep.subr.bf16.mxu1 %v10136_v62 }
 0x327   :  { %3295 = vmatpush1.bf16.msra.mxu1 %v10137_v4 }
 0x328   :  { %3296 = vmatprep.subr.bf16.mxu1 %v10138_v1  ;;  %v2621_v1 = vrot.slane %v8886_v19, 6 }
 0x32b   :  { %3297 = vmatpush1.bf16.msra.mxu1 %v10139_v2 }
 0x32c   :  { %3298 = vmatprep.subr.bf16.mxu1 %v10140_v32  ;;  %v1850_v32 = vld [vmem:[#allocation2] sm:$0x30] }
 0x32f   :  { %3299 = vmatpush1.bf16.msra.mxu1 %v10141_v14  ;;  %v2622_v14 = vrot.slane %v8888_v0, 6 }
 0x330   :  { %3300 = vmatprep.subr.bf16.mxu1 %v10142_v28 }
 0x333   :  { %3301 = vmatpush1.bf16.msra.mxu1 %v10143_v43 }
 0x334   :  { %3302 = vmatprep.subr.bf16.mxu1 %v10144_v52 }
 0x337   :  { %3303 = vmatpush1.bf16.msra.mxu1 %v10145_v37  ;;  %v1851_v37 = vld [vmem:[#allocation2 + $0x8] sm:$0x30] }
 0x38d   :  { %v2474_v33 = vpop.f32.mrb[16].mxu1  ;;  %v2515_v16 = vpop.f32.mrb[20].mxu0 }
 0x38e   :  { %v2585_v25 = vrot.slane %v2515_v16, 4  ;;  %v2476_v41 = vpop.f32.mrb[17].mxu1  ;;  %v2517_v3 = vpop.f32.mrb[21].mxu0  ;;  %v2565_v62 = vrot.slane %v2474_v33, 4 }
 0x38f   :  { %v2586_v13 = vrot.slane %v2517_v3, 4  ;;  %v2478_v7 = vpop.f32.mrb[18].mxu1  ;;  %v2519_v8 = vpop.f32.mrb[22].mxu0  ;;  %v2566_v4 = vrot.slane %v2476_v41, 4 }
 0x390   :  { %v2589_v9 = vadd.f32 %v2585_v25, %v1852_v5  ;;  %v2479_v12 = vpop.f32.mrb[19].mxu1  ;;  %v2520_v17 = vpop.f32.mrb[23].mxu0  ;;  %v2569_v52 = vadd.f32 %v2565_v62, %v1850_v32  ;;  %v10146_v8 = vld [vmem:[#allocation6_spill] sm:$0xff] }
 0x391   :  { %v2590_v20 = vadd.f32 %v2586_v13, %v1853_v6  ;;  %v2570_v16 = vadd.f32 %v2566_v4, %v1851_v37  ;;  %v10147_v6 = vld [vmem:[#allocation7_spill] sm:$0xff] }
 0x392   :  { %v6895_v24 = vmul.f32 -1.442695, %v2589_v9  ;;  %v6893_v3 = vmul.f32 -1.442695, %v2569_v52 }
 0x393   :  { %v6896_v10 = vmul.f32 -1.442695, %v2590_v20  ;;  %v6894_v5 = vmul.f32 -1.442695, %v2570_v16 }
 0x394   :  { %8040 = vpow2.f32 %v6895_v24 }
 0x395   :  { %8042 = vpow2.f32 %v6896_v10 }
 0x39e   :  { %v8041_v11 = vpop.eup %8040 }
 0x39f   :  { %v2597_v21 = vadd.f32 1.0, %v8041_v11  ;;  %v8043_v36 = vpop.eup %8042 }
 0x3a0   :  { %v2598_v40 = vadd.f32 1.0, %v8043_v36 }
 0x3a1   :  { %8044 = vrcp.f32 %v2597_v21 }
 0x3a2   :  { %8046 = vrcp.f32 %v2598_v40  ;;  %v1854_v40 = vld [vmem:[#allocation2 + $0x20] sm:$0x30] }
 0x3a3   :  { %8048 = vpow2.f32 %v6893_v3 }
 0x3a4   :  { %8050 = vpow2.f32 %v6894_v5 }
 0x3ab   :  { %v8045_v2 = vpop.eup %8044 }
 0x3ac   :  { %v2625_v28 = vmul.f32 %v8045_v2, %v2621_v1  ;;  %v8047_v43 = vpop.eup %8046  ;;  %v1855_v1 = vld [vmem:[#allocation2 + $0x28] sm:$0x30] }
 0x3ad   :  { %v2626_v25 = vmul.f32 %v8047_v43, %v2622_v14  ;;  %v8049_v13 = vpop.eup %8048  ;;  %v2617_v14 = vsub.f32 1.0, %v8045_v2  ;;  %v2618_v37 = vsub.f32 1.0, %v8047_v43  ;;  %v9206_v43 = vld [vmem:[#allocation3 + $0x184] ss:$24 sps:$4 sm:$0xff]  }
 0x3ae   :  { %v8051_v7 = vpop.eup %8050  ;;  %v2577_v33 = vadd.f32 1.0, %v8049_v13 }
 0x3af   :  { %v2578_v41 = vadd.f32 1.0, %v8051_v7 }
 0x3b0   :  { %8052 = vrcp.f32 %v2577_v33 }
 0x3b1   :  { %8054 = vrcp.f32 %v2578_v41 }
 0x3ba   :  { %v8053_v10 = vpop.eup %8052 }
 0x3bb   :  { %v8055_v21 = vpop.eup %8054 }
 0x3cd   :  { %v2556_v19 = vpop.f32.mrb[20].mxu1 }
 0x3ce   :  { %v2603_v9 = vadd.f32 %v2556_v19, %v10146_v8  ;;  %v2558_v0 = vpop.f32.mrb[21].mxu1 }
 0x3cf   :  { %v2604_v12 = vadd.f32 %v2558_v0, %v10147_v6  ;;  %v2560_v17 = vpop.f32.mrb[22].mxu1  ;;  %v9212_v0 = vld [vmem:[#allocation3 + $0x180] ss:$24 sps:$4 sm:$0xff]  }
 0x3d0   :  { %v2607_v20 = vrot.slane %v2603_v9, 4  ;;  %v2561_v24 = vpop.f32.mrb[23].mxu1  ;;  %v9221_v17 = vld [vmem:[#allocation3 + $0x1b4] ss:$24 sps:$4 sm:$0xff]  }
 0x3d1   :  { %v2608_v11 = vrot.slane %v2604_v12, 4  ;;  %v9216_v12 = vld [vmem:[#allocation3 + $0x188] ss:$24 sps:$4 sm:$0xff]   ;;  %v9225_v24 = vld [vmem:[#allocation3 + $0x1bc] ss:$24 sps:$4 sm:$0xff]  }
 0x3d2   :  { %v2611_v36 = vmul.f32 %v8053_v10, %v2607_v20  ;;  %10159 = vst [vmem:[#allocation19_spill] sm:$0xff] %v9216_v12  ;;  %v9223_v20 = vld [vmem:[#allocation3 + $0x1b0] ss:$24 sps:$4 sm:$0xff]   ;;  %10160 = vst [vmem:[#allocation20_spill] sm:$0xff] %v9225_v24 }
 0x3d3   :  { %v2612_v62 = vmul.f32 %v8055_v21, %v2608_v11  ;;  %v9228_v10 = vld [vmem:[#allocation3 + $0x1b8] ss:$24 sps:$4 sm:$0xff]   ;;  %v9233_v11 = vld [vmem:[#allocation3 + $0x1e4] ss:$24 sps:$4 sm:$0xff]  }
 0x3d4   :  { %v2613_v4 = vadd.f32 %v2611_v36, %v1854_v40  ;;  %10161 = vst [vmem:[#allocation21_spill] sm:$0xff] %v9228_v10  ;;  %v9235_v21 = vld [vmem:[#allocation3 + $0x1e0] ss:$24 sps:$4 sm:$0xff]   ;;  %v9237_v36 = vld [vmem:[#allocation3 + $0x1ec] ss:$24 sps:$4 sm:$0xff]  }
 0x3d5   :  { %v2614_v32 = vadd.f32 %v2612_v62, %v1855_v1  ;;  %10162 = vst [vmem:[#allocation22_spill] sm:$0xff] %v9237_v36  ;;  %v9240_v40 = vld [vmem:[#allocation3 + $0x1e8] ss:$24 sps:$4 sm:$0xff]   ;;  %v9245_v62 = vld [vmem:[#allocation3 + $0x214] ss:$24 sps:$4 sm:$0xff]  }
 0x3d6   :  { %8056 = vtanh.f32 %v2613_v4  ;;  %10163 = vst [vmem:[#allocation23_spill] sm:$0xff] %v9240_v40  ;;  %v9247_v4 = vld [vmem:[#allocation3 + $0x210] ss:$24 sps:$4 sm:$0xff]   ;;  %v9249_v1 = vld [vmem:[#allocation3 + $0x21c] ss:$24 sps:$4 sm:$0xff]  }
 0x3d7   :  { %8058 = vtanh.f32 %v2614_v32  ;;  %10164 = vst [vmem:[#allocation24_spill] sm:$0xff] %v9249_v1  ;;  %v9252_v32 = vld [vmem:[#allocation3 + $0x218] ss:$24 sps:$4 sm:$0xff]  }
 0x3d8   :  { %10165 = vst [vmem:[#allocation25_spill] sm:$0xff] %v9252_v32 }
 0x3e0   :  { %v8057_v52 = vpop.eup %8056 }
 0x3e1   :  { %v8059_v16 = vpop.eup %8058  ;;  %v2619_v3 = vmul.f32 %v8057_v52, %v2617_v14  ;;  %v9254_v14 = vld [vmem:[#allocation3 + $0x244] ss:$24 sps:$4 sm:$0xff]   ;;  %v9258_v52 = vld [vmem:[#allocation3 + $0x240] ss:$24 sps:$4 sm:$0xff]  }
 0x3e2   :  { %v2620_v5 = vmul.f32 %v8059_v16, %v2618_v37  ;;  %v9260_v37 = vld [vmem:[#allocation3 + $0x24c] ss:$24 sps:$4 sm:$0xff]   ;;  %v9264_v16 = vld [vmem:[#allocation3 + $0x248] ss:$24 sps:$4 sm:$0xff]  }
 0x3e3   :  { %v9069_v13 = vadd.f32 %v2625_v28, %v2619_v3  ;;  %v9204_v28 = vld [vmem:[#allocation3 + $0x158] ss:$24 sps:$4 sm:$0xff]   ;;  %10166 = vst [vmem:[#allocation26_spill] sm:$0xff] %v9260_v37  ;;  %10167 = vst [vmem:[#allocation27_spill] sm:$0xff] %v9264_v16  ;;  %v9266_v3 = vld [vmem:[#allocation3 + $0x274] ss:$24 sps:$4 sm:$0xff]  }
 0x3e4   :  { %v9071_v7 = vadd.f32 %v2626_v25, %v2620_v5  ;;  %10157 = vst [vmem:[#allocation17_spill] sm:$0xff] %v9204_v28  ;;  %v9209_v25 = vld [vmem:[#allocation3 + $0x18c] ss:$24 sps:$4 sm:$0xff]   ;;  %v9269_v5 = vld [vmem:[#allocation3 + $0x27c] ss:$24 sps:$4 sm:$0xff]  }
 0x3e5   :  { %v2647_v33 = vpack.c.bf16 %v9069_v13, %v9069_v13  ;;  %10158 = vst [vmem:[#allocation18_spill] sm:$0xff] %v9209_v25  ;;  %10168 = vst [vmem:[#allocation28_spill] sm:$0xff] %v9269_v5 }
 0x3e6   :  { %v2648_v41 = vpack.c.bf16 %v9071_v7, %v9071_v7  ;;  %v2631_v19 = vcombine.high %v9069_v13, %v9071_v7 }
 0x3e7   :  { %v2747_v2 = vrot.slane %v2647_v33, 2  ;;  %v9272_v33 = vld [vmem:[#allocation3 + $0x270] ss:$24 sps:$4 sm:$0xff]  }
 0x3e8   :  { %v2748_v9 = vrot.slane %v2648_v41, 2  ;;  %6897 = vst.sshfl [vmem:[%s9974_s5 + $0x8] sm:$0x33 pattern:$0x76325410] %v2631_v19 }
 0x3e9   :  { %v9276_v41 = vld [vmem:[#allocation3 + $0x278] ss:$24 sps:$4 sm:$0xff]   ;;  %v9278_v19 = vld [vmem:[#allocation3 + $0x2a4] ss:$24 sps:$4 sm:$0xff]  }
 0x3ea   :  { %3263 = vmatprep.mubr.bf16.mxu0 %v2748_v9  ;;  %3304 = vmatprep.mubr.bf16.mxu1 %v2748_v9  ;;  %10169 = vst [vmem:[#allocation29_spill] sm:$0xff] %v9276_v41 }
 0x3eb   :  { %3264 = vmatmul.mubr.bf16.vlgmr.msra.gmra.mrb[24].mxu0 %v2747_v2  ;;  %3305 = vmatmul.mubr.bf16.vlgmr.msra.gmra.mrb[24].mxu1 %v2747_v2 }
 0x3ec   :  { %3314 = vmatpush1.bf16.msra.mxu0 %v8899_v29  ;;  %3345 = vmatprep.mubr.bf16.mxu0 %v2748_v9  ;;  %v9113_v29 = vld [vmem:[#allocation3] ss:$24 sps:$4 sm:$0xff]   ;;  %v9281_v9 = vld [vmem:[#allocation3 + $0x2ac] ss:$24 sps:$4 sm:$0xff]  }
 0x3ed   :  { %3315 = vmatprep.subr.bf16.mxu0 %v8904_v44  ;;  %v9115_v44 = vld [vmem:[#allocation3 + $0x4] ss:$24 sps:$4 sm:$0xff]   ;;  %10170 = vst [vmem:[#allocation30_spill] sm:$0xff] %v9281_v9 }
 0x3ee   :  { %4023 = vmatprep.subr.bf16.mxu1 %v9115_v44 }
 0x3ef   :  { %4024 = vmatpush1.bf16.msra.mxu1 %v9113_v29 }
 0x3f0   :  { %3316 = vmatpush1.bf16.msra.mxu0 %v8912_v49  ;;  %v9117_v49 = vld [vmem:[#allocation3 + $0x8] ss:$24 sps:$4 sm:$0xff]  }
 0x3f1   :  { %3317 = vmatprep.subr.bf16.mxu0 %v8915_v53  ;;  %v9119_v53 = vld [vmem:[#allocation3 + $0xc] ss:$24 sps:$4 sm:$0xff]  }
 0x3f4   :  { %3318 = vmatpush1.bf16.msra.mxu0 %v8920_v48  ;;  %v9121_v48 = vld [vmem:[#allocation3 + $0x34] ss:$24 sps:$4 sm:$0xff]  }
 0x3f5   :  { %3319 = vmatprep.subr.bf16.mxu0 %v8923_v55  ;;  %v9124_v55 = vld [vmem:[#allocation3 + $0x3c] ss:$24 sps:$4 sm:$0xff]   ;;  %4025 = vmatprep.subr.bf16.mxu1 %v9121_v48 }
 0x3f8   :  { %3320 = vmatpush1.bf16.msra.mxu0 %v8928_v60  ;;  %v9128_v60 = vld [vmem:[#allocation3 + $0x30] ss:$24 sps:$4 sm:$0xff]  }
 0x3f9   :  { %3321 = vmatprep.subr.bf16.mxu0 %v8931_v57  ;;  %v9132_v57 = vld [vmem:[#allocation3 + $0x38] ss:$24 sps:$4 sm:$0xff]   ;;  %4026 = vmatpush1.bf16.msra.mxu1 %v9128_v60 }
 0x3fc   :  { %3322 = vmatpush1.bf16.msra.mxu0 %v8936_v61  ;;  %v9134_v61 = vld [vmem:[#allocation3 + $0x64] ss:$24 sps:$4 sm:$0xff]  }
 0x3fd   :  { %3323 = vmatprep.subr.bf16.mxu0 %v8939_v15  ;;  %v9137_v15 = vld [vmem:[#allocation3 + $0x6c] ss:$24 sps:$4 sm:$0xff]   ;;  %4027 = vmatprep.subr.bf16.mxu1 %v9134_v61 }
 0x400   :  { %3324 = vmatpush1.bf16.msra.mxu0 %v8944_v18  ;;  %v9140_v18 = vld [vmem:[#allocation3 + $0x60] ss:$24 sps:$4 sm:$0xff]  }
 0x401   :  { %3325 = vmatprep.subr.bf16.mxu0 %v8947_v22  ;;  %v9144_v22 = vld [vmem:[#allocation3 + $0x68] ss:$24 sps:$4 sm:$0xff]   ;;  %4028 = vmatpush1.bf16.msra.mxu1 %v9140_v18 }
 0x404   :  { %3326 = vmatpush1.bf16.msra.mxu0 %v8952_v26  ;;  %v9146_v26 = vld [vmem:[#allocation3 + $0x94] ss:$24 sps:$4 sm:$0xff]  }
 0x405   :  { %3327 = vmatprep.subr.bf16.mxu0 %v8955_v30  ;;  %v9149_v30 = vld [vmem:[#allocation3 + $0x9c] ss:$24 sps:$4 sm:$0xff]   ;;  %4029 = vmatprep.subr.bf16.mxu1 %v9146_v26 }
 0x406   :  { %10148 = vst [vmem:[#allocation8_spill] sm:$0xff] %v9149_v30 }
 0x408   :  { %3328 = vmatpush1.bf16.msra.mxu0 %v8960_v34  ;;  %v9152_v34 = vld [vmem:[#allocation3 + $0x90] ss:$24 sps:$4 sm:$0xff]  }
 0x409   :  { %3329 = vmatprep.subr.bf16.mxu0 %v8963_v38  ;;  %v9156_v38 = vld [vmem:[#allocation3 + $0x98] ss:$24 sps:$4 sm:$0xff]   ;;  %4030 = vmatpush1.bf16.msra.mxu1 %v9152_v34 }
 0x40a   :  { %10149 = vst [vmem:[#allocation9_spill] sm:$0xff] %v9156_v38 }
 0x40c   :  { %3330 = vmatpush1.bf16.msra.mxu0 %v8968_v42  ;;  %v9158_v42 = vld [vmem:[#allocation3 + $0xc4] ss:$24 sps:$4 sm:$0xff]  }
 0x40d   :  { %3331 = vmatprep.subr.bf16.mxu0 %v8971_v46  ;;  %v9161_v46 = vld [vmem:[#allocation3 + $0xcc] ss:$24 sps:$4 sm:$0xff]   ;;  %4031 = vmatprep.subr.bf16.mxu1 %v9158_v42 }
 0x40e   :  { %10150 = vst [vmem:[#allocation10_spill] sm:$0xff] %v9161_v46 }
 0x410   :  { %3332 = vmatpush1.bf16.msra.mxu0 %v8976_v23  ;;  %v9164_v23 = vld [vmem:[#allocation3 + $0xc0] ss:$24 sps:$4 sm:$0xff]  }
 0x411   :  { %3333 = vmatprep.subr.bf16.mxu0 %v8979_v27  ;;  %v9168_v27 = vld [vmem:[#allocation3 + $0xc8] ss:$24 sps:$4 sm:$0xff]   ;;  %4032 = vmatpush1.bf16.msra.mxu1 %v9164_v23 }
 0x412   :  { %10151 = vst [vmem:[#allocation11_spill] sm:$0xff] %v9168_v27 }
 0x414   :  { %3334 = vmatpush1.bf16.msra.mxu0 %v8984_v31  ;;  %v9170_v31 = vld [vmem:[#allocation3 + $0xf4] ss:$24 sps:$4 sm:$0xff]  }
 0x415   :  { %3335 = vmatprep.subr.bf16.mxu0 %v8987_v35  ;;  %v9173_v35 = vld [vmem:[#allocation3 + $0xfc] ss:$24 sps:$4 sm:$0xff]   ;;  %4033 = vmatprep.subr.bf16.mxu1 %v9170_v31 }
 0x416   :  { %10152 = vst [vmem:[#allocation12_spill] sm:$0xff] %v9173_v35 }
 0x418   :  { %3336 = vmatpush1.bf16.msra.mxu0 %v8992_v39  ;;  %v9176_v39 = vld [vmem:[#allocation3 + $0xf0] ss:$24 sps:$4 sm:$0xff]  }
 0x419   :  { %3337 = vmatprep.subr.bf16.mxu0 %v8995_v45  ;;  %v9180_v45 = vld [vmem:[#allocation3 + $0xf8] ss:$24 sps:$4 sm:$0xff]   ;;  %4034 = vmatpush1.bf16.msra.mxu1 %v9176_v39 }
 0x41a   :  { %10153 = vst [vmem:[#allocation13_spill] sm:$0xff] %v9180_v45 }
 0x41c   :  { %3338 = vmatpush1.bf16.msra.mxu0 %v9000_v51  ;;  %v9182_v51 = vld [vmem:[#allocation3 + $0x124] ss:$24 sps:$4 sm:$0xff]  }
 0x41d   :  { %3339 = vmatprep.subr.bf16.mxu0 %v9003_v50  ;;  %v9185_v50 = vld [vmem:[#allocation3 + $0x12c] ss:$24 sps:$4 sm:$0xff]   ;;  %4035 = vmatprep.subr.bf16.mxu1 %v9182_v51 }
 0x41e   :  { %10154 = vst [vmem:[#allocation14_spill] sm:$0xff] %v9185_v50 }
 0x420   :  { %3340 = vmatpush1.bf16.msra.mxu0 %v9008_v47  ;;  %v9188_v47 = vld [vmem:[#allocation3 + $0x120] ss:$24 sps:$4 sm:$0xff]  }
 0x421   :  { %3341 = vmatprep.subr.bf16.mxu0 %v9011_v54  ;;  %v9192_v54 = vld [vmem:[#allocation3 + $0x128] ss:$24 sps:$4 sm:$0xff]   ;;  %4036 = vmatpush1.bf16.msra.mxu1 %v9188_v47 }
 0x422   :  { %10155 = vst [vmem:[#allocation15_spill] sm:$0xff] %v9192_v54 }
 0x424   :  { %3342 = vmatpush1.bf16.msra.mxu0 %v9016_v58  ;;  %v9194_v58 = vld [vmem:[#allocation3 + $0x154] ss:$24 sps:$4 sm:$0xff]  }
 0x425   :  { %3343 = vmatprep.subr.bf16.mxu0 %v9019_v59  ;;  %v9197_v59 = vld [vmem:[#allocation3 + $0x15c] ss:$24 sps:$4 sm:$0xff]   ;;  %4037 = vmatprep.subr.bf16.mxu1 %v9194_v58 }
 0x426   :  { %10156 = vst [vmem:[#allocation16_spill] sm:$0xff] %v9197_v59 }
 0x428   :  { %3344 = vmatpush1.bf16.msra.mxu0 %v9024_v63  ;;  %v9200_v63 = vld [vmem:[#allocation3 + $0x150] ss:$24 sps:$4 sm:$0xff]  }
 0x429   :  { %4064 = vmatprep.subr.bf16.mxu0 %v9119_v53  ;;  %4038 = vmatpush1.bf16.msra.mxu1 %v9200_v63 }
 0x42a   :  { %4039 = vmatprep.subr.bf16.mxu1 %v9206_v43 }
 0x42b   :  { %3346 = vmatmul.mubr.bf16.vlgmr.msra.gmra.mrb[28].mxu0 %v2747_v2  ;;  %v9284_v2 = vld [vmem:[#allocation3 + $0x2a0] ss:$24 sps:$4 sm:$0xff]  }
 0x42c   :  { %4065 = vmatpush1.bf16.msra.mxu0 %v9117_v49 }
 0x42d   :  { %4066 = vmatprep.subr.bf16.mxu0 %v9124_v55  ;;  %4040 = vmatpush1.bf16.msra.mxu1 %v9212_v0 }
 0x42e   :  { %4041 = vmatprep.subr.bf16.mxu1 %v9221_v17 }
 0x430   :  { %4067 = vmatpush1.bf16.msra.mxu0 %v9132_v57 }
 0x431   :  { %4068 = vmatprep.subr.bf16.mxu0 %v9137_v15  ;;  %4042 = vmatpush1.bf16.msra.mxu1 %v9223_v20 }
 0x432   :  { %4043 = vmatprep.subr.bf16.mxu1 %v9233_v11 }
 0x434   :  { %4069 = vmatpush1.bf16.msra.mxu0 %v9144_v22 }
 0x435   :  { %4070 = vmatprep.subr.bf16.mxu0 %v9149_v30  ;;  %4044 = vmatpush1.bf16.msra.mxu1 %v9235_v21 }
 0x436   :  { %4045 = vmatprep.subr.bf16.mxu1 %v9245_v62 }
 0x438   :  { %4071 = vmatpush1.bf16.msra.mxu0 %v9156_v38 }
 0x439   :  { %4072 = vmatprep.subr.bf16.mxu0 %v9161_v46  ;;  %4046 = vmatpush1.bf16.msra.mxu1 %v9247_v4 }
 0x43a   :  { %4047 = vmatprep.subr.bf16.mxu1 %v9254_v14 }
 0x43c   :  { %4073 = vmatpush1.bf16.msra.mxu0 %v9168_v27 }
 0x43d   :  { %4074 = vmatprep.subr.bf16.mxu0 %v9173_v35  ;;  %4048 = vmatpush1.bf16.msra.mxu1 %v9258_v52 }
 0x43e   :  { %4049 = vmatprep.subr.bf16.mxu1 %v9266_v3 }
 0x440   :  { %4075 = vmatpush1.bf16.msra.mxu0 %v9180_v45 }
 0x441   :  { %4076 = vmatprep.subr.bf16.mxu0 %v9185_v50  ;;  %4050 = vmatpush1.bf16.msra.mxu1 %v9272_v33 }
 0x442   :  { %4051 = vmatprep.subr.bf16.mxu1 %v9278_v19 }
 0x444   :  { %4077 = vmatpush1.bf16.msra.mxu0 %v9192_v54 }
 0x445   :  { %4078 = vmatprep.subr.bf16.mxu0 %v9197_v59  ;;  %4052 = vmatpush1.bf16.msra.mxu1 %v9284_v2  ;;  %v2644_v59 = vld [vmem:[#allocation2 + $0x18] sm:$0xc0] }
 0x448   :  { %4079 = vmatpush1.bf16.msra.mxu0 %v9204_v28 }
 0x449   :  { %4080 = vmatprep.subr.bf16.mxu0 %v9209_v25 }
 0x44c   :  { %4081 = vmatpush1.bf16.msra.mxu0 %v9216_v12 }
 0x44d   :  { %4082 = vmatprep.subr.bf16.mxu0 %v9225_v24  ;;  %v2643_v24 = vld [vmem:[#allocation2 + $0x10] sm:$0xc0] }
 0x450   :  { %4083 = vmatpush1.bf16.msra.mxu0 %v9228_v10 }
 0x451   :  { %4084 = vmatprep.subr.bf16.mxu0 %v9237_v36 }
 0x454   :  { %4085 = vmatpush1.bf16.msra.mxu0 %v9240_v40 }
 0x455   :  { %4086 = vmatprep.subr.bf16.mxu0 %v9249_v1  ;;  %v9300_v1 = vld [vmem:[#allocation3 + $0x2d8] ss:$24 sps:$4 sm:$0xff]  }
 0x456   :  { %10173 = vst [vmem:[#allocation33_spill] sm:$0xff] %v9300_v1 }
 0x458   :  { %4087 = vmatpush1.bf16.msra.mxu0 %v9252_v32  ;;  %v9293_v32 = vld [vmem:[#allocation3 + $0x2dc] ss:$24 sps:$4 sm:$0xff]  }
 0x459   :  { %4088 = vmatprep.subr.bf16.mxu0 %v9260_v37  ;;  %v9288_v37 = vld [vmem:[#allocation3 + $0x2a8] ss:$24 sps:$4 sm:$0xff]   ;;  %10172 = vst [vmem:[#allocation32_spill] sm:$0xff] %v9293_v32 }
 0x45a   :  { %10171 = vst [vmem:[#allocation31_spill] sm:$0xff] %v9288_v37 }
 0x45c   :  { %4089 = vmatpush1.bf16.msra.mxu0 %v9264_v16  ;;  %v9290_v16 = vld [vmem:[#allocation3 + $0x2d4] ss:$24 sps:$4 sm:$0xff]  }
 0x45d   :  { %4090 = vmatprep.subr.bf16.mxu0 %v9269_v5  ;;  %v9296_v5 = vld [vmem:[#allocation3 + $0x2d0] ss:$24 sps:$4 sm:$0xff]   ;;  %4053 = vmatprep.subr.bf16.mxu1 %v9290_v16 }
 0x45e   :  { %4054 = vmatpush1.bf16.msra.mxu1 %v9296_v5 }
 0x460   :  { %4091 = vmatpush1.bf16.msra.mxu0 %v9276_v41  ;;  %v9305_v41 = vld [vmem:[#allocation3 + $0x14] ss:$24 sps:$4 sm:$0xff]  }
 0x461   :  { %4092 = vmatprep.subr.bf16.mxu0 %v9281_v9  ;;  %4105 = vmatprep.subr.bf16.mxu1 %v9305_v41 }
 0x464   :  { %4093 = vmatpush1.bf16.msra.mxu0 %v9288_v37 }
 0x465   :  { %4094 = vmatprep.subr.bf16.mxu0 %v9293_v32 }
 0x468   :  { %4095 = vmatpush1.bf16.msra.mxu0 %v9300_v1 }
 0x469   :  { %4790 = vmatprep.subr.bf16.mxu0 %v9115_v44 }
 0x4be   :  { %v3265_v9 = vpop.f32.mrb[24].mxu0  ;;  %v3306_v40 = vpop.f32.mrb[24].mxu1 }
 0x4bf   :  { %v3376_v36 = vrot.slane %v3306_v40, 2  ;;  %v3267_v37 = vpop.f32.mrb[25].mxu0  ;;  %v3308_v10 = vpop.f32.mrb[25].mxu1  ;;  %v3356_v38 = vrot.slane %v3265_v9, 2 }
 0x4c0   :  { %v3377_v12 = vrot.slane %v3308_v10, 2  ;;  %v3269_v25 = vpop.f32.mrb[26].mxu0  ;;  %v3310_v28 = vpop.f32.mrb[26].mxu1  ;;  %v3357_v30 = vrot.slane %v3267_v37, 2  ;;  %v2642_v10 = vld [vmem:[#allocation2 + $0x8] sm:$0xc0] }
 0x4c1   :  { %v3380_v32 = vadd.f32 %v3376_v36, %v2643_v24  ;;  %v3270_v54 = vpop.f32.mrb[27].mxu0  ;;  %v3311_v50 = vpop.f32.mrb[27].mxu1  ;;  %v3412_v25 = vrot.slane %v9069_v13, 6  ;;  %v2641_v24 = vld [vmem:[#allocation2] sm:$0xc0] }
 0x4c2   :  { %v3381_v1 = vadd.f32 %v3377_v12, %v2644_v59  ;;  %v3413_v54 = vrot.slane %v9071_v7, 6  ;;  %v3360_v12 = vadd.f32 %v3356_v38, %v2641_v24 }
 0x4c3   :  { %v6996_v45 = vmul.f32 -1.442695, %v3380_v32 }
 0x4c4   :  { %v6997_v35 = vmul.f32 -1.442695, %v3381_v1  ;;  %v6994_v36 = vmul.f32 -1.442695, %v3360_v12 }
 0x4c5   :  { %8060 = vpow2.f32 %v6996_v45  ;;  %v3361_v45 = vadd.f32 %v3357_v30, %v2642_v10  ;;  %v2645_v10 = vld [vmem:[#allocation2 + $0x20] sm:$0xc0] }
 0x4c6   :  { %8062 = vpow2.f32 %v6997_v35 }
 0x4c7   :  { %v6995_v1 = vmul.f32 -1.442695, %v3361_v45 }
 0x4cf   :  { %v8061_v44 = vpop.eup %8060 }
 0x4d0   :  { %v3388_v27 = vadd.f32 1.0, %v8061_v44  ;;  %v8063_v46 = vpop.eup %8062 }
 0x4d1   :  { %v3389_v40 = vadd.f32 1.0, %v8063_v46 }
 0x4d2   :  { %8064 = vrcp.f32 %v3388_v27 }
 0x4d3   :  { %8066 = vrcp.f32 %v3389_v40 }
 0x4d4   :  { %8068 = vpow2.f32 %v6994_v36 }
 0x4d5   :  { %8070 = vpow2.f32 %v6995_v1  ;;  %v2646_v1 = vld [vmem:[#allocation2 + $0x28] sm:$0xc0] }
 0x4dc   :  { %v8065_v28 = vpop.eup %8064 }
 0x4dd   :  { %v3416_v50 = vmul.f32 %v8065_v28, %v3412_v25  ;;  %v8067_v59 = vpop.eup %8066 }
 0x4de   :  { %v3417_v35 = vmul.f32 %v8067_v59, %v3413_v54  ;;  %v8069_v46 = vpop.eup %8068 }
 0x4df   :  { %v8071_v27 = vpop.eup %8070  ;;  %v3368_v32 = vadd.f32 1.0, %v8069_v46 }
 0x4e0   :  { %v3369_v37 = vadd.f32 1.0, %v8071_v27  ;;  %v3408_v27 = vsub.f32 1.0, %v8065_v28  ;;  %v9323_v28 = vld [vmem:[#allocation3 + $0x10] ss:$24 sps:$4 sm:$0xff]  }
 0x4e1   :  { %8072 = vrcp.f32 %v3368_v32 }
 0x4e2   :  { %8074 = vrcp.f32 %v3369_v37  ;;  %v3409_v37 = vsub.f32 1.0, %v8067_v59 }
 0x4eb   :  { %v8073_v25 = vpop.eup %8072 }
 0x4ec   :  { %v8075_v54 = vpop.eup %8074 }
 0x4fe   :  { %v3347_v13 = vpop.f32.mrb[28].mxu0 }
 0x4ff   :  { %v3394_v9 = vadd.f32 %v3347_v13, %v10146_v8  ;;  %v3349_v7 = vpop.f32.mrb[29].mxu0 }
 0x500   :  { %v3395_v44 = vadd.f32 %v3349_v7, %v10147_v6  ;;  %v3351_v38 = vpop.f32.mrb[30].mxu0 }
 0x501   :  { %v3398_v40 = vrot.slane %v3394_v9, 2  ;;  %v3352_v30 = vpop.f32.mrb[31].mxu0 }
 0x502   :  { %v3399_v24 = vrot.slane %v3395_v44, 2 }
 0x503   :  { %v3402_v12 = vmul.f32 %v8073_v25, %v3398_v40 }
 0x504   :  { %v3403_v45 = vmul.f32 %v8075_v54, %v3399_v24  ;;  %v9339_v54 = vld [vmem:[#allocation3 + $0x74] ss:$24 sps:$4 sm:$0xff]  }
 0x505   :  { %v3404_v36 = vadd.f32 %v3402_v12, %v2645_v10  ;;  %v9344_v12 = vld [vmem:[#allocation3 + $0x70] ss:$24 sps:$4 sm:$0xff]   ;;  %v9347_v10 = vld [vmem:[#allocation3 + $0xa4] ss:$24 sps:$4 sm:$0xff]  }
 0x506   :  { %v3405_v46 = vadd.f32 %v3403_v45, %v2646_v1  ;;  %v9352_v45 = vld [vmem:[#allocation3 + $0xa0] ss:$24 sps:$4 sm:$0xff]   ;;  %v10189_v1 = vld [vmem:[#allocation23_spill] sm:$0xff] }
 0x507   :  { %8076 = vtanh.f32 %v3404_v36  ;;  %v10188_v36 = vld [vmem:[#allocation22_spill] sm:$0xff] }
 0x508   :  { %8078 = vtanh.f32 %v3405_v46  ;;  %v10190_v46 = vld [vmem:[#allocation24_spill] sm:$0xff] }
 0x511   :  { %v8077_v32 = vpop.eup %8076 }
 0x512   :  { %v8079_v13 = vpop.eup %8078  ;;  %v3410_v8 = vmul.f32 %v8077_v32, %v3408_v27  ;;  %v10191_v27 = vld [vmem:[#allocation25_spill] sm:$0xff]  ;;  %v10192_v32 = vld [vmem:[#allocation26_spill] sm:$0xff] }
 0x513   :  { %v3411_v7 = vmul.f32 %v8079_v13, %v3409_v37  ;;  %v10193_v37 = vld [vmem:[#allocation27_spill] sm:$0xff]  ;;  %v10194_v13 = vld [vmem:[#allocation28_spill] sm:$0xff] }
 0x514   :  { %v9313_v38 = vadd.f32 %v3416_v50, %v3410_v8  ;;  %v9328_v8 = vld [vmem:[#allocation3 + $0x44] ss:$24 sps:$4 sm:$0xff]  }
 0x515   :  { %v9315_v9 = vadd.f32 %v3417_v35, %v3411_v7  ;;  %v9336_v35 = vld [vmem:[#allocation3 + $0x40] ss:$24 sps:$4 sm:$0xff]  }
 0x516   :  { %v3439_v44 = vpack.c.bf16 %v9313_v38, %v9313_v38  ;;  %v10195_v7 = vld [vmem:[#allocation29_spill] sm:$0xff] }
 0x517   :  { %v3440_v40 = vpack.c.bf16 %v9315_v9, %v9315_v9  ;;  %v3422_v30 = vcombine.high %v9313_v38, %v9315_v9 }
 0x518   :  { %v9326_v24 = vrot.slane %v3439_v44, 3  ;;  %v10196_v44 = vld [vmem:[#allocation30_spill] sm:$0xff] }
 0x519   :  { %v3540_v25 = vrot.slane %v3440_v40, 3  ;;  %v3429_v59 = vrot.slane %v3422_v30, %v8891_v56  ;;  %v10197_v40 = vld [vmem:[#allocation31_spill] sm:$0xff]  ;;  %v10198_v30 = vld [vmem:[#allocation32_spill] sm:$0xff] }
 0x51b   :  { %4055 = vmatprep.mubr.bf16.mxu1 %v3540_v25  ;;  %4096 = vmatprep.mubr.bf16.mxu0 %v3540_v25  ;;  %v3430_v50 = vcombine.high %v3429_v59, %v3429_v59 }
 0x51c   :  { %4056 = vmatmul.mubr.bf16.vlgmr.msra.gmra.mrb[28].mxu1 %v9326_v24  ;;  %4097 = vmatmul.mubr.bf16.vlgmr.msra.gmra.mrb[32].mxu0 %v9326_v24 }
 0x51d   :  { %3432 = vst [vmem:[%s9974_s5 + $0xc] sm:$0xf] %v3430_v50  ;;  %4106 = vmatpush1.bf16.msra.mxu1 %v9323_v28  ;;  %4137 = vmatprep.mubr.bf16.mxu1 %v3540_v25  ;;  %v10199_v25 = vld [vmem:[#allocation33_spill] sm:$0xff] }
 0x51e   :  { %4107 = vmatprep.subr.bf16.mxu1 %v9328_v8  ;;  %4791 = vmatpush1.bf16.msra.mxu0 %v9113_v29  ;;  %v9355_v29 = vld [vmem:[#allocation3 + $0xd4] ss:$24 sps:$4 sm:$0xff]  }
 0x51f   :  { %4792 = vmatprep.subr.bf16.mxu0 %v9121_v48  ;;  %v9360_v48 = vld [vmem:[#allocation3 + $0xd0] ss:$24 sps:$4 sm:$0xff]  }
 0x521   :  { %4108 = vmatpush1.bf16.msra.mxu1 %v9336_v35 }
 0x522   :  { %4109 = vmatprep.subr.bf16.mxu1 %v9339_v54  ;;  %4793 = vmatpush1.bf16.msra.mxu0 %v9128_v60  ;;  %v9363_v60 = vld [vmem:[#allocation3 + $0x104] ss:$24 sps:$4 sm:$0xff]  }
 0x523   :  { %4794 = vmatprep.subr.bf16.mxu0 %v9134_v61  ;;  %v9368_v61 = vld [vmem:[#allocation3 + $0x100] ss:$24 sps:$4 sm:$0xff]  }
 0x525   :  { %4110 = vmatpush1.bf16.msra.mxu1 %v9344_v12 }
 0x526   :  { %4111 = vmatprep.subr.bf16.mxu1 %v9347_v10  ;;  %4795 = vmatpush1.bf16.msra.mxu0 %v9140_v18  ;;  %v9371_v18 = vld [vmem:[#allocation3 + $0x134] ss:$24 sps:$4 sm:$0xff]  }
 0x527   :  { %4796 = vmatprep.subr.bf16.mxu0 %v9146_v26  ;;  %v9376_v26 = vld [vmem:[#allocation3 + $0x130] ss:$24 sps:$4 sm:$0xff]  }
 0x529   :  { %4112 = vmatpush1.bf16.msra.mxu1 %v9352_v45 }
 0x52a   :  { %4113 = vmatprep.subr.bf16.mxu1 %v9355_v29  ;;  %4797 = vmatpush1.bf16.msra.mxu0 %v9152_v34  ;;  %v9379_v34 = vld [vmem:[#allocation3 + $0x164] ss:$24 sps:$4 sm:$0xff]  }
 0x52b   :  { %4798 = vmatprep.subr.bf16.mxu0 %v9158_v42  ;;  %v9384_v42 = vld [vmem:[#allocation3 + $0x160] ss:$24 sps:$4 sm:$0xff]  }
 0x52d   :  { %4114 = vmatpush1.bf16.msra.mxu1 %v9360_v48 }
 0x52e   :  { %4115 = vmatprep.subr.bf16.mxu1 %v9363_v60  ;;  %4799 = vmatpush1.bf16.msra.mxu0 %v9164_v23  ;;  %v9387_v23 = vld [vmem:[#allocation3 + $0x194] ss:$24 sps:$4 sm:$0xff]  }
 0x52f   :  { %4800 = vmatprep.subr.bf16.mxu0 %v9170_v31  ;;  %v9392_v31 = vld [vmem:[#allocation3 + $0x190] ss:$24 sps:$4 sm:$0xff]  }
 0x531   :  { %4116 = vmatpush1.bf16.msra.mxu1 %v9368_v61 }
 0x532   :  { %4117 = vmatprep.subr.bf16.mxu1 %v9371_v18  ;;  %4801 = vmatpush1.bf16.msra.mxu0 %v9176_v39  ;;  %v9395_v39 = vld [vmem:[#allocation3 + $0x1c4] ss:$24 sps:$4 sm:$0xff]  }
 0x533   :  { %4802 = vmatprep.subr.bf16.mxu0 %v9182_v51  ;;  %v9400_v51 = vld [vmem:[#allocation3 + $0x1c0] ss:$24 sps:$4 sm:$0xff]  }
 0x535   :  { %4118 = vmatpush1.bf16.msra.mxu1 %v9376_v26 }
 0x536   :  { %4119 = vmatprep.subr.bf16.mxu1 %v9379_v34  ;;  %4803 = vmatpush1.bf16.msra.mxu0 %v9188_v47  ;;  %v9403_v47 = vld [vmem:[#allocation3 + $0x1f4] ss:$24 sps:$4 sm:$0xff]  }
 0x537   :  { %4804 = vmatprep.subr.bf16.mxu0 %v9194_v58  ;;  %v9408_v58 = vld [vmem:[#allocation3 + $0x1f0] ss:$24 sps:$4 sm:$0xff]  }
 0x539   :  { %4120 = vmatpush1.bf16.msra.mxu1 %v9384_v42 }
 0x53a   :  { %4121 = vmatprep.subr.bf16.mxu1 %v9387_v23  ;;  %4805 = vmatpush1.bf16.msra.mxu0 %v9200_v63  ;;  %v9411_v63 = vld [vmem:[#allocation3 + $0x224] ss:$24 sps:$4 sm:$0xff]  }
 0x53b   :  { %4806 = vmatprep.subr.bf16.mxu0 %v9206_v43  ;;  %v9416_v43 = vld [vmem:[#allocation3 + $0x220] ss:$24 sps:$4 sm:$0xff]  }
 0x53d   :  { %4122 = vmatpush1.bf16.msra.mxu1 %v9392_v31 }
 0x53e   :  { %4123 = vmatprep.subr.bf16.mxu1 %v9395_v39  ;;  %4807 = vmatpush1.bf16.msra.mxu0 %v9212_v0  ;;  %v9419_v0 = vld [vmem:[#allocation3 + $0x254] ss:$24 sps:$4 sm:$0xff]  }
 0x53f   :  { %4808 = vmatprep.subr.bf16.mxu0 %v9221_v17  ;;  %v9424_v17 = vld [vmem:[#allocation3 + $0x250] ss:$24 sps:$4 sm:$0xff]  }
 0x541   :  { %4124 = vmatpush1.bf16.msra.mxu1 %v9400_v51 }
 0x542   :  { %4125 = vmatprep.subr.bf16.mxu1 %v9403_v47  ;;  %4809 = vmatpush1.bf16.msra.mxu0 %v9223_v20  ;;  %v9427_v20 = vld [vmem:[#allocation3 + $0x284] ss:$24 sps:$4 sm:$0xff]  }
 0x543   :  { %4810 = vmatprep.subr.bf16.mxu0 %v9233_v11  ;;  %v9432_v11 = vld [vmem:[#allocation3 + $0x280] ss:$24 sps:$4 sm:$0xff]  }
 0x545   :  { %4126 = vmatpush1.bf16.msra.mxu1 %v9408_v58 }
 0x546   :  { %4127 = vmatprep.subr.bf16.mxu1 %v9411_v63  ;;  %4811 = vmatpush1.bf16.msra.mxu0 %v9235_v21  ;;  %v9435_v21 = vld [vmem:[#allocation3 + $0x2b4] ss:$24 sps:$4 sm:$0xff]  }
 0x547   :  { %4812 = vmatprep.subr.bf16.mxu0 %v9245_v62  ;;  %v9440_v62 = vld [vmem:[#allocation3 + $0x2b0] ss:$24 sps:$4 sm:$0xff]  }
 0x549   :  { %4128 = vmatpush1.bf16.msra.mxu1 %v9416_v43 }
 0x54a   :  { %4129 = vmatprep.subr.bf16.mxu1 %v9419_v0  ;;  %4813 = vmatpush1.bf16.msra.mxu0 %v9247_v4  ;;  %v9443_v4 = vld [vmem:[#allocation3 + $0x2e4] ss:$24 sps:$4 sm:$0xff]  }
 0x54b   :  { %4814 = vmatprep.subr.bf16.mxu0 %v9254_v14  ;;  %v9448_v14 = vld [vmem:[#allocation3 + $0x2e0] ss:$24 sps:$4 sm:$0xff]  }
 0x54d   :  { %4130 = vmatpush1.bf16.msra.mxu1 %v9424_v17 }
 0x54e   :  { %4131 = vmatprep.subr.bf16.mxu1 %v9427_v20  ;;  %4815 = vmatpush1.bf16.msra.mxu0 %v9258_v52  ;;  %v10174_v52 = vld [vmem:[#allocation8_spill] sm:$0xff] }
 0x54f   :  { %4816 = vmatprep.subr.bf16.mxu0 %v9266_v3  ;;  %v10177_v3 = vld [vmem:[#allocation11_spill] sm:$0xff] }
 0x551   :  { %4132 = vmatpush1.bf16.msra.mxu1 %v9432_v11 }
 0x552   :  { %4133 = vmatprep.subr.bf16.mxu1 %v9435_v21  ;;  %4817 = vmatpush1.bf16.msra.mxu0 %v9272_v33  ;;  %v10179_v33 = vld [vmem:[#allocation13_spill] sm:$0xff] }
 0x553   :  { %4818 = vmatprep.subr.bf16.mxu0 %v9278_v19  ;;  %v10186_v19 = vld [vmem:[#allocation20_spill] sm:$0xff] }
 0x555   :  { %4134 = vmatpush1.bf16.msra.mxu1 %v9440_v62 }
 0x556   :  { %4135 = vmatprep.subr.bf16.mxu1 %v9443_v4  ;;  %4819 = vmatpush1.bf16.msra.mxu0 %v9284_v2  ;;  %v10187_v2 = vld [vmem:[#allocation21_spill] sm:$0xff] }
 0x557   :  { %4820 = vmatprep.subr.bf16.mxu0 %v9290_v16  ;;  %v10175_v16 = vld [vmem:[#allocation9_spill] sm:$0xff] }
 0x559   :  { %4136 = vmatpush1.bf16.msra.mxu1 %v9448_v14 }
 0x55a   :  { %4831 = vmatprep.subr.bf16.mxu1 %v9119_v53  ;;  %4821 = vmatpush1.bf16.msra.mxu0 %v9296_v5  ;;  %v10176_v53 = vld [vmem:[#allocation10_spill] sm:$0xff]  ;;  %v10178_v5 = vld [vmem:[#allocation12_spill] sm:$0xff] }
 0x55b   :  { %4872 = vmatprep.subr.bf16.mxu0 %v9305_v41  ;;  %v10185_v41 = vld [vmem:[#allocation19_spill] sm:$0xff] }
 0x55c   :  { %4138 = vmatmul.mubr.bf16.vlgmr.msra.gmra.mrb[32].mxu1 %v9326_v24  ;;  %v3435_v24 = vld [vmem:[#allocation2 + $0x40] sm:$0x3] }
 0x55d   :  { %4832 = vmatpush1.bf16.msra.mxu1 %v9117_v49  ;;  %v10180_v49 = vld [vmem:[#allocation14_spill] sm:$0xff] }
 0x55e   :  { %4833 = vmatprep.subr.bf16.mxu1 %v9124_v55  ;;  %v10181_v55 = vld [vmem:[#allocation15_spill] sm:$0xff] }
 0x561   :  { %4834 = vmatpush1.bf16.msra.mxu1 %v9132_v57  ;;  %v10182_v57 = vld [vmem:[#allocation16_spill] sm:$0xff] }
 0x562   :  { %4835 = vmatprep.subr.bf16.mxu1 %v9137_v15  ;;  %v10183_v15 = vld [vmem:[#allocation17_spill] sm:$0xff] }
 0x565   :  { %4836 = vmatpush1.bf16.msra.mxu1 %v9144_v22  ;;  %v10184_v22 = vld [vmem:[#allocation18_spill] sm:$0xff] }
 0x566   :  { %4837 = vmatprep.subr.bf16.mxu1 %v10174_v52 }
 0x569   :  { %4838 = vmatpush1.bf16.msra.mxu1 %v10175_v16 }
 0x56a   :  { %4839 = vmatprep.subr.bf16.mxu1 %v10176_v53  ;;  %v3436_v53 = vld [vmem:[#allocation2 + $0x48] sm:$0x3] }
 0x56d   :  { %4840 = vmatpush1.bf16.msra.mxu1 %v10177_v3 }
 0x56e   :  { %4841 = vmatprep.subr.bf16.mxu1 %v10178_v5 }
 0x571   :  { %4842 = vmatpush1.bf16.msra.mxu1 %v10179_v33 }
 0x572   :  { %4843 = vmatprep.subr.bf16.mxu1 %v10180_v49 }
 0x575   :  { %4844 = vmatpush1.bf16.msra.mxu1 %v10181_v55 }
 0x576   :  { %4845 = vmatprep.subr.bf16.mxu1 %v10182_v57 }
 0x579   :  { %4846 = vmatpush1.bf16.msra.mxu1 %v10183_v15 }
 0x57a   :  { %4847 = vmatprep.subr.bf16.mxu1 %v10184_v22 }
 0x57d   :  { %4848 = vmatpush1.bf16.msra.mxu1 %v10185_v41 }
 0x57e   :  { %4849 = vmatprep.subr.bf16.mxu1 %v10186_v19 }
 0x581   :  { %4850 = vmatpush1.bf16.msra.mxu1 %v10187_v2 }
 0x582   :  { %4851 = vmatprep.subr.bf16.mxu1 %v10188_v36 }
 0x585   :  { %4852 = vmatpush1.bf16.msra.mxu1 %v10189_v1  ;;  %v4186_v1 = vrot.slane %v9313_v38, 6 }
 0x586   :  { %4853 = vmatprep.subr.bf16.mxu1 %v10190_v46 }
 0x589   :  { %4854 = vmatpush1.bf16.msra.mxu1 %v10191_v27  ;;  %v3433_v27 = vld [vmem:[#allocation2 + $0x30] sm:$0x3] }
 0x58a   :  { %4855 = vmatprep.subr.bf16.mxu1 %v10192_v32  ;;  %v4187_v32 = vrot.slane %v9315_v9, 6 }
 0x58d   :  { %4856 = vmatpush1.bf16.msra.mxu1 %v10193_v37 }
 0x58e   :  { %4857 = vmatprep.subr.bf16.mxu1 %v10194_v13 }
 0x591   :  { %4858 = vmatpush1.bf16.msra.mxu1 %v10195_v7 }
 0x592   :  { %4859 = vmatprep.subr.bf16.mxu1 %v10196_v44  ;;  %v3434_v44 = vld [vmem:[#allocation2 + $0x38] sm:$0x3] }
 0x595   :  { %4860 = vmatpush1.bf16.msra.mxu1 %v10197_v40 }
 0x596   :  { %4861 = vmatprep.subr.bf16.mxu1 %v10198_v30 }
 0x599   :  { %4862 = vmatpush1.bf16.msra.mxu1 %v10199_v25 }
 0x5ef   :  { %v4057_v59 = vpop.f32.mrb[28].mxu1  ;;  %v4098_v50 = vpop.f32.mrb[32].mxu0 }
 0x5f0   :  { %v4160_v52 = vadd.f32 %v4098_v50, %v3435_v24  ;;  %v4059_v16 = vpop.f32.mrb[29].mxu1  ;;  %v4100_v3 = vpop.f32.mrb[33].mxu0  ;;  %v4146_v7 = vadd.f32 %v4057_v59, %v3433_v27 }
 0x5f1   :  { %v4161_v5 = vadd.f32 %v4100_v3, %v3436_v53  ;;  %v4061_v33 = vpop.f32.mrb[30].mxu1  ;;  %v4102_v49 = vpop.f32.mrb[34].mxu0  ;;  %v4147_v40 = vadd.f32 %v4059_v16, %v3434_v44 }
 0x5f2   :  { %v7096_v55 = vmul.f32 -1.442695, %v4160_v52  ;;  %v4062_v57 = vpop.f32.mrb[31].mxu1  ;;  %v4103_v15 = vpop.f32.mrb[35].mxu0  ;;  %v7094_v25 = vmul.f32 -1.442695, %v4146_v7 }
 0x5f3   :  { %v7097_v22 = vmul.f32 -1.442695, %v4161_v5  ;;  %v7095_v24 = vmul.f32 -1.442695, %v4147_v40  ;;  %v10200_v5 = vld [vmem:[#allocation6_spill] sm:$0xff] }
 0x5f4   :  { %8080 = vpow2.f32 %v7096_v55 }
 0x5f5   :  { %8082 = vpow2.f32 %v7097_v22  ;;  %v3437_v22 = vld [vmem:[#allocation2 + $0x50] sm:$0x3] }
 0x5fe   :  { %v8081_v41 = vpop.eup %8080 }
 0x5ff   :  { %v4168_v19 = vadd.f32 1.0, %v8081_v41  ;;  %v8083_v2 = vpop.eup %8082 }
 0x600   :  { %v4169_v36 = vadd.f32 1.0, %v8083_v2  ;;  %v3438_v2 = vld [vmem:[#allocation2 + $0x58] sm:$0x3] }
 0x601   :  { %8084 = vrcp.f32 %v4168_v19 }
 0x602   :  { %8086 = vrcp.f32 %v4169_v36 }
 0x603   :  { %8088 = vpow2.f32 %v7094_v25 }
 0x604   :  { %8090 = vpow2.f32 %v7095_v24 }
 0x60b   :  { %v8085_v46 = vpop.eup %8084 }
 0x60c   :  { %v4190_v37 = vmul.f32 %v8085_v46, %v4186_v1  ;;  %v8087_v13 = vpop.eup %8086  ;;  %v4182_v1 = vsub.f32 1.0, %v8085_v46  ;;  %v9628_v46 = vld [vmem:[#allocation3 + $0x158] ss:$24 sps:$4 sm:$0xff]  }
 0x60d   :  { %v4191_v30 = vmul.f32 %v8087_v13, %v4187_v32  ;;  %v8089_v50 = vpop.eup %8088  ;;  %v4183_v32 = vsub.f32 1.0, %v8087_v13  ;;  %10210 = vst [vmem:[#allocation16_spill] sm:$0xff] %v9628_v46  ;;  %v9633_v13 = vld [vmem:[#allocation3 + $0x18c] ss:$24 sps:$4 sm:$0xff]  }
 0x60e   :  { %v8091_v52 = vpop.eup %8090  ;;  %v4154_v53 = vadd.f32 1.0, %v8089_v50  ;;  %10211 = vst [vmem:[#allocation17_spill] sm:$0xff] %v9633_v13 }
 0x60f   :  { %v4155_v3 = vadd.f32 1.0, %v8091_v52 }
 0x610   :  { %8092 = vrcp.f32 %v4154_v53 }
 0x611   :  { %8094 = vrcp.f32 %v4155_v3  ;;  %v9640_v3 = vld [vmem:[#allocation3 + $0x188] ss:$24 sps:$4 sm:$0xff]  }
 0x612   :  { %10212 = vst [vmem:[#allocation18_spill] sm:$0xff] %v9640_v3 }
 0x61a   :  { %v8093_v49 = vpop.eup %8092 }
 0x61b   :  { %v8095_v16 = vpop.eup %8094 }
 0x62f   :  { %v4139_v38 = vpop.f32.mrb[32].mxu1 }
 0x630   :  { %v4174_v33 = vadd.f32 %v4139_v38, %v10200_v5  ;;  %v4141_v9 = vpop.f32.mrb[33].mxu1  ;;  %v9645_v38 = vld [vmem:[#allocation3 + $0x1b4] ss:$24 sps:$4 sm:$0xff]  }
 0x631   :  { %v4175_v59 = vadd.f32 %v4141_v9, %v10147_v6  ;;  %v4143_v55 = vpop.f32.mrb[34].mxu1  ;;  %v9649_v9 = vld [vmem:[#allocation3 + $0x1bc] ss:$24 sps:$4 sm:$0xff]  }
 0x632   :  { %v4176_v57 = vmul.f32 %v8093_v49, %v4174_v33  ;;  %v4144_v15 = vpop.f32.mrb[35].mxu1  ;;  %v9647_v33 = vld [vmem:[#allocation3 + $0x1b0] ss:$24 sps:$4 sm:$0xff]   ;;  %10213 = vst [vmem:[#allocation19_spill] sm:$0xff] %v9649_v9  ;;  %v9659_v55 = vld [vmem:[#allocation3 + $0x1e0] ss:$24 sps:$4 sm:$0xff]  }
 0x633   :  { %v4177_v41 = vmul.f32 %v8095_v16, %v4175_v59  ;;  %v9652_v49 = vld [vmem:[#allocation3 + $0x1b8] ss:$24 sps:$4 sm:$0xff]   ;;  %v9657_v59 = vld [vmem:[#allocation3 + $0x1e4] ss:$24 sps:$4 sm:$0xff]  }
 0x634   :  { %v4178_v19 = vadd.f32 %v4176_v57, %v3437_v22  ;;  %10214 = vst [vmem:[#allocation20_spill] sm:$0xff] %v9652_v49  ;;  %v9661_v16 = vld [vmem:[#allocation3 + $0x1ec] ss:$24 sps:$4 sm:$0xff]   ;;  %v9664_v57 = vld [vmem:[#allocation3 + $0x1e8] ss:$24 sps:$4 sm:$0xff]  }
 0x635   :  { %v4179_v36 = vadd.f32 %v4177_v41, %v3438_v2  ;;  %10215 = vst [vmem:[#allocation21_spill] sm:$0xff] %v9661_v16  ;;  %10216 = vst [vmem:[#allocation22_spill] sm:$0xff] %v9664_v57  ;;  %v9669_v15 = vld [vmem:[#allocation3 + $0x210] ss:$24 sps:$4 sm:$0xff]   ;;  %v9671_v22 = vld [vmem:[#allocation3 + $0x214] ss:$24 sps:$4 sm:$0xff]  }
 0x636   :  { %8096 = vtanh.f32 %v4178_v19  ;;  %v9673_v41 = vld [vmem:[#allocation3 + $0x218] ss:$24 sps:$4 sm:$0xff]   ;;  %v9675_v19 = vld [vmem:[#allocation3 + $0x21c] ss:$24 sps:$4 sm:$0xff]  }
 0x637   :  { %8098 = vtanh.f32 %v4179_v36  ;;  %10217 = vst [vmem:[#allocation23_spill] sm:$0xff] %v9673_v41  ;;  %10218 = vst [vmem:[#allocation24_spill] sm:$0xff] %v9675_v19  ;;  %v9677_v2 = vld [vmem:[#allocation3 + $0x244] ss:$24 sps:$4 sm:$0xff]  }
 0x638   :  { %v9680_v36 = vld [vmem:[#allocation3 + $0x24c] ss:$24 sps:$4 sm:$0xff]  }
 0x639   :  { %10219 = vst [vmem:[#allocation25_spill] sm:$0xff] %v9680_v36 }
 0x640   :  { %v8097_v27 = vpop.eup %8096 }
 0x641   :  { %v8099_v7 = vpop.eup %8098  ;;  %v4184_v44 = vmul.f32 %v8097_v27, %v4182_v1  ;;  %v9684_v1 = vld [vmem:[#allocation3 + $0x240] ss:$24 sps:$4 sm:$0xff]  }
 0x642   :  { %v4185_v40 = vmul.f32 %v8099_v7, %v4183_v32  ;;  %v9688_v27 = vld [vmem:[#allocation3 + $0x248] ss:$24 sps:$4 sm:$0xff]   ;;  %v9690_v32 = vld [vmem:[#allocation3 + $0x274] ss:$24 sps:$4 sm:$0xff]  }
 0x643   :  { %v9493_v25 = vadd.f32 %v4190_v37, %v4184_v44  ;;  %v9630_v37 = vld [vmem:[#allocation3 + $0x184] ss:$24 sps:$4 sm:$0xff]   ;;  %10220 = vst [vmem:[#allocation26_spill] sm:$0xff] %v9688_v27  ;;  %v9696_v44 = vld [vmem:[#allocation3 + $0x270] ss:$24 sps:$4 sm:$0xff]  }
 0x644   :  { %v9495_v24 = vadd.f32 %v4191_v30, %v4185_v40  ;;  %v9636_v30 = vld [vmem:[#allocation3 + $0x180] ss:$24 sps:$4 sm:$0xff]   ;;  %v9693_v7 = vld [vmem:[#allocation3 + $0x27c] ss:$24 sps:$4 sm:$0xff]  }
 0x645   :  { %v4212_v53 = vpack.c.bf16 %v9493_v25, %v9493_v25  ;;  %10221 = vst [vmem:[#allocation27_spill] sm:$0xff] %v9693_v7  ;;  %v9700_v40 = vld [vmem:[#allocation3 + $0x278] ss:$24 sps:$4 sm:$0xff]  }
 0x646   :  { %v4213_v50 = vpack.c.bf16 %v9495_v24, %v9495_v24  ;;  %v4196_v52 = vcombine.low %v9493_v25, %v9495_v24  ;;  %10222 = vst [vmem:[#allocation28_spill] sm:$0xff] %v9700_v40 }
 0x648   :  { %4822 = vmatprep.mubr.bf16.mxu0 %v4213_v50  ;;  %4863 = vmatprep.mubr.bf16.mxu1 %v4213_v50  ;;  %7098 = vst.sshfl [vmem:[%s9974_s5 + $0x10] sm:$0x33 pattern:$0x76325410] %v4196_v52  ;;  %v9705_v52 = vld [vmem:[#allocation3 + $0x2ac] ss:$24 sps:$4 sm:$0xff]  }
 0x649   :  { %4823 = vmatmul.mubr.bf16.vlgmr.msra.gmra.mrb[36].mxu0 %v4212_v53  ;;  %4864 = vmatmul.mubr.bf16.vlgmr.msra.gmra.mrb[36].mxu1 %v4212_v53  ;;  %10223 = vst [vmem:[#allocation29_spill] sm:$0xff] %v9705_v52 }
 0x64a   :  { %4873 = vmatpush1.bf16.msra.mxu0 %v9323_v28  ;;  %4904 = vmatprep.mubr.bf16.mxu0 %v4213_v50  ;;  %v9537_v28 = vld [vmem:[#allocation3] ss:$24 sps:$4 sm:$0xff]   ;;  %v9702_v50 = vld [vmem:[#allocation3 + $0x2a4] ss:$24 sps:$4 sm:$0xff]  }
 0x64b   :  { %4874 = vmatprep.subr.bf16.mxu0 %v9328_v8  ;;  %v9539_v8 = vld [vmem:[#allocation3 + $0x4] ss:$24 sps:$4 sm:$0xff]  }
 0x64c   :  { %5582 = vmatprep.subr.bf16.mxu1 %v9539_v8 }
 0x64d   :  { %5583 = vmatpush1.bf16.msra.mxu1 %v9537_v28 }
 0x64e   :  { %4875 = vmatpush1.bf16.msra.mxu0 %v9336_v35  ;;  %v9541_v35 = vld [vmem:[#allocation3 + $0x8] ss:$24 sps:$4 sm:$0xff]  }
 0x64f   :  { %4876 = vmatprep.subr.bf16.mxu0 %v9339_v54  ;;  %v9543_v54 = vld [vmem:[#allocation3 + $0xc] ss:$24 sps:$4 sm:$0xff]  }
 0x652   :  { %4877 = vmatpush1.bf16.msra.mxu0 %v9344_v12  ;;  %v9545_v12 = vld [vmem:[#allocation3 + $0x34] ss:$24 sps:$4 sm:$0xff]  }
 0x653   :  { %4878 = vmatprep.subr.bf16.mxu0 %v9347_v10  ;;  %v9548_v10 = vld [vmem:[#allocation3 + $0x3c] ss:$24 sps:$4 sm:$0xff]   ;;  %5584 = vmatprep.subr.bf16.mxu1 %v9545_v12 }
 0x656   :  { %4879 = vmatpush1.bf16.msra.mxu0 %v9352_v45  ;;  %v9552_v45 = vld [vmem:[#allocation3 + $0x30] ss:$24 sps:$4 sm:$0xff]  }
 0x657   :  { %4880 = vmatprep.subr.bf16.mxu0 %v9355_v29  ;;  %v9556_v29 = vld [vmem:[#allocation3 + $0x38] ss:$24 sps:$4 sm:$0xff]   ;;  %5585 = vmatpush1.bf16.msra.mxu1 %v9552_v45 }
 0x65a   :  { %4881 = vmatpush1.bf16.msra.mxu0 %v9360_v48  ;;  %v9558_v48 = vld [vmem:[#allocation3 + $0x64] ss:$24 sps:$4 sm:$0xff]  }
 0x65b   :  { %4882 = vmatprep.subr.bf16.mxu0 %v9363_v60  ;;  %v9561_v60 = vld [vmem:[#allocation3 + $0x6c] ss:$24 sps:$4 sm:$0xff]   ;;  %5586 = vmatprep.subr.bf16.mxu1 %v9558_v48 }
 0x65e   :  { %4883 = vmatpush1.bf16.msra.mxu0 %v9368_v61  ;;  %v9564_v61 = vld [vmem:[#allocation3 + $0x60] ss:$24 sps:$4 sm:$0xff]  }
 0x65f   :  { %4884 = vmatprep.subr.bf16.mxu0 %v9371_v18  ;;  %v9568_v18 = vld [vmem:[#allocation3 + $0x68] ss:$24 sps:$4 sm:$0xff]   ;;  %5587 = vmatpush1.bf16.msra.mxu1 %v9564_v61 }
 0x662   :  { %4885 = vmatpush1.bf16.msra.mxu0 %v9376_v26  ;;  %v9570_v26 = vld [vmem:[#allocation3 + $0x94] ss:$24 sps:$4 sm:$0xff]  }
 0x663   :  { %4886 = vmatprep.subr.bf16.mxu0 %v9379_v34  ;;  %v9573_v34 = vld [vmem:[#allocation3 + $0x9c] ss:$24 sps:$4 sm:$0xff]   ;;  %5588 = vmatprep.subr.bf16.mxu1 %v9570_v26 }
 0x664   :  { %10201 = vst [vmem:[#allocation7_spill] sm:$0xff] %v9573_v34 }
 0x666   :  { %4887 = vmatpush1.bf16.msra.mxu0 %v9384_v42  ;;  %v9576_v42 = vld [vmem:[#allocation3 + $0x90] ss:$24 sps:$4 sm:$0xff]  }
 0x667   :  { %4888 = vmatprep.subr.bf16.mxu0 %v9387_v23  ;;  %v9580_v23 = vld [vmem:[#allocation3 + $0x98] ss:$24 sps:$4 sm:$0xff]   ;;  %5589 = vmatpush1.bf16.msra.mxu1 %v9576_v42 }
 0x668   :  { %10202 = vst [vmem:[#allocation8_spill] sm:$0xff] %v9580_v23 }
 0x66a   :  { %4889 = vmatpush1.bf16.msra.mxu0 %v9392_v31  ;;  %v9582_v31 = vld [vmem:[#allocation3 + $0xc4] ss:$24 sps:$4 sm:$0xff]  }
 0x66b   :  { %4890 = vmatprep.subr.bf16.mxu0 %v9395_v39  ;;  %v9585_v39 = vld [vmem:[#allocation3 + $0xcc] ss:$24 sps:$4 sm:$0xff]   ;;  %5590 = vmatprep.subr.bf16.mxu1 %v9582_v31 }
 0x66c   :  { %10203 = vst [vmem:[#allocation9_spill] sm:$0xff] %v9585_v39 }
 0x66e   :  { %4891 = vmatpush1.bf16.msra.mxu0 %v9400_v51  ;;  %v9588_v51 = vld [vmem:[#allocation3 + $0xc0] ss:$24 sps:$4 sm:$0xff]  }
 0x66f   :  { %4892 = vmatprep.subr.bf16.mxu0 %v9403_v47  ;;  %v9592_v47 = vld [vmem:[#allocation3 + $0xc8] ss:$24 sps:$4 sm:$0xff]   ;;  %5591 = vmatpush1.bf16.msra.mxu1 %v9588_v51 }
 0x670   :  { %10204 = vst [vmem:[#allocation10_spill] sm:$0xff] %v9592_v47 }
 0x672   :  { %4893 = vmatpush1.bf16.msra.mxu0 %v9408_v58  ;;  %v9594_v58 = vld [vmem:[#allocation3 + $0xf4] ss:$24 sps:$4 sm:$0xff]  }
 0x673   :  { %4894 = vmatprep.subr.bf16.mxu0 %v9411_v63  ;;  %v9597_v63 = vld [vmem:[#allocation3 + $0xfc] ss:$24 sps:$4 sm:$0xff]   ;;  %5592 = vmatprep.subr.bf16.mxu1 %v9594_v58 }
 0x674   :  { %10205 = vst [vmem:[#allocation11_spill] sm:$0xff] %v9597_v63 }
 0x676   :  { %4895 = vmatpush1.bf16.msra.mxu0 %v9416_v43  ;;  %v9600_v43 = vld [vmem:[#allocation3 + $0xf0] ss:$24 sps:$4 sm:$0xff]  }
 0x677   :  { %4896 = vmatprep.subr.bf16.mxu0 %v9419_v0  ;;  %v9604_v0 = vld [vmem:[#allocation3 + $0xf8] ss:$24 sps:$4 sm:$0xff]   ;;  %5593 = vmatpush1.bf16.msra.mxu1 %v9600_v43 }
 0x678   :  { %10206 = vst [vmem:[#allocation12_spill] sm:$0xff] %v9604_v0 }
 0x67a   :  { %4897 = vmatpush1.bf16.msra.mxu0 %v9424_v17  ;;  %v9606_v17 = vld [vmem:[#allocation3 + $0x124] ss:$24 sps:$4 sm:$0xff]  }
 0x67b   :  { %4898 = vmatprep.subr.bf16.mxu0 %v9427_v20  ;;  %v9609_v20 = vld [vmem:[#allocation3 + $0x12c] ss:$24 sps:$4 sm:$0xff]   ;;  %5594 = vmatprep.subr.bf16.mxu1 %v9606_v17 }
 0x67c   :  { %10207 = vst [vmem:[#allocation13_spill] sm:$0xff] %v9609_v20 }
 0x67e   :  { %4899 = vmatpush1.bf16.msra.mxu0 %v9432_v11  ;;  %v9612_v11 = vld [vmem:[#allocation3 + $0x120] ss:$24 sps:$4 sm:$0xff]  }
 0x67f   :  { %4900 = vmatprep.subr.bf16.mxu0 %v9435_v21  ;;  %v9616_v21 = vld [vmem:[#allocation3 + $0x128] ss:$24 sps:$4 sm:$0xff]   ;;  %5595 = vmatpush1.bf16.msra.mxu1 %v9612_v11 }
 0x680   :  { %10208 = vst [vmem:[#allocation14_spill] sm:$0xff] %v9616_v21 }
 0x682   :  { %4901 = vmatpush1.bf16.msra.mxu0 %v9440_v62  ;;  %v9618_v62 = vld [vmem:[#allocation3 + $0x154] ss:$24 sps:$4 sm:$0xff]  }
 0x683   :  { %4902 = vmatprep.subr.bf16.mxu0 %v9443_v4  ;;  %v9621_v4 = vld [vmem:[#allocation3 + $0x15c] ss:$24 sps:$4 sm:$0xff]   ;;  %5596 = vmatprep.subr.bf16.mxu1 %v9618_v62 }
 0x684   :  { %10209 = vst [vmem:[#allocation15_spill] sm:$0xff] %v9621_v4 }
 0x686   :  { %4903 = vmatpush1.bf16.msra.mxu0 %v9448_v14  ;;  %v9624_v14 = vld [vmem:[#allocation3 + $0x150] ss:$24 sps:$4 sm:$0xff]  }
 0x687   :  { %5623 = vmatprep.subr.bf16.mxu0 %v9543_v54  ;;  %5597 = vmatpush1.bf16.msra.mxu1 %v9624_v14 }
 0x688   :  { %5598 = vmatprep.subr.bf16.mxu1 %v9630_v37 }
 0x689   :  { %4905 = vmatmul.mubr.bf16.vlgmr.msra.gmra.mrb[40].mxu0 %v4212_v53  ;;  %v9708_v53 = vld [vmem:[#allocation3 + $0x2a0] ss:$24 sps:$4 sm:$0xff]  }
 0x68a   :  { %5624 = vmatpush1.bf16.msra.mxu0 %v9541_v35 }
 0x68b   :  { %5625 = vmatprep.subr.bf16.mxu0 %v9548_v10  ;;  %5599 = vmatpush1.bf16.msra.mxu1 %v9636_v30 }
 0x68c   :  { %5600 = vmatprep.subr.bf16.mxu1 %v9645_v38 }
 0x68e   :  { %5626 = vmatpush1.bf16.msra.mxu0 %v9556_v29 }
 0x68f   :  { %5627 = vmatprep.subr.bf16.mxu0 %v9561_v60  ;;  %5601 = vmatpush1.bf16.msra.mxu1 %v9647_v33 }
 0x690   :  { %5602 = vmatprep.subr.bf16.mxu1 %v9657_v59 }
 0x692   :  { %5628 = vmatpush1.bf16.msra.mxu0 %v9568_v18 }
 0x693   :  { %5629 = vmatprep.subr.bf16.mxu0 %v9573_v34  ;;  %5603 = vmatpush1.bf16.msra.mxu1 %v9659_v55 }
 0x694   :  { %5604 = vmatprep.subr.bf16.mxu1 %v9671_v22 }
 0x696   :  { %5630 = vmatpush1.bf16.msra.mxu0 %v9580_v23 }
 0x697   :  { %5631 = vmatprep.subr.bf16.mxu0 %v9585_v39  ;;  %5605 = vmatpush1.bf16.msra.mxu1 %v9669_v15 }
 0x698   :  { %5606 = vmatprep.subr.bf16.mxu1 %v9677_v2 }
 0x69a   :  { %5632 = vmatpush1.bf16.msra.mxu0 %v9592_v47 }
 0x69b   :  { %5633 = vmatprep.subr.bf16.mxu0 %v9597_v63  ;;  %5607 = vmatpush1.bf16.msra.mxu1 %v9684_v1 }
 0x69c   :  { %5608 = vmatprep.subr.bf16.mxu1 %v9690_v32 }
 0x69e   :  { %5634 = vmatpush1.bf16.msra.mxu0 %v9604_v0 }
 0x69f   :  { %5635 = vmatprep.subr.bf16.mxu0 %v9609_v20  ;;  %5609 = vmatpush1.bf16.msra.mxu1 %v9696_v44 }
 0x6a0   :  { %5610 = vmatprep.subr.bf16.mxu1 %v9702_v50 }
 0x6a2   :  { %5636 = vmatpush1.bf16.msra.mxu0 %v9616_v21 }
 0x6a3   :  { %5637 = vmatprep.subr.bf16.mxu0 %v9621_v4  ;;  %5611 = vmatpush1.bf16.msra.mxu1 %v9708_v53  ;;  %v4209_v4 = vld [vmem:[#allocation2 + $0x48] sm:$0xc] }
 0x6a6   :  { %5638 = vmatpush1.bf16.msra.mxu0 %v9628_v46 }
 0x6a7   :  { %5639 = vmatprep.subr.bf16.mxu0 %v9633_v13 }
 0x6aa   :  { %5640 = vmatpush1.bf16.msra.mxu0 %v9640_v3 }
 0x6ab   :  { %5641 = vmatprep.subr.bf16.mxu0 %v9649_v9  ;;  %v4208_v9 = vld [vmem:[#allocation2 + $0x40] sm:$0xc] }
 0x6ae   :  { %5642 = vmatpush1.bf16.msra.mxu0 %v9652_v49 }
 0x6af   :  { %5643 = vmatprep.subr.bf16.mxu0 %v9661_v16 }
 0x6b2   :  { %5644 = vmatpush1.bf16.msra.mxu0 %v9664_v57 }
 0x6b3   :  { %5645 = vmatprep.subr.bf16.mxu0 %v9675_v19  ;;  %v9724_v19 = vld [vmem:[#allocation3 + $0x2d8] ss:$24 sps:$4 sm:$0xff]  }
 0x6b4   :  { %10226 = vst [vmem:[#allocation32_spill] sm:$0xff] %v9724_v19 }
 0x6b6   :  { %5646 = vmatpush1.bf16.msra.mxu0 %v9673_v41  ;;  %v9717_v41 = vld [vmem:[#allocation3 + $0x2dc] ss:$24 sps:$4 sm:$0xff]  }
 0x6b7   :  { %5647 = vmatprep.subr.bf16.mxu0 %v9680_v36  ;;  %v9712_v36 = vld [vmem:[#allocation3 + $0x2a8] ss:$24 sps:$4 sm:$0xff]   ;;  %10225 = vst [vmem:[#allocation31_spill] sm:$0xff] %v9717_v41 }
 0x6b8   :  { %10224 = vst [vmem:[#allocation30_spill] sm:$0xff] %v9712_v36 }
 0x6ba   :  { %5648 = vmatpush1.bf16.msra.mxu0 %v9688_v27  ;;  %v9714_v27 = vld [vmem:[#allocation3 + $0x2d4] ss:$24 sps:$4 sm:$0xff]  }
 0x6bb   :  { %5649 = vmatprep.subr.bf16.mxu0 %v9693_v7  ;;  %v9720_v7 = vld [vmem:[#allocation3 + $0x2d0] ss:$24 sps:$4 sm:$0xff]   ;;  %5612 = vmatprep.subr.bf16.mxu1 %v9714_v27 }
 0x6bc   :  { %5613 = vmatpush1.bf16.msra.mxu1 %v9720_v7 }
 0x6be   :  { %5650 = vmatpush1.bf16.msra.mxu0 %v9700_v40  ;;  %v9728_v40 = vld [vmem:[#allocation3 + $0x14] ss:$24 sps:$4 sm:$0xff]  }
 0x6bf   :  { %5651 = vmatprep.subr.bf16.mxu0 %v9705_v52  ;;  %5664 = vmatprep.subr.bf16.mxu1 %v9728_v40 }
 0x6c2   :  { %5652 = vmatpush1.bf16.msra.mxu0 %v9712_v36 }
 0x6c3   :  { %5653 = vmatprep.subr.bf16.mxu0 %v9717_v41 }
 0x6c6   :  { %5654 = vmatpush1.bf16.msra.mxu0 %v9724_v19 }
 0x6c7   :  { %6373 = vmatprep.subr.bf16.mxu0 %v9539_v8 }
 0x71c   :  { %v4824_v52 = vpop.f32.mrb[36].mxu0  ;;  %v4865_v57 = vpop.f32.mrb[36].mxu1 }
 0x71d   :  { %v4935_v16 = vrot.slane %v4865_v57, 6  ;;  %v4826_v36 = vpop.f32.mrb[37].mxu0  ;;  %v4867_v49 = vpop.f32.mrb[37].mxu1  ;;  %v4915_v23 = vrot.slane %v4824_v52, 6 }
 0x71e   :  { %v4936_v3 = vrot.slane %v4867_v49, 6  ;;  %v4828_v13 = vpop.f32.mrb[38].mxu0  ;;  %v4869_v46 = vpop.f32.mrb[38].mxu1  ;;  %v4916_v34 = vrot.slane %v4826_v36, 6 }
 0x71f   :  { %v4939_v41 = vadd.f32 %v4935_v16, %v4208_v9  ;;  %v4829_v21 = vpop.f32.mrb[39].mxu0  ;;  %v4870_v20 = vpop.f32.mrb[39].mxu1  ;;  %v4971_v13 = vrot.slane %v9493_v25, 6  ;;  %v4206_v9 = vld [vmem:[#allocation2 + $0x30] sm:$0xc] }
 0x720   :  { %v4940_v0 = vadd.f32 %v4936_v3, %v4209_v4  ;;  %v4972_v21 = vrot.slane %v9495_v24, 6  ;;  %v4919_v3 = vadd.f32 %v4915_v23, %v4206_v9 }
 0x721   :  { %v7197_v63 = vmul.f32 -1.442695, %v4939_v41 }
 0x722   :  { %v7198_v19 = vmul.f32 -1.442695, %v4940_v0  ;;  %v4207_v0 = vld [vmem:[#allocation2 + $0x38] sm:$0xc]  ;;  %v7195_v16 = vmul.f32 -1.442695, %v4919_v3 }
 0x723   :  { %8100 = vpow2.f32 %v7197_v63  ;;  %v4920_v63 = vadd.f32 %v4916_v34, %v4207_v0  ;;  %v4210_v0 = vld [vmem:[#allocation2 + $0x50] sm:$0xc] }
 0x724   :  { %8102 = vpow2.f32 %v7198_v19 }
 0x72d   :  { %v8101_v47 = vpop.eup %8100 }
 0x72e   :  { %v4947_v8 = vadd.f32 1.0, %v8101_v47  ;;  %v8103_v39 = vpop.eup %8102  ;;  %v7196_v47 = vmul.f32 -1.442695, %v4920_v63 }
 0x72f   :  { %v4948_v57 = vadd.f32 1.0, %v8103_v39 }
 0x730   :  { %8104 = vrcp.f32 %v4947_v8 }
 0x731   :  { %8106 = vrcp.f32 %v4948_v57 }
 0x732   :  { %8108 = vpow2.f32 %v7195_v16 }
 0x733   :  { %8110 = vpow2.f32 %v7196_v47  ;;  %v4211_v47 = vld [vmem:[#allocation2 + $0x58] sm:$0xc] }
 0x73a   :  { %v8105_v46 = vpop.eup %8104 }
 0x73b   :  { %v4975_v20 = vmul.f32 %v8105_v46, %v4971_v13  ;;  %v8107_v4 = vpop.eup %8106 }
 0x73c   :  { %v4976_v49 = vmul.f32 %v8107_v4, %v4972_v21  ;;  %v8109_v39 = vpop.eup %8108 }
 0x73d   :  { %v8111_v41 = vpop.eup %8110  ;;  %v4927_v19 = vadd.f32 1.0, %v8109_v39 }
 0x73e   :  { %v4928_v36 = vadd.f32 1.0, %v8111_v41  ;;  %v4967_v41 = vsub.f32 1.0, %v8105_v46  ;;  %v9747_v46 = vld [vmem:[#allocation3 + $0x10] ss:$24 sps:$4 sm:$0xff]  }
 0x73f   :  { %8112 = vrcp.f32 %v4927_v19 }
 0x740   :  { %8114 = vrcp.f32 %v4928_v36  ;;  %v4968_v36 = vsub.f32 1.0, %v8107_v4 }
 0x749   :  { %v8113_v13 = vpop.eup %8112 }
 0x74a   :  { %v8115_v21 = vpop.eup %8114 }
 0x75c   :  { %v4906_v25 = vpop.f32.mrb[40].mxu0 }
 0x75d   :  { %v4953_v52 = vadd.f32 %v4906_v25, %v10200_v5  ;;  %v4908_v24 = vpop.f32.mrb[41].mxu0 }
 0x75e   :  { %v4954_v8 = vadd.f32 %v4908_v24, %v10147_v6  ;;  %v4910_v23 = vpop.f32.mrb[42].mxu0 }
 0x75f   :  { %v4957_v57 = vrot.slane %v4953_v52, 6  ;;  %v4911_v34 = vpop.f32.mrb[43].mxu0 }
 0x760   :  { %v4958_v9 = vrot.slane %v4954_v8, 6 }
 0x761   :  { %v4961_v3 = vmul.f32 %v8113_v13, %v4957_v57 }
 0x762   :  { %v4962_v63 = vmul.f32 %v8115_v21, %v4958_v9  ;;  %v9763_v21 = vld [vmem:[#allocation3 + $0x74] ss:$24 sps:$4 sm:$0xff]  }
 0x763   :  { %v4963_v16 = vadd.f32 %v4961_v3, %v4210_v0  ;;  %v9768_v3 = vld [vmem:[#allocation3 + $0x70] ss:$24 sps:$4 sm:$0xff]   ;;  %v9771_v0 = vld [vmem:[#allocation3 + $0xa4] ss:$24 sps:$4 sm:$0xff]  }
 0x764   :  { %v4964_v39 = vadd.f32 %v4962_v63, %v4211_v47  ;;  %v9776_v63 = vld [vmem:[#allocation3 + $0xa0] ss:$24 sps:$4 sm:$0xff]  }
 0x765   :  { %8116 = vtanh.f32 %v4963_v16  ;;  %v10241_v16 = vld [vmem:[#allocation21_spill] sm:$0xff]  ;;  %v10242_v47 = vld [vmem:[#allocation22_spill] sm:$0xff] }
 0x766   :  { %8118 = vtanh.f32 %v4964_v39  ;;  %v10243_v39 = vld [vmem:[#allocation24_spill] sm:$0xff] }
 0x76f   :  { %v8117_v19 = vpop.eup %8116 }
 0x770   :  { %v8119_v25 = vpop.eup %8118  ;;  %v4969_v5 = vmul.f32 %v8117_v19, %v4967_v41  ;;  %v10244_v41 = vld [vmem:[#allocation23_spill] sm:$0xff]  ;;  %v10245_v19 = vld [vmem:[#allocation25_spill] sm:$0xff] }
 0x771   :  { %v4970_v24 = vmul.f32 %v8119_v25, %v4968_v36  ;;  %v10246_v36 = vld [vmem:[#allocation26_spill] sm:$0xff]  ;;  %v10247_v25 = vld [vmem:[#allocation27_spill] sm:$0xff] }
 0x772   :  { %v9737_v23 = vadd.f32 %v4975_v20, %v4969_v5  ;;  %v9752_v5 = vld [vmem:[#allocation3 + $0x44] ss:$24 sps:$4 sm:$0xff]  }
 0x773   :  { %v9739_v52 = vadd.f32 %v4976_v49, %v4970_v24  ;;  %v9760_v49 = vld [vmem:[#allocation3 + $0x40] ss:$24 sps:$4 sm:$0xff]   ;;  %v10248_v24 = vld [vmem:[#allocation28_spill] sm:$0xff] }
 0x774   :  { %v4998_v8 = vpack.c.bf16 %v9737_v23, %v9737_v23 }
 0x775   :  { %v4999_v57 = vpack.c.bf16 %v9739_v52, %v9739_v52  ;;  %v4981_v34 = vcombine.low %v9737_v23, %v9739_v52 }
 0x776   :  { %v9750_v9 = vrot.slane %v4998_v8, 1  ;;  %v10249_v8 = vld [vmem:[#allocation29_spill] sm:$0xff] }
 0x777   :  { %v5099_v13 = vrot.slane %v4999_v57, 1  ;;  %v4988_v4 = vrot.slane %v4981_v34, %v8891_v56  ;;  %v10250_v57 = vld [vmem:[#allocation30_spill] sm:$0xff]  ;;  %v10251_v34 = vld [vmem:[#allocation31_spill] sm:$0xff] }
 0x779   :  { %5614 = vmatprep.mubr.bf16.mxu1 %v5099_v13  ;;  %5655 = vmatprep.mubr.bf16.mxu0 %v5099_v13  ;;  %v4989_v20 = vcombine.high %v4988_v4, %v4988_v4 }
 0x77a   :  { %5615 = vmatmul.mubr.bf16.vlgmr.msra.gmra.mrb[40].mxu1 %v9750_v9  ;;  %5656 = vmatmul.mubr.bf16.vlgmr.msra.gmra.mrb[44].mxu0 %v9750_v9 }
 0x77b   :  { %4991 = vst [vmem:[%s9974_s5 + $0x14] sm:$0xf] %v4989_v20  ;;  %5665 = vmatpush1.bf16.msra.mxu1 %v9747_v46  ;;  %5696 = vmatprep.mubr.bf16.mxu1 %v5099_v13  ;;  %v10252_v13 = vld [vmem:[#allocation32_spill] sm:$0xff] }
 0x77c   :  { %5666 = vmatprep.subr.bf16.mxu1 %v9752_v5  ;;  %6374 = vmatpush1.bf16.msra.mxu0 %v9537_v28  ;;  %v9779_v28 = vld [vmem:[#allocation3 + $0xd4] ss:$24 sps:$4 sm:$0xff]  }
 0x77d   :  { %6375 = vmatprep.subr.bf16.mxu0 %v9545_v12  ;;  %v9784_v12 = vld [vmem:[#allocation3 + $0xd0] ss:$24 sps:$4 sm:$0xff]  }
 0x77f   :  { %5667 = vmatpush1.bf16.msra.mxu1 %v9760_v49 }
 0x780   :  { %5668 = vmatprep.subr.bf16.mxu1 %v9763_v21  ;;  %6376 = vmatpush1.bf16.msra.mxu0 %v9552_v45  ;;  %v9787_v45 = vld [vmem:[#allocation3 + $0x104] ss:$24 sps:$4 sm:$0xff]  }
 0x781   :  { %6377 = vmatprep.subr.bf16.mxu0 %v9558_v48  ;;  %v9792_v48 = vld [vmem:[#allocation3 + $0x100] ss:$24 sps:$4 sm:$0xff]  }
 0x783   :  { %5669 = vmatpush1.bf16.msra.mxu1 %v9768_v3 }
 0x784   :  { %5670 = vmatprep.subr.bf16.mxu1 %v9771_v0  ;;  %6378 = vmatpush1.bf16.msra.mxu0 %v9564_v61  ;;  %v9795_v61 = vld [vmem:[#allocation3 + $0x134] ss:$24 sps:$4 sm:$0xff]  }
 0x785   :  { %6379 = vmatprep.subr.bf16.mxu0 %v9570_v26  ;;  %v9800_v26 = vld [vmem:[#allocation3 + $0x130] ss:$24 sps:$4 sm:$0xff]  }
 0x787   :  { %5671 = vmatpush1.bf16.msra.mxu1 %v9776_v63 }
 0x788   :  { %5672 = vmatprep.subr.bf16.mxu1 %v9779_v28  ;;  %6380 = vmatpush1.bf16.msra.mxu0 %v9576_v42  ;;  %v9803_v42 = vld [vmem:[#allocation3 + $0x164] ss:$24 sps:$4 sm:$0xff]  }
 0x789   :  { %6381 = vmatprep.subr.bf16.mxu0 %v9582_v31  ;;  %v9808_v31 = vld [vmem:[#allocation3 + $0x160] ss:$24 sps:$4 sm:$0xff]  }
 0x78b   :  { %5673 = vmatpush1.bf16.msra.mxu1 %v9784_v12 }
 0x78c   :  { %5674 = vmatprep.subr.bf16.mxu1 %v9787_v45  ;;  %6382 = vmatpush1.bf16.msra.mxu0 %v9588_v51  ;;  %v9811_v51 = vld [vmem:[#allocation3 + $0x194] ss:$24 sps:$4 sm:$0xff]  }
 0x78d   :  { %6383 = vmatprep.subr.bf16.mxu0 %v9594_v58  ;;  %v9816_v58 = vld [vmem:[#allocation3 + $0x190] ss:$24 sps:$4 sm:$0xff]  }
 0x78f   :  { %5675 = vmatpush1.bf16.msra.mxu1 %v9792_v48 }
 0x790   :  { %5676 = vmatprep.subr.bf16.mxu1 %v9795_v61  ;;  %6384 = vmatpush1.bf16.msra.mxu0 %v9600_v43  ;;  %v9819_v43 = vld [vmem:[#allocation3 + $0x1c4] ss:$24 sps:$4 sm:$0xff]  }
 0x791   :  { %6385 = vmatprep.subr.bf16.mxu0 %v9606_v17  ;;  %v9824_v17 = vld [vmem:[#allocation3 + $0x1c0] ss:$24 sps:$4 sm:$0xff]  }
 0x793   :  { %5677 = vmatpush1.bf16.msra.mxu1 %v9800_v26 }
 0x794   :  { %5678 = vmatprep.subr.bf16.mxu1 %v9803_v42  ;;  %6386 = vmatpush1.bf16.msra.mxu0 %v9612_v11  ;;  %v9827_v11 = vld [vmem:[#allocation3 + $0x1f4] ss:$24 sps:$4 sm:$0xff]  }
 0x795   :  { %6387 = vmatprep.subr.bf16.mxu0 %v9618_v62  ;;  %v9832_v62 = vld [vmem:[#allocation3 + $0x1f0] ss:$24 sps:$4 sm:$0xff]  }
 0x797   :  { %5679 = vmatpush1.bf16.msra.mxu1 %v9808_v31 }
 0x798   :  { %5680 = vmatprep.subr.bf16.mxu1 %v9811_v51  ;;  %6388 = vmatpush1.bf16.msra.mxu0 %v9624_v14  ;;  %v9835_v14 = vld [vmem:[#allocation3 + $0x224] ss:$24 sps:$4 sm:$0xff]  }
 0x799   :  { %6389 = vmatprep.subr.bf16.mxu0 %v9630_v37  ;;  %v9840_v37 = vld [vmem:[#allocation3 + $0x220] ss:$24 sps:$4 sm:$0xff]  }
 0x79b   :  { %5681 = vmatpush1.bf16.msra.mxu1 %v9816_v58 }
 0x79c   :  { %5682 = vmatprep.subr.bf16.mxu1 %v9819_v43  ;;  %6390 = vmatpush1.bf16.msra.mxu0 %v9636_v30  ;;  %v9843_v30 = vld [vmem:[#allocation3 + $0x254] ss:$24 sps:$4 sm:$0xff]  }
 0x79d   :  { %6391 = vmatprep.subr.bf16.mxu0 %v9645_v38  ;;  %v9848_v38 = vld [vmem:[#allocation3 + $0x250] ss:$24 sps:$4 sm:$0xff]  }
 0x79f   :  { %5683 = vmatpush1.bf16.msra.mxu1 %v9824_v17 }
 0x7a0   :  { %5684 = vmatprep.subr.bf16.mxu1 %v9827_v11  ;;  %6392 = vmatpush1.bf16.msra.mxu0 %v9647_v33  ;;  %v9851_v33 = vld [vmem:[#allocation3 + $0x284] ss:$24 sps:$4 sm:$0xff]  }
 0x7a1   :  { %6393 = vmatprep.subr.bf16.mxu0 %v9657_v59  ;;  %v9856_v59 = vld [vmem:[#allocation3 + $0x280] ss:$24 sps:$4 sm:$0xff]  }
 0x7a3   :  { %5685 = vmatpush1.bf16.msra.mxu1 %v9832_v62 }
 0x7a4   :  { %5686 = vmatprep.subr.bf16.mxu1 %v9835_v14  ;;  %6394 = vmatpush1.bf16.msra.mxu0 %v9659_v55  ;;  %v9859_v55 = vld [vmem:[#allocation3 + $0x2b4] ss:$24 sps:$4 sm:$0xff]  }
 0x7a5   :  { %6395 = vmatprep.subr.bf16.mxu0 %v9671_v22  ;;  %v9864_v22 = vld [vmem:[#allocation3 + $0x2b0] ss:$24 sps:$4 sm:$0xff]  }
 0x7a7   :  { %5687 = vmatpush1.bf16.msra.mxu1 %v9840_v37 }
 0x7a8   :  { %5688 = vmatprep.subr.bf16.mxu1 %v9843_v30  ;;  %6396 = vmatpush1.bf16.msra.mxu0 %v9669_v15  ;;  %v9867_v15 = vld [vmem:[#allocation3 + $0x2e4] ss:$24 sps:$4 sm:$0xff]  }
 0x7a9   :  { %6397 = vmatprep.subr.bf16.mxu0 %v9677_v2  ;;  %v9872_v2 = vld [vmem:[#allocation3 + $0x2e0] ss:$24 sps:$4 sm:$0xff]  }
 0x7ab   :  { %5689 = vmatpush1.bf16.msra.mxu1 %v9848_v38 }
 0x7ac   :  { %5690 = vmatprep.subr.bf16.mxu1 %v9851_v33  ;;  %6398 = vmatpush1.bf16.msra.mxu0 %v9684_v1  ;;  %v10227_v1 = vld [vmem:[#allocation7_spill] sm:$0xff] }
 0x7ad   :  { %6399 = vmatprep.subr.bf16.mxu0 %v9690_v32  ;;  %v10230_v32 = vld [vmem:[#allocation10_spill] sm:$0xff] }
 0x7af   :  { %5691 = vmatpush1.bf16.msra.mxu1 %v9856_v59 }
 0x7b0   :  { %5692 = vmatprep.subr.bf16.mxu1 %v9859_v55  ;;  %6400 = vmatpush1.bf16.msra.mxu0 %v9696_v44  ;;  %v10232_v44 = vld [vmem:[#allocation12_spill] sm:$0xff] }
 0x7b1   :  { %6401 = vmatprep.subr.bf16.mxu0 %v9702_v50  ;;  %v10239_v50 = vld [vmem:[#allocation19_spill] sm:$0xff] }
 0x7b3   :  { %5693 = vmatpush1.bf16.msra.mxu1 %v9864_v22 }
 0x7b4   :  { %5694 = vmatprep.subr.bf16.mxu1 %v9867_v15  ;;  %6402 = vmatpush1.bf16.msra.mxu0 %v9708_v53  ;;  %v10240_v53 = vld [vmem:[#allocation20_spill] sm:$0xff] }
 0x7b5   :  { %6403 = vmatprep.subr.bf16.mxu0 %v9714_v27  ;;  %v10228_v27 = vld [vmem:[#allocation8_spill] sm:$0xff] }
 0x7b7   :  { %5695 = vmatpush1.bf16.msra.mxu1 %v9872_v2 }
 0x7b8   :  { %6414 = vmatprep.subr.bf16.mxu1 %v9543_v54  ;;  %6404 = vmatpush1.bf16.msra.mxu0 %v9720_v7  ;;  %v10229_v54 = vld [vmem:[#allocation9_spill] sm:$0xff]  ;;  %v10231_v7 = vld [vmem:[#allocation11_spill] sm:$0xff] }
 0x7b9   :  { %6455 = vmatprep.subr.bf16.mxu0 %v9728_v40  ;;  %v10238_v40 = vld [vmem:[#allocation18_spill] sm:$0xff] }
 0x7ba   :  { %5697 = vmatmul.mubr.bf16.vlgmr.msra.gmra.mrb[44].mxu1 %v9750_v9 }
 0x7bb   :  { %6415 = vmatpush1.bf16.msra.mxu1 %v9541_v35  ;;  %v10233_v35 = vld [vmem:[#allocation13_spill] sm:$0xff] }
 0x7bc   :  { %6416 = vmatprep.subr.bf16.mxu1 %v9548_v10  ;;  %v10234_v10 = vld [vmem:[#allocation14_spill] sm:$0xff] }
 0x7bf   :  { %6417 = vmatpush1.bf16.msra.mxu1 %v9556_v29  ;;  %v10235_v29 = vld [vmem:[#allocation15_spill] sm:$0xff] }
 0x7c0   :  { %6418 = vmatprep.subr.bf16.mxu1 %v9561_v60  ;;  %v10236_v60 = vld [vmem:[#allocation16_spill] sm:$0xff] }
 0x7c3   :  { %6419 = vmatpush1.bf16.msra.mxu1 %v9568_v18  ;;  %v10237_v18 = vld [vmem:[#allocation17_spill] sm:$0xff] }
 0x7c4   :  { %6420 = vmatprep.subr.bf16.mxu1 %v10227_v1 }
 0x7c7   :  { %6421 = vmatpush1.bf16.msra.mxu1 %v10228_v27 }
 0x7c8   :  { %6422 = vmatprep.subr.bf16.mxu1 %v10229_v54  ;;  %v4994_v54 = vld [vmem:[#allocation2 + $0x40] sm:$0x30] }
 0x7cb   :  { %6423 = vmatpush1.bf16.msra.mxu1 %v10230_v32 }
 0x7cc   :  { %6424 = vmatprep.subr.bf16.mxu1 %v10231_v7 }
 0x7cf   :  { %6425 = vmatpush1.bf16.msra.mxu1 %v10232_v44 }
 0x7d0   :  { %6426 = vmatprep.subr.bf16.mxu1 %v10233_v35 }
 0x7d3   :  { %6427 = vmatpush1.bf16.msra.mxu1 %v10234_v10  ;;  %v4995_v10 = vld [vmem:[#allocation2 + $0x48] sm:$0x30] }
 0x7d4   :  { %6428 = vmatprep.subr.bf16.mxu1 %v10235_v29 }
 0x7d7   :  { %6429 = vmatpush1.bf16.msra.mxu1 %v10236_v60 }
 0x7d8   :  { %6430 = vmatprep.subr.bf16.mxu1 %v10237_v18 }
 0x7db   :  { %6431 = vmatpush1.bf16.msra.mxu1 %v10238_v40 }
 0x7dc   :  { %6432 = vmatprep.subr.bf16.mxu1 %v10239_v50 }
 0x7df   :  { %6433 = vmatpush1.bf16.msra.mxu1 %v10240_v53 }
 0x7e0   :  { %6434 = vmatprep.subr.bf16.mxu1 %v10241_v16 }
 0x7e3   :  { %6435 = vmatpush1.bf16.msra.mxu1 %v10242_v47 }
 0x7e4   :  { %6436 = vmatprep.subr.bf16.mxu1 %v10243_v39 }
 0x7e7   :  { %6437 = vmatpush1.bf16.msra.mxu1 %v10244_v41 }
 0x7e8   :  { %6438 = vmatprep.subr.bf16.mxu1 %v10245_v19 }
 0x7eb   :  { %6439 = vmatpush1.bf16.msra.mxu1 %v10246_v36  ;;  %v5763_v36 = vrot.slane %v9737_v23, 6 }
 0x7ec   :  { %6440 = vmatprep.subr.bf16.mxu1 %v10247_v25 }
 0x7ef   :  { %6441 = vmatpush1.bf16.msra.mxu1 %v10248_v24  ;;  %v4992_v24 = vld [vmem:[#allocation2 + $0x30] sm:$0x30] }
 0x7f0   :  { %6442 = vmatprep.subr.bf16.mxu1 %v10249_v8  ;;  %v5764_v8 = vrot.slane %v9739_v52, 6 }
 0x7f3   :  { %6443 = vmatpush1.bf16.msra.mxu1 %v10250_v57 }
 0x7f4   :  { %6444 = vmatprep.subr.bf16.mxu1 %v10251_v34 }
 0x7f7   :  { %6445 = vmatpush1.bf16.msra.mxu1 %v10252_v13 }
 0x84d   :  { %v5616_v4 = vpop.f32.mrb[40].mxu1  ;;  %v5657_v9 = vpop.f32.mrb[44].mxu0 }
 0x84e   :  { %v5727_v20 = vrot.slane %v5657_v9, 4  ;;  %v5618_v1 = vpop.f32.mrb[41].mxu1  ;;  %v5659_v27 = vpop.f32.mrb[45].mxu0  ;;  %v5707_v41 = vrot.slane %v5616_v4, 4  ;;  %v4993_v9 = vld [vmem:[#allocation2 + $0x38] sm:$0x30] }
 0x84f   :  { %v5728_v32 = vrot.slane %v5659_v27, 4  ;;  %v5620_v7 = vpop.f32.mrb[42].mxu1  ;;  %v5661_v44 = vpop.f32.mrb[46].mxu0  ;;  %v5708_v19 = vrot.slane %v5618_v1, 4 }
 0x850   :  { %v5731_v35 = vadd.f32 %v5727_v20, %v4994_v54  ;;  %v5621_v29 = vpop.f32.mrb[43].mxu1  ;;  %v5662_v60 = vpop.f32.mrb[47].mxu0  ;;  %v5711_v13 = vadd.f32 %v5707_v41, %v4992_v24 }
 0x851   :  { %v5732_v18 = vadd.f32 %v5728_v32, %v4995_v10  ;;  %v5712_v20 = vadd.f32 %v5708_v19, %v4993_v9 }
 0x852   :  { %v7297_v40 = vmul.f32 -1.442695, %v5731_v35  ;;  %v7295_v54 = vmul.f32 -1.442695, %v5711_v13  ;;  %v10253_v35 = vld [vmem:[#allocation6_spill] sm:$0xff] }
 0x853   :  { %v7298_v50 = vmul.f32 -1.442695, %v5732_v18  ;;  %v7296_v32 = vmul.f32 -1.442695, %v5712_v20 }
 0x854   :  { %8120 = vpow2.f32 %v7297_v40 }
 0x855   :  { %8122 = vpow2.f32 %v7298_v50 }
 0x85e   :  { %v8121_v53 = vpop.eup %8120 }
 0x85f   :  { %v5739_v16 = vadd.f32 1.0, %v8121_v53  ;;  %v8123_v47 = vpop.eup %8122 }
 0x860   :  { %v5740_v39 = vadd.f32 1.0, %v8123_v47 }
 0x861   :  { %8124 = vrcp.f32 %v5739_v16 }
 0x862   :  { %8126 = vrcp.f32 %v5740_v39  ;;  %v4996_v39 = vld [vmem:[#allocation2 + $0x50] sm:$0x30] }
 0x863   :  { %8128 = vpow2.f32 %v7295_v54 }
 0x864   :  { %8130 = vpow2.f32 %v7296_v32 }
 0x86b   :  { %v8125_v25 = vpop.eup %8124 }
 0x86c   :  { %v5767_v57 = vmul.f32 %v8125_v25, %v5763_v36  ;;  %v8127_v34 = vpop.eup %8126  ;;  %v4997_v36 = vld [vmem:[#allocation2 + $0x58] sm:$0x30] }
 0x86d   :  { %v5768_v27 = vmul.f32 %v8127_v34, %v5764_v8  ;;  %v8129_v7 = vpop.eup %8128  ;;  %v5759_v8 = vsub.f32 1.0, %v8125_v25  ;;  %v5760_v9 = vsub.f32 1.0, %v8127_v34 }
 0x86e   :  { %v8131_v44 = vpop.eup %8130  ;;  %v5719_v4 = vadd.f32 1.0, %v8129_v7 }
 0x86f   :  { %v5720_v1 = vadd.f32 1.0, %v8131_v44 }
 0x870   :  { %8132 = vrcp.f32 %v5719_v4 }
 0x871   :  { %8134 = vrcp.f32 %v5720_v1 }
 0x87a   :  { %v8133_v50 = vpop.eup %8132 }
 0x87b   :  { %v8135_v16 = vpop.eup %8134 }
 0x88d   :  { %v5698_v23 = vpop.f32.mrb[44].mxu1 }
 0x88e   :  { %v5745_v10 = vadd.f32 %v5698_v23, %v10253_v35  ;;  %v5700_v52 = vpop.f32.mrb[45].mxu1 }
 0x88f   :  { %v5746_v29 = vadd.f32 %v5700_v52, %v10147_v6  ;;  %v5702_v60 = vpop.f32.mrb[46].mxu1 }
 0x890   :  { %v5749_v18 = vrot.slane %v5745_v10, 4  ;;  %v5703_v40 = vpop.f32.mrb[47].mxu1 }
 0x891   :  { %v5750_v53 = vrot.slane %v5746_v29, 4 }
 0x892   :  { %v5753_v47 = vmul.f32 %v8133_v50, %v5749_v18 }
 0x893   :  { %v5754_v41 = vmul.f32 %v8135_v16, %v5750_v53 }
 0x894   :  { %v5755_v19 = vadd.f32 %v5753_v47, %v4996_v39 }
 0x895   :  { %v5756_v24 = vadd.f32 %v5754_v41, %v4997_v36 }
 0x896   :  { %8136 = vtanh.f32 %v5755_v19 }
 0x897   :  { %8138 = vtanh.f32 %v5756_v24 }
 0x8a0   :  { %v8137_v13 = vpop.eup %8136 }
 0x8a1   :  { %v8139_v20 = vpop.eup %8138  ;;  %v5761_v54 = vmul.f32 %v8137_v13, %v5759_v8  ;;  %v5787_v13 = vld [vmem:[#allocation2 + $0x50] sm:$0xc0] }
 0x8a2   :  { %v5762_v32 = vmul.f32 %v8139_v20, %v5760_v9 }
 0x8a3   :  { %v9917_v7 = vadd.f32 %v5767_v57, %v5761_v54  ;;  %v5788_v54 = vld [vmem:[#allocation2 + $0x58] sm:$0xc0] }
 0x8a4   :  { %v9919_v44 = vadd.f32 %v5768_v27, %v5762_v32 }
 0x8a5   :  { %v5789_v4 = vpack.c.bf16 %v9917_v7, %v9917_v7 }
 0x8a6   :  { %v5790_v1 = vpack.c.bf16 %v9919_v44, %v9919_v44  ;;  %v5773_v23 = vcombine.high %v9917_v7, %v9919_v44 }
 0x8a7   :  { %v5889_v25 = vrot.slane %v5789_v4, 2 }
 0x8a8   :  { %v5890_v10 = vrot.slane %v5790_v1, 2  ;;  %7299 = vst.sshfl [vmem:[%s9974_s5 + $0x18] sm:$0x33 pattern:$0x76325410] %v5773_v23 }
 0x8aa   :  { %6405 = vmatprep.mubr.bf16.mxu0 %v5890_v10  ;;  %6446 = vmatprep.mubr.bf16.mxu1 %v5890_v10 }
 0x8ab   :  { %6406 = vmatmul.mubr.bf16.vlgmr.msra.gmra.mrb[48].mxu0 %v5889_v25  ;;  %6447 = vmatmul.mubr.bf16.vlgmr.msra.gmra.mrb[48].mxu1 %v5889_v25 }
 0x8ac   :  { %6456 = vmatpush1.bf16.msra.mxu0 %v9747_v46  ;;  %6487 = vmatprep.mubr.bf16.mxu0 %v5890_v10 }
 0x8ad   :  { %6457 = vmatprep.subr.bf16.mxu0 %v9752_v5 }
 0x8b0   :  { %6458 = vmatpush1.bf16.msra.mxu0 %v9760_v49 }
 0x8b1   :  { %6459 = vmatprep.subr.bf16.mxu0 %v9763_v21 }
 0x8b4   :  { %6460 = vmatpush1.bf16.msra.mxu0 %v9768_v3 }
 0x8b5   :  { %6461 = vmatprep.subr.bf16.mxu0 %v9771_v0  ;;  %v5785_v0 = vld [vmem:[#allocation2 + $0x40] sm:$0xc0] }
 0x8b8   :  { %6462 = vmatpush1.bf16.msra.mxu0 %v9776_v63 }
 0x8b9   :  { %6463 = vmatprep.subr.bf16.mxu0 %v9779_v28 }
 0x8bc   :  { %6464 = vmatpush1.bf16.msra.mxu0 %v9784_v12 }
 0x8bd   :  { %6465 = vmatprep.subr.bf16.mxu0 %v9787_v45 }
 0x8c0   :  { %6466 = vmatpush1.bf16.msra.mxu0 %v9792_v48  ;;  %v5786_v48 = vld [vmem:[#allocation2 + $0x48] sm:$0xc0] }
 0x8c1   :  { %6467 = vmatprep.subr.bf16.mxu0 %v9795_v61 }
 0x8c4   :  { %6468 = vmatpush1.bf16.msra.mxu0 %v9800_v26 }
 0x8c5   :  { %6469 = vmatprep.subr.bf16.mxu0 %v9803_v42 }
 0x8c8   :  { %6470 = vmatpush1.bf16.msra.mxu0 %v9808_v31 }
 0x8c9   :  { %6471 = vmatprep.subr.bf16.mxu0 %v9811_v51 }
 0x8cc   :  { %6472 = vmatpush1.bf16.msra.mxu0 %v9816_v58 }
 0x8cd   :  { %6473 = vmatprep.subr.bf16.mxu0 %v9819_v43 }
 0x8d0   :  { %6474 = vmatpush1.bf16.msra.mxu0 %v9824_v17 }
 0x8d1   :  { %6475 = vmatprep.subr.bf16.mxu0 %v9827_v11 }
 0x8d4   :  { %6476 = vmatpush1.bf16.msra.mxu0 %v9832_v62 }
 0x8d5   :  { %6477 = vmatprep.subr.bf16.mxu0 %v9835_v14  ;;  %v6554_v14 = vrot.slane %v9917_v7, 6 }
 0x8d8   :  { %6478 = vmatpush1.bf16.msra.mxu0 %v9840_v37 }
 0x8d9   :  { %6479 = vmatprep.subr.bf16.mxu0 %v9843_v30 }
 0x8dc   :  { %6480 = vmatpush1.bf16.msra.mxu0 %v9848_v38  ;;  %v6555_v38 = vrot.slane %v9919_v44, 6 }
 0x8dd   :  { %6481 = vmatprep.subr.bf16.mxu0 %v9851_v33  ;;  %v5783_v33 = vld [vmem:[#allocation2 + $0x30] sm:$0xc0] }
 0x8e0   :  { %6482 = vmatpush1.bf16.msra.mxu0 %v9856_v59 }
 0x8e1   :  { %6483 = vmatprep.subr.bf16.mxu0 %v9859_v55 }
 0x8e4   :  { %6484 = vmatpush1.bf16.msra.mxu0 %v9864_v22 }
 0x8e5   :  { %6485 = vmatprep.subr.bf16.mxu0 %v9867_v15  ;;  %v5784_v15 = vld [vmem:[#allocation2 + $0x38] sm:$0xc0] }
 0x8e8   :  { %6486 = vmatpush1.bf16.msra.mxu0 %v9872_v2 }
 0x8eb   :  { %6488 = vmatmul.mubr.bf16.vlgmr.msra.gmra.mrb[52].mxu0 %v5889_v25 }
 0x97e   :  { %v6407_v46 = vpop.f32.mrb[48].mxu0  ;;  %v6448_v5 = vpop.f32.mrb[48].mxu1 }
 0x97f   :  { %v6518_v49 = vrot.slane %v6448_v5, 2  ;;  %v6409_v21 = vpop.f32.mrb[49].mxu0  ;;  %v6450_v3 = vpop.f32.mrb[49].mxu1  ;;  %v6498_v62 = vrot.slane %v6407_v46, 2 }
 0x980   :  { %v6519_v63 = vrot.slane %v6450_v3, 2  ;;  %v6411_v28 = vpop.f32.mrb[50].mxu0  ;;  %v6452_v12 = vpop.f32.mrb[50].mxu1  ;;  %v6499_v37 = vrot.slane %v6409_v21, 2 }
 0x981   :  { %v6522_v45 = vadd.f32 %v6518_v49, %v5785_v0  ;;  %v6412_v61 = vpop.f32.mrb[51].mxu0  ;;  %v6453_v26 = vpop.f32.mrb[51].mxu1  ;;  %v6502_v22 = vadd.f32 %v6498_v62, %v5783_v33 }
 0x982   :  { %v6523_v42 = vadd.f32 %v6519_v63, %v5786_v48  ;;  %v6503_v2 = vadd.f32 %v6499_v37, %v5784_v15 }
 0x983   :  { %v7398_v31 = vmul.f32 -1.442695, %v6522_v45  ;;  %v7396_v34 = vmul.f32 -1.442695, %v6502_v22 }
 0x984   :  { %v7399_v51 = vmul.f32 -1.442695, %v6523_v42  ;;  %v7397_v27 = vmul.f32 -1.442695, %v6503_v2 }
 0x985   :  { %8140 = vpow2.f32 %v7398_v31 }
 0x986   :  { %8142 = vpow2.f32 %v7399_v51 }
 0x98f   :  { %v8141_v58 = vpop.eup %8140 }
 0x990   :  { %v6530_v43 = vadd.f32 1.0, %v8141_v58  ;;  %v8143_v17 = vpop.eup %8142 }
 0x991   :  { %v6531_v11 = vadd.f32 1.0, %v8143_v17 }
 0x992   :  { %8144 = vrcp.f32 %v6530_v43 }
 0x993   :  { %8146 = vrcp.f32 %v6531_v11 }
 0x994   :  { %8148 = vpow2.f32 %v7396_v34 }
 0x995   :  { %8150 = vpow2.f32 %v7397_v27 }
 0x99c   :  { %v8145_v30 = vpop.eup %8144 }
 0x99d   :  { %v6558_v59 = vmul.f32 %v8145_v30, %v6554_v14  ;;  %v8147_v55 = vpop.eup %8146  ;;  %v6550_v7 = vsub.f32 1.0, %v8145_v30 }
 0x99e   :  { %v6559_v57 = vmul.f32 %v8147_v55, %v6555_v38  ;;  %v8149_v52 = vpop.eup %8148 }
 0x99f   :  { %v8151_v29 = vpop.eup %8150  ;;  %v6510_v60 = vadd.f32 1.0, %v8149_v52 }
 0x9a0   :  { %v6511_v18 = vadd.f32 1.0, %v8151_v29 }
 0x9a1   :  { %8152 = vrcp.f32 %v6510_v60 }
 0x9a2   :  { %8154 = vrcp.f32 %v6511_v18 }
 0x9ab   :  { %v8153_v19 = vpop.eup %8152 }
 0x9ac   :  { %v8155_v24 = vpop.eup %8154 }
 0x9be   :  { %v6489_v40 = vpop.f32.mrb[52].mxu0 }
 0x9bf   :  { %v6536_v50 = vadd.f32 %v6489_v40, %v10253_v35  ;;  %v6491_v53 = vpop.f32.mrb[53].mxu0  ;;  %v6551_v35 = vsub.f32 1.0, %v8147_v55 }
 0x9c0   :  { %v6537_v16 = vadd.f32 %v6491_v53, %v10147_v6  ;;  %v6493_v47 = vpop.f32.mrb[54].mxu0 }
 0x9c1   :  { %v6540_v39 = vrot.slane %v6536_v50, 2  ;;  %v6494_v41 = vpop.f32.mrb[55].mxu0 }
 0x9c2   :  { %v6541_v36 = vrot.slane %v6537_v16, 2 }
 0x9c3   :  { %v6544_v8 = vmul.f32 %v8153_v19, %v6540_v39 }
 0x9c4   :  { %v6545_v9 = vmul.f32 %v8155_v24, %v6541_v36 }
 0x9c5   :  { %v6546_v20 = vadd.f32 %v6544_v8, %v5787_v13 }
 0x9c6   :  { %v6547_v32 = vadd.f32 %v6545_v9, %v5788_v54 }
 0x9c7   :  { %8156 = vtanh.f32 %v6546_v20 }
 0x9c8   :  { %8158 = vtanh.f32 %v6547_v32 }
 0x9d1   :  { %v8157_v44 = vpop.eup %8156 }
 0x9d2   :  { %v8159_v4 = vpop.eup %8158  ;;  %v6552_v1 = vmul.f32 %v8157_v44, %v6550_v7 }
 0x9d3   :  { %v6553_v6 = vmul.f32 %v8159_v4, %v6551_v35 }
 0x9d4   :  { %v6560_v23 = vadd.f32 %v6558_v59, %v6552_v1 }
 0x9d5   :  { %v6561_v10 = vadd.f32 %v6559_v57, %v6553_v6 }
 0x9d7   :  { %v6564_v25 = vcombine.high %v6560_v23, %v6561_v10 }
 0x9d9   :  { %v6571_v46 = vrot.slane %v6564_v25, %v8891_v56 }
 0x9db   :  { %v6572_v5 = vcombine.high %v6571_v46, %v6571_v46 }
 0x9dd   :  { %6574 = vst [vmem:[%s9974_s5 + $0x1c] sm:$0xf] %v6572_v5 }
 0x9de   :  { %6579 = vsyncpa [#allocation4], 1 }

</bundles_post_ra>
